<compile_context>
chip_gen: v6e
topology: v6e:2x2x1
jax: 0.10.0
libtpu: 0.0.40
codegen_flags: <defaults>
</compile_context>

<pallas_src>
import math

import jax
import jax.numpy as jnp
from jax.experimental import pallas as pl
from jax.experimental.pallas import tpu as pltpu

# ----- small synthetic BERT config -----
VOCAB = 128
HIDDEN = 32
HEADS = 2
HEAD_DIM = HIDDEN // HEADS
FFN = 64
LAYERS = 2
MAX_POS = 16
LN_EPS = 1e-12
SEQ = 8
BATCH = 2

HP = 128   # lane-padded hidden width
FP = 128   # lane-padded FFN width


# --------------------------- fused kernel ---------------------------
def fused_bert_kernel(ids_ref, amb_ref, amc_ref, *refs):
    (word_ref, postype_ref, eg_ref, eb_ref,
     wq_ref, wk_ref, wv_ref, bq_ref, bk_ref, bv_ref,
     wo_ref, bo_ref, l1g_ref, l1b_ref,
     w1_ref, b1_ref, w2_ref, b2_ref, l2g_ref, l2b_ref,
     out_ref) = refs

    b, _, s = amb_ref.shape            # batch, seq (static python ints)
    bs = b * s
    hp = word_ref.shape[1]

    # Lane mask selecting the real HIDDEN columns out of the padded HP lanes.
    col_mask = (jax.lax.broadcasted_iota(jnp.int32, (1, hp), 1) < HIDDEN
                ).astype(jnp.float32)
    inv_h = 1.0 / HIDDEN

    def ln(x, gamma, beta):
        # LayerNorm over the real HIDDEN columns only; padded lanes of x are zero and
        # padded gamma/beta are zero, so padded output lanes stay exactly zero.
        mu = jnp.sum(x, axis=-1, keepdims=True) * inv_h
        xc = (x - mu) * col_mask
        var = jnp.sum(xc * xc, axis=-1, keepdims=True) * inv_h
        return xc * jax.lax.rsqrt(var + LN_EPS) * gamma + beta

    # ---- embeddings: one-hot(ids) @ word table, + (pos + type), then LN
    ids = ids_ref[...]                                                 # (B*S, 1) int32
    onehot = (ids == jax.lax.broadcasted_iota(jnp.int32, (bs, VOCAB), 1)
              ).astype(jnp.float32)                                    # (B*S, 128)
    x = jnp.dot(onehot, word_ref[...], preferred_element_type=jnp.float32)
    x = x + postype_ref[...]                                           # (B*S, HP)
    x = ln(x, eg_ref[...], eb_ref[...])

    # ---- attention bias, hoisted once (shared by all layers); key-position mask only
    bias = (1.0 - amb_ref[...]) * (-1e9)                               # (B, 1, S)
    bias_g = jnp.concatenate([bias] * HEADS, axis=0)                   # (G, 1, S) head-major
    scale = 1.0 / math.sqrt(HEAD_DIM)

    for layer in range(LAYERS):                                        # static unroll
        x3 = x.reshape(b, s, hp)
        xg = jnp.concatenate([x3] * HEADS, axis=0)                     # (G, S, HP)

        q = jnp.einsum('gsd,gdk->gsk', xg, wq_ref[layer],
                       preferred_element_type=jnp.float32) + bq_ref[layer]
        k = jnp.einsum('gsd,gdk->gsk', xg, wk_ref[layer],
                       preferred_element_type=jnp.float32) + bk_ref[layer]
        v = jnp.einsum('gsd,gdk->gsk', xg, wv_ref[layer],
                       preferred_element_type=jnp.float32) + bv_ref[layer]

        sc = jnp.einsum('gqk,gpk->gqp', q, k,
                        preferred_element_type=jnp.float32) * scale + bias_g
        sc = sc - jnp.max(sc, axis=-1, keepdims=True)
        p = jnp.exp(sc)
        p = p * pl.reciprocal(jnp.sum(p, axis=-1, keepdims=True), approx=True)

        ctx = jnp.einsum('gqp,gpk->gqk', p, v,
                         preferred_element_type=jnp.float32)           # (G, S, Dh)
        attn_g = jnp.einsum('gsk,gkd->gsd', ctx, wo_ref[layer],
                            preferred_element_type=jnp.float32)        # (G, S, HP)
        attn = attn_g[0:b]
        for h in range(1, HEADS):                                      # sum head contributions
            attn = attn + attn_g[h * b:(h + 1) * b]
        attn2 = attn.reshape(bs, hp) + bo_ref[layer]

        h1 = ln(x + attn2, l1g_ref[layer], l1b_ref[layer])

        ff = jnp.dot(h1, w1_ref[layer], preferred_element_type=jnp.float32) + b1_ref[layer]
        # TODO(synk): HF BERT uses exact erf-GELU; tanh approximation used here.
        ff = jax.nn.gelu(ff, approximate=True)
        ff = jnp.dot(ff, w2_ref[layer], preferred_element_type=jnp.float32) + b2_ref[layer]

        x = ln(h1 + ff, l2g_ref[layer], l2b_ref[layer])

    # ---- masked mean pooling, excluding special tokens 101/102/103
    keep = ((ids != 101) & (ids != 102) & (ids != 103)).astype(jnp.float32)   # (B*S, 1)
    wgt = keep * amc_ref[...]                                                 # (B*S, 1)
    summed = jnp.sum((x * wgt).reshape(b, s, hp), axis=1)                     # (B, HP)
    cnt = jnp.maximum(jnp.sum(wgt.reshape(b, s, 1), axis=1), 1e-9)            # (B, 1)
    out_ref[...] = summed * pl.reciprocal(cnt, approx=True)


# --------------------------- parameter prep (wrapper-side, done once) ---------------------------
def _pad2(a, rows, cols):
    out = jnp.zeros((rows, cols), jnp.float32)
    return out.at[:a.shape[0], :a.shape[1]].set(a)


def init_params(key):
    keys = iter(jax.random.split(key, 64))

    def dense(shape):
        return 0.02 * jax.random.normal(next(keys), shape, jnp.float32)

    emb = {
        "word": dense((VOCAB, HIDDEN)),
        "pos": dense((MAX_POS, HIDDEN)),
        "type": dense((2, HIDDEN)),
        "ln_g": jnp.ones((1, HIDDEN), jnp.float32),
        "ln_b": jnp.zeros((1, HIDDEN), jnp.float32),
    }
    layers = []
    for _ in range(LAYERS):
        layers.append([
            dense((HIDDEN, HIDDEN)), jnp.zeros((1, HIDDEN), jnp.float32),  # Wq, bq
            dense((HIDDEN, HIDDEN)), jnp.zeros((1, HIDDEN), jnp.float32),  # Wk, bk
            dense((HIDDEN, HIDDEN)), jnp.zeros((1, HIDDEN), jnp.float32),  # Wv, bv
            dense((HIDDEN, HIDDEN)), jnp.zeros((1, HIDDEN), jnp.float32),  # Wo, bo
            jnp.ones((1, HIDDEN), jnp.float32), jnp.zeros((1, HIDDEN), jnp.float32),  # LN1
            dense((HIDDEN, FFN)), jnp.zeros((1, FFN), jnp.float32),        # W1, b1
            dense((FFN, HIDDEN)), jnp.zeros((1, HIDDEN), jnp.float32),     # W2, b2
            jnp.ones((1, HIDDEN), jnp.float32), jnp.zeros((1, HIDDEN), jnp.float32),  # LN2
        ])
    return emb, layers


def pack_params(emb, layers, batch, seq):
    """Zero-pad to lane width 128 and stack per-layer weights once, outside the kernel.

    Per-head Q/K/V/O slices are replicated per batch element into a head-major group
    axis of size G = HEADS * batch (group g = h * batch + b) so the kernel uses one
    batched dot_general per projection instead of a per-head Python loop.
    """
    grp = batch * HEADS

    def per_group(heads_list):
        return jnp.stack([heads_list[g // batch] for g in range(grp)])

    word_p = _pad2(emb["word"], VOCAB, HP)
    postype = emb["pos"][:seq] + emb["type"][0][None, :]
    postype_p = jnp.tile(_pad2(postype, seq, HP), (batch, 1))          # (B*S, HP)
    eg_p = _pad2(emb["ln_g"], 1, HP)
    eb_p = _pad2(emb["ln_b"], 1, HP)

    acc = {k: [] for k in ("wq", "wk", "wv", "bq", "bk", "bv", "wo", "bo",
                           "l1g", "l1b", "w1", "b1", "w2", "b2", "l2g", "l2b")}
    for (Wq, bq, Wk, bk, Wv, bv, Wo, bo, g1, be1, W1, bf1, W2, bf2, g2, be2) in layers:
        hsl = [slice(h * HEAD_DIM, (h + 1) * HEAD_DIM) for h in range(HEADS)]
        acc["wq"].append(per_group([_pad2(Wq[:, sl], HP, HEAD_DIM) for sl in hsl]))
        acc["wk"].append(per_group([_pad2(Wk[:, sl], HP, HEAD_DIM) for sl in hsl]))
        acc["wv"].append(per_group([_pad2(Wv[:, sl], HP, HEAD_DIM) for sl in hsl]))
        acc["bq"].append(per_group([bq[:, sl] for sl in hsl]))
        acc["bk"].append(per_group([bk[:, sl] for sl in hsl]))
        acc["bv"].append(per_group([bv[:, sl] for sl in hsl]))
        acc["wo"].append(per_group([_pad2(Wo[sl, :], HEAD_DIM, HP) for sl in hsl]))
        acc["bo"].append(_pad2(bo, 1, HP))
        acc["l1g"].append(_pad2(g1, 1, HP))
        acc["l1b"].append(_pad2(be1, 1, HP))
        acc["w1"].append(_pad2(W1, HP, FP))
        acc["b1"].append(_pad2(bf1, 1, FP))
        acc["w2"].append(_pad2(W2, FP, HP))
        acc["b2"].append(_pad2(bf2, 1, HP))
        acc["l2g"].append(_pad2(g2, 1, HP))
        acc["l2b"].append(_pad2(be2, 1, HP))

    st = {k: jnp.stack(v) for k, v in acc.items()}
    return [word_p, postype_p, eg_p, eb_p,
            st["wq"], st["wk"], st["wv"], st["bq"], st["bk"], st["bv"],
            st["wo"], st["bo"], st["l1g"], st["l1b"],
            st["w1"], st["b1"], st["w2"], st["b2"], st["l2g"], st["l2b"]]


# --------------------------- forward wrapper ---------------------------
def bert_mean_pool_forward(input_ids, attention_mask, packed):
    batch, seq = input_ids.shape
    ids_col = input_ids.reshape(batch * seq, 1).astype(jnp.int32)
    am = attention_mask.astype(jnp.float32)
    am_b1s = am.reshape(batch, 1, seq)       # for attention key masking (original mask)
    am_col = am.reshape(batch * seq, 1)      # for pooling

    vmem = pl.BlockSpec(memory_space=pltpu.MemorySpace.VMEM)
    out = pl.pallas_call(
        fused_bert_kernel,
        out_shape=jax.ShapeDtypeStruct((batch, HP), jnp.float32),
        in_specs=[vmem] * (3 + len(packed)),
        out_specs=vmem,
    )(ids_col, am_b1s, am_col, *packed)
    return out[:, :HIDDEN]                   # drop zero lane padding


if __name__ == "__main__":
    key = jax.random.PRNGKey(0)
    k_w, k_ids = jax.random.split(key)
    emb, layers = init_params(k_w)
    packed = pack_params(emb, layers, BATCH, SEQ)

    # TODO(synk): BertTokenizerFast has no Pallas equivalent; use deterministic
    # synthetic token ids instead (101=CLS, 102=SEP, 103=MASK, 0=PAD).
    body = jax.random.randint(k_ids, (BATCH, SEQ), 1, 100, dtype=jnp.int32)
    input_ids = body.at[:, 0].set(101)
    input_ids = input_ids.at[0, 2].set(103)
    input_ids = input_ids.at[0, SEQ - 2].set(102)
    input_ids = input_ids.at[0, SEQ - 1].set(0)
    input_ids = input_ids.at[1, 4].set(102)
    input_ids = input_ids.at[1, 5:].set(0)
    attention_mask = (input_ids != 0).astype(jnp.int32)

    out = bert_mean_pool_forward(input_ids, attention_mask, packed)
    out = jax.block_until_ready(out)
    assert out.shape == (BATCH, HIDDEN), out.shape
    assert bool(jnp.all(jnp.isfinite(out)))
    print("KERNEL_OK")
</pallas_src>

<mosaic_0001>
module attributes {stable_mosaic.version = 11 : i64} {
  func.func @fused_bert_kernel(%arg0: memref<16x1xi32, #tpu.memory_space<vmem>>, %arg1: memref<2x1x8xf32, #tpu.memory_space<vmem>>, %arg2: memref<16x1xf32, #tpu.memory_space<vmem>>, %arg3: memref<128x128xf32, #tpu.memory_space<vmem>>, %arg4: memref<16x128xf32, #tpu.memory_space<vmem>>, %arg5: memref<1x128xf32, #tpu.memory_space<vmem>>, %arg6: memref<1x128xf32, #tpu.memory_space<vmem>>, %arg7: memref<2x4x128x16xf32, #tpu.memory_space<vmem>>, %arg8: memref<2x4x128x16xf32, #tpu.memory_space<vmem>>, %arg9: memref<2x4x128x16xf32, #tpu.memory_space<vmem>>, %arg10: memref<2x4x1x16xf32, #tpu.memory_space<vmem>>, %arg11: memref<2x4x1x16xf32, #tpu.memory_space<vmem>>, %arg12: memref<2x4x1x16xf32, #tpu.memory_space<vmem>>, %arg13: memref<2x4x16x128xf32, #tpu.memory_space<vmem>>, %arg14: memref<2x1x128xf32, #tpu.memory_space<vmem>>, %arg15: memref<2x1x128xf32, #tpu.memory_space<vmem>>, %arg16: memref<2x1x128xf32, #tpu.memory_space<vmem>>, %arg17: memref<2x128x128xf32, #tpu.memory_space<vmem>>, %arg18: memref<2x1x128xf32, #tpu.memory_space<vmem>>, %arg19: memref<2x128x128xf32, #tpu.memory_space<vmem>>, %arg20: memref<2x1x128xf32, #tpu.memory_space<vmem>>, %arg21: memref<2x1x128xf32, #tpu.memory_space<vmem>>, %arg22: memref<2x1x128xf32, #tpu.memory_space<vmem>>, %arg23: memref<2x128xf32, #tpu.memory_space<vmem>>) attributes {dimension_semantics = [], scalar_prefetch = 0 : i64, scratch_operands = 0 : i64, tpu.core_type = #tpu.core_type<tc>} {
    %0 = tpu.iota {dimensions = array<i32: 1>} : vector<1x128xi32>
    %c32_i32 = arith.constant 32 : i32
    %1 = vector.broadcast %c32_i32 : i32 to vector<1x128xi32>
    %2 = arith.cmpi slt, %0, %1 : vector<1x128xi32>
    %3 = arith.extui %2 : vector<1x128xi1> to vector<1x128xi32>
    %4 = arith.sitofp %3 : vector<1x128xi32> to vector<1x128xf32>
    %c0 = arith.constant 0 : index
    %c0_0 = arith.constant 0 : index
    %5 = vector.load %arg0[%c0, %c0_0] : memref<16x1xi32, #tpu.memory_space<vmem>>, vector<16x1xi32>
    %6 = tpu.iota {dimensions = array<i32: 1>} : vector<16x128xi32>
    %7 = vector.broadcast %5 : vector<16x1xi32> to vector<16x128xi32>
    %8 = arith.cmpi eq, %7, %6 : vector<16x128xi32>
    %9 = arith.extui %8 : vector<16x128xi1> to vector<16x128xi32>
    %10 = arith.sitofp %9 : vector<16x128xi32> to vector<16x128xf32>
    %c0_1 = arith.constant 0 : index
    %c0_2 = arith.constant 0 : index
    %11 = vector.load %arg3[%c0_1, %c0_2] : memref<128x128xf32, #tpu.memory_space<vmem>>, vector<128x128xf32>
    %cst = arith.constant dense<0.000000e+00> : vector<16x128xf32>
    %12 = tpu.matmul %10, %11, %cst {dimension_numbers = #tpu.dot_dimension_numbers<[1], [0], [0], [1], [0, 0, 1, 1], [], []>} : vector<16x128xf32>, vector<128x128xf32>, vector<16x128xf32> -> vector<16x128xf32>
    %c0_3 = arith.constant 0 : index
    %c0_4 = arith.constant 0 : index
    %13 = vector.load %arg4[%c0_3, %c0_4] : memref<16x128xf32, #tpu.memory_space<vmem>>, vector<16x128xf32>
    %14 = arith.addf %12, %13 : vector<16x128xf32>
    %c0_5 = arith.constant 0 : index
    %c0_6 = arith.constant 0 : index
    %15 = vector.load %arg5[%c0_5, %c0_6] : memref<1x128xf32, #tpu.memory_space<vmem>>, vector<1x128xf32>
    %c0_7 = arith.constant 0 : index
    %c0_8 = arith.constant 0 : index
    %16 = vector.load %arg6[%c0_7, %c0_8] : memref<1x128xf32, #tpu.memory_space<vmem>>, vector<1x128xf32>
    %cst_9 = arith.constant dense<0.000000e+00> : vector<16xf32>
    %17 = vector.multi_reduction <add>, %14, %cst_9 [1] : vector<16x128xf32> to vector<16xf32>
    %18 = vector.shape_cast %17 : vector<16xf32> to vector<16x1xf32>
    %cst_10 = arith.constant 3.125000e-02 : f32
    %19 = vector.broadcast %cst_10 : f32 to vector<16x1xf32>
    %20 = arith.mulf %18, %19 : vector<16x1xf32>
    %21 = vector.broadcast %20 : vector<16x1xf32> to vector<16x128xf32>
    %22 = arith.subf %14, %21 : vector<16x128xf32>
    %23 = vector.broadcast %4 : vector<1x128xf32> to vector<16x128xf32>
    %24 = arith.mulf %22, %23 : vector<16x128xf32>
    %25 = arith.mulf %24, %24 : vector<16x128xf32>
    %cst_11 = arith.constant dense<0.000000e+00> : vector<16xf32>
    %26 = vector.multi_reduction <add>, %25, %cst_11 [1] : vector<16x128xf32> to vector<16xf32>
    %27 = vector.shape_cast %26 : vector<16xf32> to vector<16x1xf32>
    %cst_12 = arith.constant 3.125000e-02 : f32
    %28 = vector.broadcast %cst_12 : f32 to vector<16x1xf32>
    %29 = arith.mulf %27, %28 : vector<16x1xf32>
    %cst_13 = arith.constant 9.99999996E-13 : f32
    %30 = vector.broadcast %cst_13 : f32 to vector<16x1xf32>
    %31 = arith.addf %29, %30 : vector<16x1xf32>
    %32 = math.rsqrt %31 : vector<16x1xf32>
    %33 = vector.broadcast %32 : vector<16x1xf32> to vector<16x128xf32>
    %34 = arith.mulf %24, %33 : vector<16x128xf32>
    %35 = vector.broadcast %15 : vector<1x128xf32> to vector<16x128xf32>
    %36 = arith.mulf %34, %35 : vector<16x128xf32>
    %37 = vector.broadcast %16 : vector<1x128xf32> to vector<16x128xf32>
    %38 = arith.addf %36, %37 : vector<16x128xf32>
    %c0_14 = arith.constant 0 : index
    %c0_15 = arith.constant 0 : index
    %c0_16 = arith.constant 0 : index
    %39 = vector.load %arg1[%c0_14, %c0_15, %c0_16] : memref<2x1x8xf32, #tpu.memory_space<vmem>>, vector<2x1x8xf32>
    %cst_17 = arith.constant 1.000000e+00 : f32
    %40 = vector.broadcast %cst_17 : f32 to vector<2x1x8xf32>
    %41 = arith.subf %40, %39 : vector<2x1x8xf32>
    %cst_18 = arith.constant -1.000000e+09 : f32
    %42 = vector.broadcast %cst_18 : f32 to vector<2x1x8xf32>
    %43 = arith.mulf %41, %42 : vector<2x1x8xf32>
    %44 = tpu.concatenate %43, %43 in 0 : vector<2x1x8xf32>, vector<2x1x8xf32> -> vector<4x1x8xf32>
    %45 = vector.shape_cast %38 : vector<16x128xf32> to vector<2x8x128xf32>
    %46 = tpu.concatenate %45, %45 in 0 : vector<2x8x128xf32>, vector<2x8x128xf32> -> vector<4x8x128xf32>
    %c0_19 = arith.constant 0 : index
    %c0_20 = arith.constant 0 : index
    %c0_21 = arith.constant 0 : index
    %c0_22 = arith.constant 0 : index
    %47 = vector.load %arg7[%c0_19, %c0_20, %c0_21, %c0_22] : memref<2x4x128x16xf32, #tpu.memory_space<vmem>>, vector<1x4x128x16xf32>
    %48 = vector.shape_cast %47 : vector<1x4x128x16xf32> to vector<4x128x16xf32>
    "tpu.trace_start"() <{level = 10 : i32, message = "gsd,gdk->gsk"}> : () -> ()
    %cst_23 = arith.constant dense<0.000000e+00> : vector<4x8x16xf32>
    %49 = tpu.matmul %46, %48, %cst_23 {dimension_numbers = #tpu.dot_dimension_numbers<[2], [1], [1], [2], [0, 0, 0, 1, 1, 2], [0], [0]>} : vector<4x8x128xf32>, vector<4x128x16xf32>, vector<4x8x16xf32> -> vector<4x8x16xf32>
    "tpu.trace_stop"() : () -> ()
    %c0_24 = arith.constant 0 : index
    %c0_25 = arith.constant 0 : index
    %c0_26 = arith.constant 0 : index
    %c0_27 = arith.constant 0 : index
    %50 = vector.load %arg10[%c0_24, %c0_25, %c0_26, %c0_27] : memref<2x4x1x16xf32, #tpu.memory_space<vmem>>, vector<1x4x1x16xf32>
    %51 = vector.shape_cast %50 : vector<1x4x1x16xf32> to vector<4x1x16xf32>
    %52 = vector.broadcast %51 : vector<4x1x16xf32> to vector<4x8x16xf32>
    %53 = arith.addf %49, %52 : vector<4x8x16xf32>
    %c0_28 = arith.constant 0 : index
    %c0_29 = arith.constant 0 : index
    %c0_30 = arith.constant 0 : index
    %c0_31 = arith.constant 0 : index
    %54 = vector.load %arg8[%c0_28, %c0_29, %c0_30, %c0_31] : memref<2x4x128x16xf32, #tpu.memory_space<vmem>>, vector<1x4x128x16xf32>
    %55 = vector.shape_cast %54 : vector<1x4x128x16xf32> to vector<4x128x16xf32>
    "tpu.trace_start"() <{level = 10 : i32, message = "gsd,gdk->gsk"}> : () -> ()
    %cst_32 = arith.constant dense<0.000000e+00> : vector<4x8x16xf32>
    %56 = tpu.matmul %46, %55, %cst_32 {dimension_numbers = #tpu.dot_dimension_numbers<[2], [1], [1], [2], [0, 0, 0, 1, 1, 2], [0], [0]>} : vector<4x8x128xf32>, vector<4x128x16xf32>, vector<4x8x16xf32> -> vector<4x8x16xf32>
    "tpu.trace_stop"() : () -> ()
    %c0_33 = arith.constant 0 : index
    %c0_34 = arith.constant 0 : index
    %c0_35 = arith.constant 0 : index
    %c0_36 = arith.constant 0 : index
    %57 = vector.load %arg11[%c0_33, %c0_34, %c0_35, %c0_36] : memref<2x4x1x16xf32, #tpu.memory_space<vmem>>, vector<1x4x1x16xf32>
    %58 = vector.shape_cast %57 : vector<1x4x1x16xf32> to vector<4x1x16xf32>
    %59 = vector.broadcast %58 : vector<4x1x16xf32> to vector<4x8x16xf32>
    %60 = arith.addf %56, %59 : vector<4x8x16xf32>
    %c0_37 = arith.constant 0 : index
    %c0_38 = arith.constant 0 : index
    %c0_39 = arith.constant 0 : index
    %c0_40 = arith.constant 0 : index
    %61 = vector.load %arg9[%c0_37, %c0_38, %c0_39, %c0_40] : memref<2x4x128x16xf32, #tpu.memory_space<vmem>>, vector<1x4x128x16xf32>
    %62 = vector.shape_cast %61 : vector<1x4x128x16xf32> to vector<4x128x16xf32>
    "tpu.trace_start"() <{level = 10 : i32, message = "gsd,gdk->gsk"}> : () -> ()
    %cst_41 = arith.constant dense<0.000000e+00> : vector<4x8x16xf32>
    %63 = tpu.matmul %46, %62, %cst_41 {dimension_numbers = #tpu.dot_dimension_numbers<[2], [1], [1], [2], [0, 0, 0, 1, 1, 2], [0], [0]>} : vector<4x8x128xf32>, vector<4x128x16xf32>, vector<4x8x16xf32> -> vector<4x8x16xf32>
    "tpu.trace_stop"() : () -> ()
    %c0_42 = arith.constant 0 : index
    %c0_43 = arith.constant 0 : index
    %c0_44 = arith.constant 0 : index
    %c0_45 = arith.constant 0 : index
    %64 = vector.load %arg12[%c0_42, %c0_43, %c0_44, %c0_45] : memref<2x4x1x16xf32, #tpu.memory_space<vmem>>, vector<1x4x1x16xf32>
    %65 = vector.shape_cast %64 : vector<1x4x1x16xf32> to vector<4x1x16xf32>
    %66 = vector.broadcast %65 : vector<4x1x16xf32> to vector<4x8x16xf32>
    %67 = arith.addf %63, %66 : vector<4x8x16xf32>
    "tpu.trace_start"() <{level = 10 : i32, message = "gqk,gpk->gqp"}> : () -> ()
    %cst_46 = arith.constant dense<0.000000e+00> : vector<4x8x8xf32>
    %68 = tpu.matmul %53, %60, %cst_46 {dimension_numbers = #tpu.dot_dimension_numbers<[2], [2], [1], [1], [0, 0, 0, 1, 1, 1], [0], [0]>} : vector<4x8x16xf32>, vector<4x8x16xf32>, vector<4x8x8xf32> -> vector<4x8x8xf32>
    "tpu.trace_stop"() : () -> ()
    %cst_47 = arith.constant 2.500000e-01 : f32
    %69 = vector.broadcast %cst_47 : f32 to vector<4x8x8xf32>
    %70 = arith.mulf %68, %69 : vector<4x8x8xf32>
    %71 = vector.broadcast %44 : vector<4x1x8xf32> to vector<4x8x8xf32>
    %72 = arith.addf %70, %71 : vector<4x8x8xf32>
    %cst_48 = arith.constant dense<0xFF800000> : vector<4x8xf32>
    %73 = vector.multi_reduction <maximumf>, %72, %cst_48 [2] : vector<4x8x8xf32> to vector<4x8xf32>
    %74 = vector.shape_cast %73 : vector<4x8xf32> to vector<4x8x1xf32>
    %75 = vector.broadcast %74 : vector<4x8x1xf32> to vector<4x8x8xf32>
    %76 = arith.subf %72, %75 : vector<4x8x8xf32>
    %77 = math.exp %76 : vector<4x8x8xf32>
    %cst_49 = arith.constant dense<0.000000e+00> : vector<4x8xf32>
    %78 = vector.multi_reduction <add>, %77, %cst_49 [2] : vector<4x8x8xf32> to vector<4x8xf32>
    %79 = vector.shape_cast %78 : vector<4x8xf32> to vector<4x8x1xf32>
    %80 = tpu.reciprocal %79 {approx = true} : vector<4x8x1xf32> -> vector<4x8x1xf32>
    %81 = vector.broadcast %80 : vector<4x8x1xf32> to vector<4x8x8xf32>
    %82 = arith.mulf %77, %81 : vector<4x8x8xf32>
    "tpu.trace_start"() <{level = 10 : i32, message = "gqp,gpk->gqk"}> : () -> ()
    %cst_50 = arith.constant dense<0.000000e+00> : vector<4x8x16xf32>
    %83 = tpu.matmul %82, %67, %cst_50 {dimension_numbers = #tpu.dot_dimension_numbers<[2], [1], [1], [2], [0, 0, 0, 1, 1, 2], [0], [0]>} : vector<4x8x8xf32>, vector<4x8x16xf32>, vector<4x8x16xf32> -> vector<4x8x16xf32>
    "tpu.trace_stop"() : () -> ()
    %c0_51 = arith.constant 0 : index
    %c0_52 = arith.constant 0 : index
    %c0_53 = arith.constant 0 : index
    %c0_54 = arith.constant 0 : index
    %84 = vector.load %arg13[%c0_51, %c0_52, %c0_53, %c0_54] : memref<2x4x16x128xf32, #tpu.memory_space<vmem>>, vector<1x4x16x128xf32>
    %85 = vector.shape_cast %84 : vector<1x4x16x128xf32> to vector<4x16x128xf32>
    "tpu.trace_start"() <{level = 10 : i32, message = "gsk,gkd->gsd"}> : () -> ()
    %cst_55 = arith.constant dense<0.000000e+00> : vector<4x8x128xf32>
    %86 = tpu.matmul %83, %85, %cst_55 {dimension_numbers = #tpu.dot_dimension_numbers<[2], [1], [1], [2], [0, 0, 0, 1, 1, 2], [0], [0]>} : vector<4x8x16xf32>, vector<4x16x128xf32>, vector<4x8x128xf32> -> vector<4x8x128xf32>
    "tpu.trace_stop"() : () -> ()
    %87 = vector.extract_strided_slice %86 {offsets = [0, 0, 0], sizes = [2, 8, 128], strides = [1, 1, 1]} : vector<4x8x128xf32> to vector<2x8x128xf32>
    %88 = vector.extract_strided_slice %86 {offsets = [2, 0, 0], sizes = [2, 8, 128], strides = [1, 1, 1]} : vector<4x8x128xf32> to vector<2x8x128xf32>
    %89 = arith.addf %87, %88 : vector<2x8x128xf32>
    %90 = vector.shape_cast %89 : vector<2x8x128xf32> to vector<16x128xf32>
    %c0_56 = arith.constant 0 : index
    %c0_57 = arith.constant 0 : index
    %c0_58 = arith.constant 0 : index
    %91 = vector.load %arg14[%c0_56, %c0_57, %c0_58] : memref<2x1x128xf32, #tpu.memory_space<vmem>>, vector<1x1x128xf32>
    %92 = vector.shape_cast %91 : vector<1x1x128xf32> to vector<1x128xf32>
    %93 = vector.broadcast %92 : vector<1x128xf32> to vector<16x128xf32>
    %94 = arith.addf %90, %93 : vector<16x128xf32>
    %95 = arith.addf %38, %94 : vector<16x128xf32>
    %c0_59 = arith.constant 0 : index
    %c0_60 = arith.constant 0 : index
    %c0_61 = arith.constant 0 : index
    %96 = vector.load %arg15[%c0_59, %c0_60, %c0_61] : memref<2x1x128xf32, #tpu.memory_space<vmem>>, vector<1x1x128xf32>
    %97 = vector.shape_cast %96 : vector<1x1x128xf32> to vector<1x128xf32>
    %c0_62 = arith.constant 0 : index
    %c0_63 = arith.constant 0 : index
    %c0_64 = arith.constant 0 : index
    %98 = vector.load %arg16[%c0_62, %c0_63, %c0_64] : memref<2x1x128xf32, #tpu.memory_space<vmem>>, vector<1x1x128xf32>
    %99 = vector.shape_cast %98 : vector<1x1x128xf32> to vector<1x128xf32>
    %cst_65 = arith.constant dense<0.000000e+00> : vector<16xf32>
    %100 = vector.multi_reduction <add>, %95, %cst_65 [1] : vector<16x128xf32> to vector<16xf32>
    %101 = vector.shape_cast %100 : vector<16xf32> to vector<16x1xf32>
    %cst_66 = arith.constant 3.125000e-02 : f32
    %102 = vector.broadcast %cst_66 : f32 to vector<16x1xf32>
    %103 = arith.mulf %101, %102 : vector<16x1xf32>
    %104 = vector.broadcast %103 : vector<16x1xf32> to vector<16x128xf32>
    %105 = arith.subf %95, %104 : vector<16x128xf32>
    %106 = vector.broadcast %4 : vector<1x128xf32> to vector<16x128xf32>
    %107 = arith.mulf %105, %106 : vector<16x128xf32>
    %108 = arith.mulf %107, %107 : vector<16x128xf32>
    %cst_67 = arith.constant dense<0.000000e+00> : vector<16xf32>
    %109 = vector.multi_reduction <add>, %108, %cst_67 [1] : vector<16x128xf32> to vector<16xf32>
    %110 = vector.shape_cast %109 : vector<16xf32> to vector<16x1xf32>
    %cst_68 = arith.constant 3.125000e-02 : f32
    %111 = vector.broadcast %cst_68 : f32 to vector<16x1xf32>
    %112 = arith.mulf %110, %111 : vector<16x1xf32>
    %cst_69 = arith.constant 9.99999996E-13 : f32
    %113 = vector.broadcast %cst_69 : f32 to vector<16x1xf32>
    %114 = arith.addf %112, %113 : vector<16x1xf32>
    %115 = math.rsqrt %114 : vector<16x1xf32>
    %116 = vector.broadcast %115 : vector<16x1xf32> to vector<16x128xf32>
    %117 = arith.mulf %107, %116 : vector<16x128xf32>
    %118 = vector.broadcast %97 : vector<1x128xf32> to vector<16x128xf32>
    %119 = arith.mulf %117, %118 : vector<16x128xf32>
    %120 = vector.broadcast %99 : vector<1x128xf32> to vector<16x128xf32>
    %121 = arith.addf %119, %120 : vector<16x128xf32>
    %c0_70 = arith.constant 0 : index
    %c0_71 = arith.constant 0 : index
    %c0_72 = arith.constant 0 : index
    %122 = vector.load %arg17[%c0_70, %c0_71, %c0_72] : memref<2x128x128xf32, #tpu.memory_space<vmem>>, vector<1x128x128xf32>
    %123 = vector.shape_cast %122 : vector<1x128x128xf32> to vector<128x128xf32>
    %cst_73 = arith.constant dense<0.000000e+00> : vector<16x128xf32>
    %124 = tpu.matmul %121, %123, %cst_73 {dimension_numbers = #tpu.dot_dimension_numbers<[1], [0], [0], [1], [0, 0, 1, 1], [], []>} : vector<16x128xf32>, vector<128x128xf32>, vector<16x128xf32> -> vector<16x128xf32>
    %c0_74 = arith.constant 0 : index
    %c0_75 = arith.constant 0 : index
    %c0_76 = arith.constant 0 : index
    %125 = vector.load %arg18[%c0_74, %c0_75, %c0_76] : memref<2x1x128xf32, #tpu.memory_space<vmem>>, vector<1x1x128xf32>
    %126 = vector.shape_cast %125 : vector<1x1x128xf32> to vector<1x128xf32>
    %127 = vector.broadcast %126 : vector<1x128xf32> to vector<16x128xf32>
    %128 = arith.addf %124, %127 : vector<16x128xf32>
    %129 = arith.mulf %128, %128 : vector<16x128xf32>
    %130 = arith.mulf %128, %129 : vector<16x128xf32>
    %cst_77 = arith.constant 4.471500e-02 : f32
    %131 = vector.broadcast %cst_77 : f32 to vector<16x128xf32>
    %132 = arith.mulf %131, %130 : vector<16x128xf32>
    %133 = arith.addf %128, %132 : vector<16x128xf32>
    %cst_78 = arith.constant 0.797884583 : f32
    %134 = vector.broadcast %cst_78 : f32 to vector<16x128xf32>
    %135 = arith.mulf %134, %133 : vector<16x128xf32>
    %136 = math.tanh %135 : vector<16x128xf32>
    %cst_79 = arith.constant 1.000000e+00 : f32
    %137 = vector.broadcast %cst_79 : f32 to vector<16x128xf32>
    %138 = arith.addf %137, %136 : vector<16x128xf32>
    %cst_80 = arith.constant 5.000000e-01 : f32
    %139 = vector.broadcast %cst_80 : f32 to vector<16x128xf32>
    %140 = arith.mulf %139, %138 : vector<16x128xf32>
    %141 = arith.mulf %128, %140 : vector<16x128xf32>
    %c0_81 = arith.constant 0 : index
    %c0_82 = arith.constant 0 : index
    %c0_83 = arith.constant 0 : index
    %142 = vector.load %arg19[%c0_81, %c0_82, %c0_83] : memref<2x128x128xf32, #tpu.memory_space<vmem>>, vector<1x128x128xf32>
    %143 = vector.shape_cast %142 : vector<1x128x128xf32> to vector<128x128xf32>
    %cst_84 = arith.constant dense<0.000000e+00> : vector<16x128xf32>
    %144 = tpu.matmul %141, %143, %cst_84 {dimension_numbers = #tpu.dot_dimension_numbers<[1], [0], [0], [1], [0, 0, 1, 1], [], []>} : vector<16x128xf32>, vector<128x128xf32>, vector<16x128xf32> -> vector<16x128xf32>
    %c0_85 = arith.constant 0 : index
    %c0_86 = arith.constant 0 : index
    %c0_87 = arith.constant 0 : index
    %145 = vector.load %arg20[%c0_85, %c0_86, %c0_87] : memref<2x1x128xf32, #tpu.memory_space<vmem>>, vector<1x1x128xf32>
    %146 = vector.shape_cast %145 : vector<1x1x128xf32> to vector<1x128xf32>
    %147 = vector.broadcast %146 : vector<1x128xf32> to vector<16x128xf32>
    %148 = arith.addf %144, %147 : vector<16x128xf32>
    %149 = arith.addf %121, %148 : vector<16x128xf32>
    %c0_88 = arith.constant 0 : index
    %c0_89 = arith.constant 0 : index
    %c0_90 = arith.constant 0 : index
    %150 = vector.load %arg21[%c0_88, %c0_89, %c0_90] : memref<2x1x128xf32, #tpu.memory_space<vmem>>, vector<1x1x128xf32>
    %151 = vector.shape_cast %150 : vector<1x1x128xf32> to vector<1x128xf32>
    %c0_91 = arith.constant 0 : index
    %c0_92 = arith.constant 0 : index
    %c0_93 = arith.constant 0 : index
    %152 = vector.load %arg22[%c0_91, %c0_92, %c0_93] : memref<2x1x128xf32, #tpu.memory_space<vmem>>, vector<1x1x128xf32>
    %153 = vector.shape_cast %152 : vector<1x1x128xf32> to vector<1x128xf32>
    %cst_94 = arith.constant dense<0.000000e+00> : vector<16xf32>
    %154 = vector.multi_reduction <add>, %149, %cst_94 [1] : vector<16x128xf32> to vector<16xf32>
    %155 = vector.shape_cast %154 : vector<16xf32> to vector<16x1xf32>
    %cst_95 = arith.constant 3.125000e-02 : f32
    %156 = vector.broadcast %cst_95 : f32 to vector<16x1xf32>
    %157 = arith.mulf %155, %156 : vector<16x1xf32>
    %158 = vector.broadcast %157 : vector<16x1xf32> to vector<16x128xf32>
    %159 = arith.subf %149, %158 : vector<16x128xf32>
    %160 = vector.broadcast %4 : vector<1x128xf32> to vector<16x128xf32>
    %161 = arith.mulf %159, %160 : vector<16x128xf32>
    %162 = arith.mulf %161, %161 : vector<16x128xf32>
    %cst_96 = arith.constant dense<0.000000e+00> : vector<16xf32>
    %163 = vector.multi_reduction <add>, %162, %cst_96 [1] : vector<16x128xf32> to vector<16xf32>
    %164 = vector.shape_cast %163 : vector<16xf32> to vector<16x1xf32>
    %cst_97 = arith.constant 3.125000e-02 : f32
    %165 = vector.broadcast %cst_97 : f32 to vector<16x1xf32>
    %166 = arith.mulf %164, %165 : vector<16x1xf32>
    %cst_98 = arith.constant 9.99999996E-13 : f32
    %167 = vector.broadcast %cst_98 : f32 to vector<16x1xf32>
    %168 = arith.addf %166, %167 : vector<16x1xf32>
    %169 = math.rsqrt %168 : vector<16x1xf32>
    %170 = vector.broadcast %169 : vector<16x1xf32> to vector<16x128xf32>
    %171 = arith.mulf %161, %170 : vector<16x128xf32>
    %172 = vector.broadcast %151 : vector<1x128xf32> to vector<16x128xf32>
    %173 = arith.mulf %171, %172 : vector<16x128xf32>
    %174 = vector.broadcast %153 : vector<1x128xf32> to vector<16x128xf32>
    %175 = arith.addf %173, %174 : vector<16x128xf32>
    %176 = vector.shape_cast %175 : vector<16x128xf32> to vector<2x8x128xf32>
    %177 = tpu.concatenate %176, %176 in 0 : vector<2x8x128xf32>, vector<2x8x128xf32> -> vector<4x8x128xf32>
    %c1 = arith.constant 1 : index
    %c0_99 = arith.constant 0 : index
    %c0_100 = arith.constant 0 : index
    %c0_101 = arith.constant 0 : index
    %178 = vector.load %arg7[%c1, %c0_99, %c0_100, %c0_101] : memref<2x4x128x16xf32, #tpu.memory_space<vmem>>, vector<1x4x128x16xf32>
    %179 = vector.shape_cast %178 : vector<1x4x128x16xf32> to vector<4x128x16xf32>
    "tpu.trace_start"() <{level = 10 : i32, message = "gsd,gdk->gsk"}> : () -> ()
    %cst_102 = arith.constant dense<0.000000e+00> : vector<4x8x16xf32>
    %180 = tpu.matmul %177, %179, %cst_102 {dimension_numbers = #tpu.dot_dimension_numbers<[2], [1], [1], [2], [0, 0, 0, 1, 1, 2], [0], [0]>} : vector<4x8x128xf32>, vector<4x128x16xf32>, vector<4x8x16xf32> -> vector<4x8x16xf32>
    "tpu.trace_stop"() : () -> ()
    %c1_103 = arith.constant 1 : index
    %c0_104 = arith.constant 0 : index
    %c0_105 = arith.constant 0 : index
    %c0_106 = arith.constant 0 : index
    %181 = vector.load %arg10[%c1_103, %c0_104, %c0_105, %c0_106] : memref<2x4x1x16xf32, #tpu.memory_space<vmem>>, vector<1x4x1x16xf32>
    %182 = vector.shape_cast %181 : vector<1x4x1x16xf32> to vector<4x1x16xf32>
    %183 = vector.broadcast %182 : vector<4x1x16xf32> to vector<4x8x16xf32>
    %184 = arith.addf %180, %183 : vector<4x8x16xf32>
    %c1_107 = arith.constant 1 : index
    %c0_108 = arith.constant 0 : index
    %c0_109 = arith.constant 0 : index
    %c0_110 = arith.constant 0 : index
    %185 = vector.load %arg8[%c1_107, %c0_108, %c0_109, %c0_110] : memref<2x4x128x16xf32, #tpu.memory_space<vmem>>, vector<1x4x128x16xf32>
    %186 = vector.shape_cast %185 : vector<1x4x128x16xf32> to vector<4x128x16xf32>
    "tpu.trace_start"() <{level = 10 : i32, message = "gsd,gdk->gsk"}> : () -> ()
    %cst_111 = arith.constant dense<0.000000e+00> : vector<4x8x16xf32>
    %187 = tpu.matmul %177, %186, %cst_111 {dimension_numbers = #tpu.dot_dimension_numbers<[2], [1], [1], [2], [0, 0, 0, 1, 1, 2], [0], [0]>} : vector<4x8x128xf32>, vector<4x128x16xf32>, vector<4x8x16xf32> -> vector<4x8x16xf32>
    "tpu.trace_stop"() : () -> ()
    %c1_112 = arith.constant 1 : index
    %c0_113 = arith.constant 0 : index
    %c0_114 = arith.constant 0 : index
    %c0_115 = arith.constant 0 : index
    %188 = vector.load %arg11[%c1_112, %c0_113, %c0_114, %c0_115] : memref<2x4x1x16xf32, #tpu.memory_space<vmem>>, vector<1x4x1x16xf32>
    %189 = vector.shape_cast %188 : vector<1x4x1x16xf32> to vector<4x1x16xf32>
    %190 = vector.broadcast %189 : vector<4x1x16xf32> to vector<4x8x16xf32>
    %191 = arith.addf %187, %190 : vector<4x8x16xf32>
    %c1_116 = arith.constant 1 : index
    %c0_117 = arith.constant 0 : index
    %c0_118 = arith.constant 0 : index
    %c0_119 = arith.constant 0 : index
    %192 = vector.load %arg9[%c1_116, %c0_117, %c0_118, %c0_119] : memref<2x4x128x16xf32, #tpu.memory_space<vmem>>, vector<1x4x128x16xf32>
    %193 = vector.shape_cast %192 : vector<1x4x128x16xf32> to vector<4x128x16xf32>
    "tpu.trace_start"() <{level = 10 : i32, message = "gsd,gdk->gsk"}> : () -> ()
    %cst_120 = arith.constant dense<0.000000e+00> : vector<4x8x16xf32>
    %194 = tpu.matmul %177, %193, %cst_120 {dimension_numbers = #tpu.dot_dimension_numbers<[2], [1], [1], [2], [0, 0, 0, 1, 1, 2], [0], [0]>} : vector<4x8x128xf32>, vector<4x128x16xf32>, vector<4x8x16xf32> -> vector<4x8x16xf32>
    "tpu.trace_stop"() : () -> ()
    %c1_121 = arith.constant 1 : index
    %c0_122 = arith.constant 0 : index
    %c0_123 = arith.constant 0 : index
    %c0_124 = arith.constant 0 : index
    %195 = vector.load %arg12[%c1_121, %c0_122, %c0_123, %c0_124] : memref<2x4x1x16xf32, #tpu.memory_space<vmem>>, vector<1x4x1x16xf32>
    %196 = vector.shape_cast %195 : vector<1x4x1x16xf32> to vector<4x1x16xf32>
    %197 = vector.broadcast %196 : vector<4x1x16xf32> to vector<4x8x16xf32>
    %198 = arith.addf %194, %197 : vector<4x8x16xf32>
    "tpu.trace_start"() <{level = 10 : i32, message = "gqk,gpk->gqp"}> : () -> ()
    %cst_125 = arith.constant dense<0.000000e+00> : vector<4x8x8xf32>
    %199 = tpu.matmul %184, %191, %cst_125 {dimension_numbers = #tpu.dot_dimension_numbers<[2], [2], [1], [1], [0, 0, 0, 1, 1, 1], [0], [0]>} : vector<4x8x16xf32>, vector<4x8x16xf32>, vector<4x8x8xf32> -> vector<4x8x8xf32>
    "tpu.trace_stop"() : () -> ()
    %cst_126 = arith.constant 2.500000e-01 : f32
    %200 = vector.broadcast %cst_126 : f32 to vector<4x8x8xf32>
    %201 = arith.mulf %199, %200 : vector<4x8x8xf32>
    %202 = vector.broadcast %44 : vector<4x1x8xf32> to vector<4x8x8xf32>
    %203 = arith.addf %201, %202 : vector<4x8x8xf32>
    %cst_127 = arith.constant dense<0xFF800000> : vector<4x8xf32>
    %204 = vector.multi_reduction <maximumf>, %203, %cst_127 [2] : vector<4x8x8xf32> to vector<4x8xf32>
    %205 = vector.shape_cast %204 : vector<4x8xf32> to vector<4x8x1xf32>
    %206 = vector.broadcast %205 : vector<4x8x1xf32> to vector<4x8x8xf32>
    %207 = arith.subf %203, %206 : vector<4x8x8xf32>
    %208 = math.exp %207 : vector<4x8x8xf32>
    %cst_128 = arith.constant dense<0.000000e+00> : vector<4x8xf32>
    %209 = vector.multi_reduction <add>, %208, %cst_128 [2] : vector<4x8x8xf32> to vector<4x8xf32>
    %210 = vector.shape_cast %209 : vector<4x8xf32> to vector<4x8x1xf32>
    %211 = tpu.reciprocal %210 {approx = true} : vector<4x8x1xf32> -> vector<4x8x1xf32>
    %212 = vector.broadcast %211 : vector<4x8x1xf32> to vector<4x8x8xf32>
    %213 = arith.mulf %208, %212 : vector<4x8x8xf32>
    "tpu.trace_start"() <{level = 10 : i32, message = "gqp,gpk->gqk"}> : () -> ()
    %cst_129 = arith.constant dense<0.000000e+00> : vector<4x8x16xf32>
    %214 = tpu.matmul %213, %198, %cst_129 {dimension_numbers = #tpu.dot_dimension_numbers<[2], [1], [1], [2], [0, 0, 0, 1, 1, 2], [0], [0]>} : vector<4x8x8xf32>, vector<4x8x16xf32>, vector<4x8x16xf32> -> vector<4x8x16xf32>
    "tpu.trace_stop"() : () -> ()
    %c1_130 = arith.constant 1 : index
    %c0_131 = arith.constant 0 : index
    %c0_132 = arith.constant 0 : index
    %c0_133 = arith.constant 0 : index
    %215 = vector.load %arg13[%c1_130, %c0_131, %c0_132, %c0_133] : memref<2x4x16x128xf32, #tpu.memory_space<vmem>>, vector<1x4x16x128xf32>
    %216 = vector.shape_cast %215 : vector<1x4x16x128xf32> to vector<4x16x128xf32>
    "tpu.trace_start"() <{level = 10 : i32, message = "gsk,gkd->gsd"}> : () -> ()
    %cst_134 = arith.constant dense<0.000000e+00> : vector<4x8x128xf32>
    %217 = tpu.matmul %214, %216, %cst_134 {dimension_numbers = #tpu.dot_dimension_numbers<[2], [1], [1], [2], [0, 0, 0, 1, 1, 2], [0], [0]>} : vector<4x8x16xf32>, vector<4x16x128xf32>, vector<4x8x128xf32> -> vector<4x8x128xf32>
    "tpu.trace_stop"() : () -> ()
    %218 = vector.extract_strided_slice %217 {offsets = [0, 0, 0], sizes = [2, 8, 128], strides = [1, 1, 1]} : vector<4x8x128xf32> to vector<2x8x128xf32>
    %219 = vector.extract_strided_slice %217 {offsets = [2, 0, 0], sizes = [2, 8, 128], strides = [1, 1, 1]} : vector<4x8x128xf32> to vector<2x8x128xf32>
    %220 = arith.addf %218, %219 : vector<2x8x128xf32>
    %221 = vector.shape_cast %220 : vector<2x8x128xf32> to vector<16x128xf32>
    %c1_135 = arith.constant 1 : index
    %c0_136 = arith.constant 0 : index
    %c0_137 = arith.constant 0 : index
    %222 = vector.load %arg14[%c1_135, %c0_136, %c0_137] : memref<2x1x128xf32, #tpu.memory_space<vmem>>, vector<1x1x128xf32>
    %223 = vector.shape_cast %222 : vector<1x1x128xf32> to vector<1x128xf32>
    %224 = vector.broadcast %223 : vector<1x128xf32> to vector<16x128xf32>
    %225 = arith.addf %221, %224 : vector<16x128xf32>
    %226 = arith.addf %175, %225 : vector<16x128xf32>
    %c1_138 = arith.constant 1 : index
    %c0_139 = arith.constant 0 : index
    %c0_140 = arith.constant 0 : index
    %227 = vector.load %arg15[%c1_138, %c0_139, %c0_140] : memref<2x1x128xf32, #tpu.memory_space<vmem>>, vector<1x1x128xf32>
    %228 = vector.shape_cast %227 : vector<1x1x128xf32> to vector<1x128xf32>
    %c1_141 = arith.constant 1 : index
    %c0_142 = arith.constant 0 : index
    %c0_143 = arith.constant 0 : index
    %229 = vector.load %arg16[%c1_141, %c0_142, %c0_143] : memref<2x1x128xf32, #tpu.memory_space<vmem>>, vector<1x1x128xf32>
    %230 = vector.shape_cast %229 : vector<1x1x128xf32> to vector<1x128xf32>
    %cst_144 = arith.constant dense<0.000000e+00> : vector<16xf32>
    %231 = vector.multi_reduction <add>, %226, %cst_144 [1] : vector<16x128xf32> to vector<16xf32>
    %232 = vector.shape_cast %231 : vector<16xf32> to vector<16x1xf32>
    %cst_145 = arith.constant 3.125000e-02 : f32
    %233 = vector.broadcast %cst_145 : f32 to vector<16x1xf32>
    %234 = arith.mulf %232, %233 : vector<16x1xf32>
    %235 = vector.broadcast %234 : vector<16x1xf32> to vector<16x128xf32>
    %236 = arith.subf %226, %235 : vector<16x128xf32>
    %237 = vector.broadcast %4 : vector<1x128xf32> to vector<16x128xf32>
    %238 = arith.mulf %236, %237 : vector<16x128xf32>
    %239 = arith.mulf %238, %238 : vector<16x128xf32>
    %cst_146 = arith.constant dense<0.000000e+00> : vector<16xf32>
    %240 = vector.multi_reduction <add>, %239, %cst_146 [1] : vector<16x128xf32> to vector<16xf32>
    %241 = vector.shape_cast %240 : vector<16xf32> to vector<16x1xf32>
    %cst_147 = arith.constant 3.125000e-02 : f32
    %242 = vector.broadcast %cst_147 : f32 to vector<16x1xf32>
    %243 = arith.mulf %241, %242 : vector<16x1xf32>
    %cst_148 = arith.constant 9.99999996E-13 : f32
    %244 = vector.broadcast %cst_148 : f32 to vector<16x1xf32>
    %245 = arith.addf %243, %244 : vector<16x1xf32>
    %246 = math.rsqrt %245 : vector<16x1xf32>
    %247 = vector.broadcast %246 : vector<16x1xf32> to vector<16x128xf32>
    %248 = arith.mulf %238, %247 : vector<16x128xf32>
    %249 = vector.broadcast %228 : vector<1x128xf32> to vector<16x128xf32>
    %250 = arith.mulf %248, %249 : vector<16x128xf32>
    %251 = vector.broadcast %230 : vector<1x128xf32> to vector<16x128xf32>
    %252 = arith.addf %250, %251 : vector<16x128xf32>
    %c1_149 = arith.constant 1 : index
    %c0_150 = arith.constant 0 : index
    %c0_151 = arith.constant 0 : index
    %253 = vector.load %arg17[%c1_149, %c0_150, %c0_151] : memref<2x128x128xf32, #tpu.memory_space<vmem>>, vector<1x128x128xf32>
    %254 = vector.shape_cast %253 : vector<1x128x128xf32> to vector<128x128xf32>
    %cst_152 = arith.constant dense<0.000000e+00> : vector<16x128xf32>
    %255 = tpu.matmul %252, %254, %cst_152 {dimension_numbers = #tpu.dot_dimension_numbers<[1], [0], [0], [1], [0, 0, 1, 1], [], []>} : vector<16x128xf32>, vector<128x128xf32>, vector<16x128xf32> -> vector<16x128xf32>
    %c1_153 = arith.constant 1 : index
    %c0_154 = arith.constant 0 : index
    %c0_155 = arith.constant 0 : index
    %256 = vector.load %arg18[%c1_153, %c0_154, %c0_155] : memref<2x1x128xf32, #tpu.memory_space<vmem>>, vector<1x1x128xf32>
    %257 = vector.shape_cast %256 : vector<1x1x128xf32> to vector<1x128xf32>
    %258 = vector.broadcast %257 : vector<1x128xf32> to vector<16x128xf32>
    %259 = arith.addf %255, %258 : vector<16x128xf32>
    %260 = arith.mulf %259, %259 : vector<16x128xf32>
    %261 = arith.mulf %259, %260 : vector<16x128xf32>
    %cst_156 = arith.constant 4.471500e-02 : f32
    %262 = vector.broadcast %cst_156 : f32 to vector<16x128xf32>
    %263 = arith.mulf %262, %261 : vector<16x128xf32>
    %264 = arith.addf %259, %263 : vector<16x128xf32>
    %cst_157 = arith.constant 0.797884583 : f32
    %265 = vector.broadcast %cst_157 : f32 to vector<16x128xf32>
    %266 = arith.mulf %265, %264 : vector<16x128xf32>
    %267 = math.tanh %266 : vector<16x128xf32>
    %cst_158 = arith.constant 1.000000e+00 : f32
    %268 = vector.broadcast %cst_158 : f32 to vector<16x128xf32>
    %269 = arith.addf %268, %267 : vector<16x128xf32>
    %cst_159 = arith.constant 5.000000e-01 : f32
    %270 = vector.broadcast %cst_159 : f32 to vector<16x128xf32>
    %271 = arith.mulf %270, %269 : vector<16x128xf32>
    %272 = arith.mulf %259, %271 : vector<16x128xf32>
    %c1_160 = arith.constant 1 : index
    %c0_161 = arith.constant 0 : index
    %c0_162 = arith.constant 0 : index
    %273 = vector.load %arg19[%c1_160, %c0_161, %c0_162] : memref<2x128x128xf32, #tpu.memory_space<vmem>>, vector<1x128x128xf32>
    %274 = vector.shape_cast %273 : vector<1x128x128xf32> to vector<128x128xf32>
    %cst_163 = arith.constant dense<0.000000e+00> : vector<16x128xf32>
    %275 = tpu.matmul %272, %274, %cst_163 {dimension_numbers = #tpu.dot_dimension_numbers<[1], [0], [0], [1], [0, 0, 1, 1], [], []>} : vector<16x128xf32>, vector<128x128xf32>, vector<16x128xf32> -> vector<16x128xf32>
    %c1_164 = arith.constant 1 : index
    %c0_165 = arith.constant 0 : index
    %c0_166 = arith.constant 0 : index
    %276 = vector.load %arg20[%c1_164, %c0_165, %c0_166] : memref<2x1x128xf32, #tpu.memory_space<vmem>>, vector<1x1x128xf32>
    %277 = vector.shape_cast %276 : vector<1x1x128xf32> to vector<1x128xf32>
    %278 = vector.broadcast %277 : vector<1x128xf32> to vector<16x128xf32>
    %279 = arith.addf %275, %278 : vector<16x128xf32>
    %280 = arith.addf %252, %279 : vector<16x128xf32>
    %c1_167 = arith.constant 1 : index
    %c0_168 = arith.constant 0 : index
    %c0_169 = arith.constant 0 : index
    %281 = vector.load %arg21[%c1_167, %c0_168, %c0_169] : memref<2x1x128xf32, #tpu.memory_space<vmem>>, vector<1x1x128xf32>
    %282 = vector.shape_cast %281 : vector<1x1x128xf32> to vector<1x128xf32>
    %c1_170 = arith.constant 1 : index
    %c0_171 = arith.constant 0 : index
    %c0_172 = arith.constant 0 : index
    %283 = vector.load %arg22[%c1_170, %c0_171, %c0_172] : memref<2x1x128xf32, #tpu.memory_space<vmem>>, vector<1x1x128xf32>
    %284 = vector.shape_cast %283 : vector<1x1x128xf32> to vector<1x128xf32>
    %cst_173 = arith.constant dense<0.000000e+00> : vector<16xf32>
    %285 = vector.multi_reduction <add>, %280, %cst_173 [1] : vector<16x128xf32> to vector<16xf32>
    %286 = vector.shape_cast %285 : vector<16xf32> to vector<16x1xf32>
    %cst_174 = arith.constant 3.125000e-02 : f32
    %287 = vector.broadcast %cst_174 : f32 to vector<16x1xf32>
    %288 = arith.mulf %286, %287 : vector<16x1xf32>
    %289 = vector.broadcast %288 : vector<16x1xf32> to vector<16x128xf32>
    %290 = arith.subf %280, %289 : vector<16x128xf32>
    %291 = vector.broadcast %4 : vector<1x128xf32> to vector<16x128xf32>
    %292 = arith.mulf %290, %291 : vector<16x128xf32>
    %293 = arith.mulf %292, %292 : vector<16x128xf32>
    %cst_175 = arith.constant dense<0.000000e+00> : vector<16xf32>
    %294 = vector.multi_reduction <add>, %293, %cst_175 [1] : vector<16x128xf32> to vector<16xf32>
    %295 = vector.shape_cast %294 : vector<16xf32> to vector<16x1xf32>
    %cst_176 = arith.constant 3.125000e-02 : f32
    %296 = vector.broadcast %cst_176 : f32 to vector<16x1xf32>
    %297 = arith.mulf %295, %296 : vector<16x1xf32>
    %cst_177 = arith.constant 9.99999996E-13 : f32
    %298 = vector.broadcast %cst_177 : f32 to vector<16x1xf32>
    %299 = arith.addf %297, %298 : vector<16x1xf32>
    %300 = math.rsqrt %299 : vector<16x1xf32>
    %301 = vector.broadcast %300 : vector<16x1xf32> to vector<16x128xf32>
    %302 = arith.mulf %292, %301 : vector<16x128xf32>
    %303 = vector.broadcast %282 : vector<1x128xf32> to vector<16x128xf32>
    %304 = arith.mulf %302, %303 : vector<16x128xf32>
    %305 = vector.broadcast %284 : vector<1x128xf32> to vector<16x128xf32>
    %306 = arith.addf %304, %305 : vector<16x128xf32>
    %c101_i32 = arith.constant 101 : i32
    %307 = vector.broadcast %c101_i32 : i32 to vector<16x1xi32>
    %308 = arith.cmpi ne, %5, %307 : vector<16x1xi32>
    %c102_i32 = arith.constant 102 : i32
    %309 = vector.broadcast %c102_i32 : i32 to vector<16x1xi32>
    %310 = arith.cmpi ne, %5, %309 : vector<16x1xi32>
    %311 = arith.andi %308, %310 : vector<16x1xi1>
    %c103_i32 = arith.constant 103 : i32
    %312 = vector.broadcast %c103_i32 : i32 to vector<16x1xi32>
    %313 = arith.cmpi ne, %5, %312 : vector<16x1xi32>
    %314 = arith.andi %311, %313 : vector<16x1xi1>
    %315 = arith.extui %314 : vector<16x1xi1> to vector<16x1xi32>
    %316 = arith.sitofp %315 : vector<16x1xi32> to vector<16x1xf32>
    %c0_178 = arith.constant 0 : index
    %c0_179 = arith.constant 0 : index
    %317 = vector.load %arg2[%c0_178, %c0_179] : memref<16x1xf32, #tpu.memory_space<vmem>>, vector<16x1xf32>
    %318 = arith.mulf %316, %317 : vector<16x1xf32>
    %319 = vector.broadcast %318 : vector<16x1xf32> to vector<16x128xf32>
    %320 = arith.mulf %306, %319 : vector<16x128xf32>
    %321 = vector.shape_cast %320 : vector<16x128xf32> to vector<2x8x128xf32>
    %cst_180 = arith.constant dense<0.000000e+00> : vector<2x128xf32>
    %322 = vector.multi_reduction <add>, %321, %cst_180 [1] : vector<2x8x128xf32> to vector<2x128xf32>
    %323 = vector.shape_cast %318 : vector<16x1xf32> to vector<2x8x1xf32>
    %cst_181 = arith.constant dense<0.000000e+00> : vector<2x1xf32>
    %324 = vector.multi_reduction <add>, %323, %cst_181 [1] : vector<2x8x1xf32> to vector<2x1xf32>
    %cst_182 = arith.constant 9.99999971E-10 : f32
    %325 = vector.broadcast %cst_182 : f32 to vector<2x1xf32>
    %326 = arith.maximumf %324, %325 : vector<2x1xf32>
    %327 = tpu.reciprocal %326 {approx = true} : vector<2x1xf32> -> vector<2x1xf32>
    %328 = vector.broadcast %327 : vector<2x1xf32> to vector<2x128xf32>
    %329 = arith.mulf %322, %328 : vector<2x128xf32>
    %c0_183 = arith.constant 0 : index
    %c0_184 = arith.constant 0 : index
    %330 = vector.load %arg23[%c0_183, %c0_184] : memref<2x128xf32, #tpu.memory_space<vmem>>, vector<2x128xf32>
    tpu.vector_store %arg23[%c0_183, %c0_184], %329 {strides = array<i32>} : memref<2x128xf32, #tpu.memory_space<vmem>>, vector<2x128xf32>,
    return
  }
}

</mosaic_0001>

<bundles_post_ra>
// kernel: tpu_custom_call.1
= control target key start
LH: loop header
LB: loop body
LE: loop exit
PB: predicated region body
PF: predicated region fallthrough
CT: control target
= control target key end

     0   :  { %s9636_s0 = inlined_call_operand.vmem [shape: s32[16,1], index: 0, kind: input, shape index: {}]   ;;  %s9637_s1 = inlined_call_operand.vmem [shape: f32[2,1,8], index: 1, kind: input, shape index: {}]   ;;  %s9638_s2 = inlined_call_operand.vmem [shape: f32[16,1], index: 2, kind: input, shape index: {}]   ;;  %s9639_s3 = inlined_call_operand.vmem [shape: f32[128,128], index: 3, kind: input, shape index: {}]   ;;  %s9640_s4 = inlined_call_operand.vmem [shape: f32[16,128], index: 4, kind: input, shape index: {}]   ;;  %s9641_s5 = inlined_call_operand.vmem [shape: f32[1,128], index: 5, kind: input, shape index: {}]   ;;  %s9642_s6 = inlined_call_operand.vmem [shape: f32[1,128], index: 6, kind: input, shape index: {}]   ;;  %s9643_s7 = inlined_call_operand.vmem [shape: f32[2,4,128,16], index: 7, kind: input, shape index: {}]   ;;  %s9644_s8 = inlined_call_operand.vmem [shape: f32[2,4,128,16], index: 8, kind: input, shape index: {}]   ;;  %s9645_s9 = inlined_call_operand.vmem [shape: f32[2,4,128,16], index: 9, kind: input, shape index: {}]   ;;  %s9646_s10 = inlined_call_operand.vmem [shape: f32[2,4,1,16], index: 10, kind: input, shape index: {}]   ;;  %s9647_s11 = inlined_call_operand.vmem [shape: f32[2,4,1,16], index: 11, kind: input, shape index: {}]   ;;  %s9648_s12 = inlined_call_operand.vmem [shape: f32[2,4,1,16], index: 12, kind: input, shape index: {}]   ;;  %s9649_s13 = inlined_call_operand.vmem [shape: f32[2,4,16,128], index: 13, kind: input, shape index: {}]   ;;  %s9650_s14 = inlined_call_operand.vmem [shape: f32[2,1,128], index: 14, kind: input, shape index: {}]   ;;  %s9651_s15 = inlined_call_operand.vmem [shape: f32[2,1,128], index: 15, kind: input, shape index: {}]   ;;  %s9652_s16 = inlined_call_operand.vmem [shape: f32[2,1,128], index: 16, kind: input, shape index: {}]   ;;  %s9653_s17 = inlined_call_operand.vmem [shape: f32[2,128,128], index: 17, kind: input, shape index: {}]   ;;  %s9654_s18 = inlined_call_operand.vmem [shape: f32[2,1,128], index: 18, kind: input, shape index: {}]   ;;  %s9655_s19 = inlined_call_operand.vmem [shape: f32[2,128,128], index: 19, kind: input, shape index: {}]   ;;  %s9656_s20 = inlined_call_operand.vmem [shape: f32[2,1,128], index: 20, kind: input, shape index: {}]   ;;  %s9657_s21 = inlined_call_operand.vmem [shape: f32[2,1,128], index: 21, kind: input, shape index: {}]   ;;  %s9658_s22 = inlined_call_operand.vmem [shape: f32[2,1,128], index: 22, kind: input, shape index: {}]   ;;  %s9659_s23 = inlined_call_operand.hbm [shape: f32[2,128], index: 23, kind: output, shape index: {}]  }
   0x1   :  { %9667 = sst [smem:[#allocation5_spill]] %s9636_s0 }
   0x2   :  { %9668 = sst [smem:[#allocation6_spill]] %s9637_s1 }
   0x3   :  { %9669 = sst [smem:[#allocation7_spill]] %s9638_s2 }
   0x4   :  { %9670 = sst [smem:[#allocation8_spill]] %s9639_s3 }
   0x5   :  { %9671 = sst [smem:[#allocation9_spill]] %s9640_s4 }
   0x6   :  { %9672 = sst [smem:[#allocation10_spill]] %s9641_s5 }
   0x7   :  { %9673 = sst [smem:[#allocation11_spill]] %s9642_s6 }
   0x8   :  { %9674 = sst [smem:[#allocation12_spill]] %s9643_s7 }
   0x9   :  { %9675 = sst [smem:[#allocation13_spill]] %s9654_s18 }
   0xa   :  { %s9676_s24 = sld [smem:[#allocation5_spill]]  ;;  %v7242_v2 = vmov 0   ;;  %v7243_v6 = vmov 0.0  }
   0xb   :  { %s9677_s18 = sld [smem:[#allocation8_spill]]  ;;  %7152 = vset.pattern.permute.xlu0 %v7242_v2  ;;  %6031 = vmatprep.subr.mxu1 %v7243_v6 }
   0xc   :  { %7153 = vset.pattern.permute.xlu1 %v7242_v2 }
  0x10   :  { %v80_v0 = vld [vmem:[%s9676_s24] sm:$0xff]  ;;  %v81_v5 = vld [vmem:[%s9676_s24 + $0x8] sm:$0xff] }
  0x11   :  { %v109_v1 = vld [vmem:[%s9677_s18 + $0x78] sm:$0xff]  ;;  %v108_v3 = vld [vmem:[%s9677_s18 + $0x70] sm:$0xff]  ;;  %83 = vperm.xlu0 %7152, %v80_v0   ;;  %v107_v4 = vld [vmem:[%s9677_s18 + $0x68] sm:$0xff] }
  0x12   :  { %5996 = vmatprep.subr.mxu0 %v109_v1  ;;  %v106_v7 = vld [vmem:[%s9677_s18 + $0x60] sm:$0xff]  ;;  %v105_v8 = vld [vmem:[%s9677_s18 + $0x58] sm:$0xff] }
  0x13   :  { %5997 = vmatpush3.msra.mxu0 %v109_v1 }
  0x14   :  { %5998 = vmatprep.subr.mxu0 %v108_v3 }
  0x15   :  { %5999 = vmatpush3.msra.mxu0 %v108_v3  ;;  %86 = vperm.xlu0 %7152, %v81_v5  }
  0x16   :  { %6000 = vmatprep.subr.mxu0 %v107_v4 }
  0x17   :  { %6001 = vmatpush3.msra.mxu0 %v107_v4 }
  0x18   :  { %28 = vsyncpa [#allocation3], 0  ;;  %6002 = vmatprep.subr.mxu0 %v106_v7  ;;  %v104_v9 = vld [vmem:[%s9677_s18 + $0x50] sm:$0xff]  ;;  %v103_v10 = vld [vmem:[%s9677_s18 + $0x48] sm:$0xff]  ;;  %v75_v20 = vlaneseq  ;;  %v7244_v23 = vmov 1.0   ;;  %s9679_s4 = sld [smem:[#allocation12_spill]] }
  0x19   :  { %6003 = vmatpush3.msra.mxu0 %v106_v7  ;;  %v102_v11 = vld [vmem:[%s9677_s18 + $0x40] sm:$0xff]  ;;  %v101_v12 = vld [vmem:[%s9677_s18 + $0x38] sm:$0xff]  ;;  %v100_v13 = vld [vmem:[%s9677_s18 + $0x30] sm:$0xff]  ;;  %vm7245_vm3 = vmmov 0   ;;  %s9680_s7 = sld [smem:[#allocation10_spill]]  ;;  %vm1351_vm4 = vcmask 130048  }
  0x1a   :  { %6004 = vmatprep.subr.mxu0 %v105_v8  ;;  %v99_v14 = vld [vmem:[%s9677_s18 + $0x28] sm:$0xff]  ;;  %v98_v15 = vld [vmem:[%s9677_s18 + $0x20] sm:$0xff]  ;;  %v97_v16 = vld [vmem:[%s9677_s18 + $0x18] sm:$0xff]  ;;  %v76_v21 = vand.u32 127, %v75_v20  ;;  %6063 = vmatprep.mubr.msk.f32.mxu1 %vm7245_vm3, %v7243_v6  ;;  %s9681_s29 = sld [smem:[#allocation11_spill]]  ;;  %vm1676_vm5 = vcmask 64512  }
  0x1b   :  { %6005 = vmatpush3.msra.mxu0 %v105_v8  ;;  %v96_v17 = vld [vmem:[%s9677_s18 + $0x10] sm:$0xff]  ;;  %v95_v18 = vld [vmem:[%s9677_s18 + $0x8] sm:$0xff]  ;;  %v94_v19 = vld [vmem:[%s9677_s18] sm:$0xff]  ;;  %s9678_s18 = sld [smem:[#allocation9_spill]] }
  0x1c   :  { %6006 = vmatprep.subr.mxu0 %v104_v9  ;;  %vm77_vm2 = vcmp.lt.s32.totalorder %v76_v21, 32  ;;  %s9682_s5 = sld [smem:[#allocation6_spill]] }
  0x1d   :  { %6007 = vmatpush3.msra.mxu0 %v104_v9  ;;  %v7455_v39 = vsel %vm77_vm2, 1.0, %v7243_v6  ;;  %s9683_s25 = sld [smem:[#allocation13_spill]] }
  0x1e   :  { %6008 = vmatprep.subr.mxu0 %v103_v10  ;;  %v250_v31 = vld [vmem:[%s9679_s4 + $0x78] sm:$0xff]  ;;  %v249_v32 = vld [vmem:[%s9679_s4 + $0x70] sm:$0xff]  ;;  %v248_v35 = vld [vmem:[%s9679_s4 + $0x68] sm:$0xff] }
  0x1f   :  { %6009 = vmatpush3.msra.mxu0 %v103_v10  ;;  %6032 = vmatpush3.msra.mxu1 %v250_v31  ;;  %v266_v33 = vld [vmem:[%s9679_s4 + $0xf8] sm:$0xff]  ;;  %v265_v34 = vld [vmem:[%s9679_s4 + $0xf0] sm:$0xff]  ;;  %v247_v36 = vld [vmem:[%s9679_s4 + $0x60] sm:$0xff] }
  0x20   :  { %6010 = vmatprep.subr.mxu0 %v102_v11  ;;  %6033 = vmatprep.subr.mxu1 %v7243_v6  ;;  %v246_v48 = vld [vmem:[%s9679_s4 + $0x58] sm:$0xff]  ;;  %v264_v49 = vld [vmem:[%s9679_s4 + $0xe8] sm:$0xff]  ;;  %v245_v50 = vld [vmem:[%s9679_s4 + $0x50] sm:$0xff] }
  0x21   :  { %6011 = vmatpush3.msra.mxu0 %v102_v11  ;;  %v110_v26 = vld [vmem:[%s9678_s18] sm:$0xff]  ;;  %v111_v29 = vld [vmem:[%s9678_s18 + $0x8] sm:$0xff]  ;;  %6034 = vmatpush3.msra.mxu1 %v249_v32  ;;  %v262_v53 = vld [vmem:[%s9679_s4 + $0xd8] sm:$0xff] }
  0x22   :  { %6012 = vmatprep.subr.mxu0 %v101_v12  ;;  %6035 = vmatprep.subr.mxu1 %v7243_v6  ;;  %v263_v51 = vld [vmem:[%s9679_s4 + $0xe0] sm:$0xff]  ;;  %v244_v52 = vld [vmem:[%s9679_s4 + $0x48] sm:$0xff]  ;;  %v261_v55 = vld [vmem:[%s9679_s4 + $0xd0] sm:$0xff] }
  0x23   :  { %6013 = vmatpush3.msra.mxu0 %v101_v12  ;;  %6036 = vmatpush3.msra.mxu1 %v248_v35  ;;  %v243_v54 = vld [vmem:[%s9679_s4 + $0x40] sm:$0xff]  ;;  %v242_v56 = vld [vmem:[%s9679_s4 + $0x38] sm:$0xff]  ;;  %v260_v57 = vld [vmem:[%s9679_s4 + $0xc8] sm:$0xff] }
  0x24   :  { %6014 = vmatprep.subr.mxu0 %v100_v13  ;;  %6037 = vmatprep.subr.mxu1 %v7243_v6  ;;  %v241_v58 = vld [vmem:[%s9679_s4 + $0x30] sm:$0xff]  ;;  %v259_v59 = vld [vmem:[%s9679_s4 + $0xc0] sm:$0xff]  ;;  %v240_v60 = vld [vmem:[%s9679_s4 + $0x28] sm:$0xff] }
  0x25   :  { %6015 = vmatpush3.msra.mxu0 %v100_v13  ;;  %6038 = vmatpush3.msra.mxu1 %v247_v36  ;;  %v258_v61 = vld [vmem:[%s9679_s4 + $0xb8] sm:$0xff]  ;;  %v239_v62 = vld [vmem:[%s9679_s4 + $0x20] sm:$0xff]  ;;  %v257_v63 = vld [vmem:[%s9679_s4 + $0xb0] sm:$0xff] }
  0x26   :  { %6016 = vmatprep.subr.mxu0 %v99_v14  ;;  %6039 = vmatprep.subr.mxu1 %v7243_v6  ;;  %v238_v0 = vld [vmem:[%s9679_s4 + $0x18] sm:$0xff]  ;;  %v256_v1 = vld [vmem:[%s9679_s4 + $0xa8] sm:$0xff]  ;;  %v237_v2 = vld [vmem:[%s9679_s4 + $0x10] sm:$0xff] }
  0x27   :  { %6017 = vmatpush3.msra.mxu0 %v99_v14  ;;  %6040 = vmatpush3.msra.mxu1 %v246_v48  ;;  %v255_v3 = vld [vmem:[%s9679_s4 + $0xa0] sm:$0xff]  ;;  %v236_v4 = vld [vmem:[%s9679_s4 + $0x8] sm:$0xff]  ;;  %v254_v5 = vld [vmem:[%s9679_s4 + $0x98] sm:$0xff] }
  0x28   :  { %6018 = vmatprep.subr.mxu0 %v98_v15  ;;  %6041 = vmatprep.subr.mxu1 %v7243_v6  ;;  %v235_v7 = vld [vmem:[%s9679_s4] sm:$0xff]  ;;  %v253_v8 = vld [vmem:[%s9679_s4 + $0x90] sm:$0xff]  ;;  %v252_v9 = vld [vmem:[%s9679_s4 + $0x88] sm:$0xff] }
  0x29   :  { %6019 = vmatpush3.msra.mxu0 %v98_v15  ;;  %6042 = vmatpush3.msra.mxu1 %v245_v50  ;;  %v251_v10 = vld [vmem:[%s9679_s4 + $0x80] sm:$0xff]  ;;  %v298_v31 = vld [vmem:[%s9679_s4 + $0x1f8] sm:$0xff]  ;;  %v296_v35 = vld [vmem:[%s9679_s4 + $0x1e8] sm:$0xff] }
  0x2a   :  { %6020 = vmatprep.subr.mxu0 %v97_v16  ;;  %6043 = vmatprep.subr.mxu1 %v7243_v6  ;;  %v279_v32 = vld [vmem:[%s9679_s4 + $0x160] sm:$0xff]  ;;  %v277_v36 = vld [vmem:[%s9679_s4 + $0x150] sm:$0xff]  ;;  %v290_v48 = vld [vmem:[%s9679_s4 + $0x1b8] sm:$0xff] }
  0x2b   :  { %6021 = vmatpush3.msra.mxu0 %v97_v16  ;;  %6044 = vmatpush3.msra.mxu1 %v244_v52  ;;  %v289_v50 = vld [vmem:[%s9679_s4 + $0x1b0] sm:$0xff]  ;;  %v288_v52 = vld [vmem:[%s9679_s4 + $0x1a8] sm:$0xff] }
  0x2c   :  { %6022 = vmatprep.subr.mxu0 %v96_v17  ;;  %6045 = vmatprep.subr.mxu1 %v7243_v6 }
  0x2d   :  { %6023 = vmatpush3.msra.mxu0 %v96_v17  ;;  %6046 = vmatpush3.msra.mxu1 %v243_v54  ;;  %v287_v54 = vld [vmem:[%s9679_s4 + $0x1a0] sm:$0xff] }
  0x2e   :  { %6024 = vmatprep.subr.mxu0 %v95_v18  ;;  %6047 = vmatprep.subr.mxu1 %v7243_v6 }
  0x2f   :  { %6025 = vmatpush3.msra.mxu0 %v95_v18  ;;  %6048 = vmatpush3.msra.mxu1 %v242_v56  ;;  %v5117_v18 = vld [vmem:[%s9680_s7] ss:$0 sm:$0xff]  ;;  %v286_v56 = vld [vmem:[%s9679_s4 + $0x198] sm:$0xff]  ;;  %s9684_s7 = sld [smem:[#allocation7_spill]] }
  0x30   :  { %6026 = vmatprep.subr.mxu0 %v94_v19  ;;  %6049 = vmatprep.subr.mxu1 %v7243_v6 }
  0x31   :  { %6027 = vmatpush3.msra.mxu0 %v94_v19  ;;  %6050 = vmatpush3.msra.mxu1 %v241_v58  ;;  %v285_v58 = vld [vmem:[%s9679_s4 + $0x190] sm:$0xff] }
  0x32   :  { %6066 = vmatprep.subr.mxu0 %v7243_v6  ;;  %6051 = vmatprep.subr.mxu1 %v7243_v6 }
  0x33   :  { %6052 = vmatpush3.msra.mxu1 %v240_v60  ;;  %v622_v60 = vld [vmem:[%s9644_s8 + $0x78] sm:$0xff] }
  0x34   :  { %6053 = vmatprep.subr.mxu1 %v7243_v6 }
  0x35   :  { %6054 = vmatpush3.msra.mxu1 %v239_v62  ;;  %v621_v62 = vld [vmem:[%s9644_s8 + $0x70] sm:$0xff] }
  0x36   :  { %6055 = vmatprep.subr.mxu1 %v7243_v6 }
  0x37   :  { %6056 = vmatpush3.msra.mxu1 %v238_v0  ;;  %v638_v0 = vld [vmem:[%s9644_s8 + $0xf8] sm:$0xff] }
  0x38   :  { %6057 = vmatprep.subr.mxu1 %v7243_v6 }
  0x39   :  { %6058 = vmatpush3.msra.mxu1 %v237_v2  ;;  %v637_v2 = vld [vmem:[%s9644_s8 + $0xf0] sm:$0xff] }
  0x3a   :  { %6059 = vmatprep.subr.mxu1 %v7243_v6 }
  0x3b   :  { %6060 = vmatpush3.msra.mxu1 %v236_v4  ;;  %v636_v4 = vld [vmem:[%s9644_s8 + $0xe8] sm:$0xff] }
  0x3c   :  { %6061 = vmatprep.subr.mxu1 %v7243_v6 }
  0x3d   :  { %6062 = vmatpush3.msra.mxu1 %v235_v7  ;;  %v635_v7 = vld [vmem:[%s9644_s8 + $0xe0] sm:$0xff] }
  0x3e   :  { %6101 = vmatprep.subr.mxu1 %v7243_v6 }
  0x8c   :  { %v84_v22 = vpop.permute.xlu0 %83 }
  0x8d   :  { %vm88_vm0 = vcmp.eq.s32.totalorder %v84_v22, %v76_v21 }
  0x8e   :  { %6028 = vmatprep.mubr.msk.f32.mxu0 %vm88_vm0, %v7244_v23  ;;  %vm5061_vm0 = vcmask 7168  }
  0x90   :  { %v87_v24 = vpop.permute.xlu0 %86 }
  0x91   :  { %vm89_vm1 = vcmp.eq.s32.totalorder %v87_v24, %v76_v21  ;;  %v5118_v21 = vld [vmem:[%s9681_s29] ss:$0 sm:$0xff] }
  0x92   :  { %6029 = vmatmul.mubr.msk.f32.vlgmr.msra.gmra.mxu0 %vm89_vm1, %v7244_v23  ;;  %vm5094_vm1 = vcmask 1041409  }
  0x93   :  { %6067 = vmatpush3.msra.mxu0 %v266_v33  ;;  %6098 = vmatprep.mubr.msk.f32.mxu0 %vm7245_vm3, %v7243_v6  ;;  %v297_v33 = vld [vmem:[%s9679_s4 + $0x1f0] sm:$0xff] }
  0x94   :  { %6068 = vmatprep.subr.mxu0 %v7243_v6 }
  0x95   :  { %6069 = vmatpush3.msra.mxu0 %v265_v34  ;;  %v278_v34 = vld [vmem:[%s9679_s4 + $0x158] sm:$0xff] }
  0x96   :  { %6070 = vmatprep.subr.mxu0 %v7243_v6 }
  0x97   :  { %6071 = vmatpush3.msra.mxu0 %v264_v49  ;;  %v271_v49 = vld [vmem:[%s9679_s4 + $0x120] sm:$0xff] }
  0x98   :  { %6072 = vmatprep.subr.mxu0 %v7243_v6 }
  0x99   :  { %6073 = vmatpush3.msra.mxu0 %v263_v51  ;;  %v270_v51 = vld [vmem:[%s9679_s4 + $0x118] sm:$0xff] }
  0x9a   :  { %6074 = vmatprep.subr.mxu0 %v7243_v6 }
  0x9b   :  { %6075 = vmatpush3.msra.mxu0 %v262_v53  ;;  %v269_v53 = vld [vmem:[%s9679_s4 + $0x110] sm:$0xff] }
  0x9c   :  { %6076 = vmatprep.subr.mxu0 %v7243_v6 }
  0x9d   :  { %6077 = vmatpush3.msra.mxu0 %v261_v55  ;;  %v268_v55 = vld [vmem:[%s9679_s4 + $0x108] sm:$0xff] }
  0x9e   :  { %6078 = vmatprep.subr.mxu0 %v7243_v6 }
  0x9f   :  { %6079 = vmatpush3.msra.mxu0 %v260_v57  ;;  %v267_v57 = vld [vmem:[%s9679_s4 + $0x100] sm:$0xff] }
  0xa0   :  { %6080 = vmatprep.subr.mxu0 %v7243_v6 }
  0xa1   :  { %6081 = vmatpush3.msra.mxu0 %v259_v59  ;;  %v284_v59 = vld [vmem:[%s9679_s4 + $0x188] sm:$0xff] }
  0xa2   :  { %6082 = vmatprep.subr.mxu0 %v7243_v6 }
  0xa3   :  { %6083 = vmatpush3.msra.mxu0 %v258_v61  ;;  %v283_v61 = vld [vmem:[%s9679_s4 + $0x180] sm:$0xff] }
  0xa4   :  { %6084 = vmatprep.subr.mxu0 %v7243_v6 }
  0xa5   :  { %6085 = vmatpush3.msra.mxu0 %v257_v63  ;;  %v620_v63 = vld [vmem:[%s9644_s8 + $0x68] sm:$0xff] }
  0xa6   :  { %6086 = vmatprep.subr.mxu0 %v7243_v6 }
  0xa7   :  { %6087 = vmatpush3.msra.mxu0 %v256_v1  ;;  %v619_v1 = vld [vmem:[%s9644_s8 + $0x60] sm:$0xff] }
  0xa8   :  { %6088 = vmatprep.subr.mxu0 %v7243_v6 }
  0xa9   :  { %6089 = vmatpush3.msra.mxu0 %v255_v3  ;;  %v618_v3 = vld [vmem:[%s9644_s8 + $0x58] sm:$0xff] }
  0xaa   :  { %6090 = vmatprep.subr.mxu0 %v7243_v6 }
  0xab   :  { %6091 = vmatpush3.msra.mxu0 %v254_v5  ;;  %v617_v5 = vld [vmem:[%s9644_s8 + $0x50] sm:$0xff] }
  0xac   :  { %6092 = vmatprep.subr.mxu0 %v7243_v6 }
  0xad   :  { %6093 = vmatpush3.msra.mxu0 %v253_v8  ;;  %v616_v8 = vld [vmem:[%s9644_s8 + $0x48] sm:$0xff] }
  0xae   :  { %6094 = vmatprep.subr.mxu0 %v7243_v6 }
  0xaf   :  { %6095 = vmatpush3.msra.mxu0 %v252_v9  ;;  %v634_v9 = vld [vmem:[%s9644_s8 + $0xd8] sm:$0xff] }
  0xb0   :  { %6096 = vmatprep.subr.mxu0 %v7243_v6 }
  0xb1   :  { %6097 = vmatpush3.msra.mxu0 %v251_v10  ;;  %v615_v10 = vld [vmem:[%s9644_s8 + $0x40] sm:$0xff] }
  0xb2   :  { %6136 = vmatprep.subr.mxu0 %v7243_v6 }
 0x152   :  { %v6030_v25 = vpop.f32.mrf.mxu0 }
 0x153   :  { %v184_v30 = vadd.f32 %v6030_v25, %v111_v29 }
 0x154   :  { %v178_v27 = vpop.f32.mrf.mxu0 }
 0x155   :  { %v179_v28 = vadd.f32 %v178_v27, %v110_v26  ;;  %v282_v26 = vld [vmem:[%s9679_s4 + $0x178] sm:$0xff] }
 0x157   :  { %189 = vadd.xlane.f32.xlu1 %v179_v28 }
 0x15b   :  { %191 = vadd.xlane.f32.xlu1 %v184_v30 }
 0x1e0   :  { %v190_v37 = vpop.xlane.xlu1 %189 }
 0x1e1   :  { %v193_v38 = vmul.f32 0.03125, %v190_v37  ;;  %v295_v37 = vld [vmem:[%s9679_s4 + $0x1e0] sm:$0xff] }
 0x1e3   :  { %v195_v40 = vsub.f32 %v179_v28, %v193_v38  ;;  %v281_v28 = vld [vmem:[%s9679_s4 + $0x170] sm:$0xff]  ;;  %v276_v38 = vld [vmem:[%s9679_s4 + $0x148] sm:$0xff] }
 0x1e4   :  { %v192_v41 = vpop.xlane.xlu1 %191 }
 0x1e5   :  { %v194_v42 = vmul.f32 0.03125, %v192_v41  ;;  %v7458_v43 = vmul.f32 %v7455_v39, %v195_v40  ;;  %v294_v40 = vld [vmem:[%s9679_s4 + $0x1d8] sm:$0xff]  ;;  %v275_v41 = vld [vmem:[%s9679_s4 + $0x140] sm:$0xff] }
 0x1e7   :  { %v196_v44 = vsub.f32 %v184_v30, %v194_v42  ;;  %v199_v45 = vmul.f32 %v7458_v43, %v7458_v43  ;;  %v280_v30 = vld [vmem:[%s9679_s4 + $0x168] sm:$0xff]  ;;  %v293_v42 = vld [vmem:[%s9679_s4 + $0x1d0] sm:$0xff] }
 0x1e9   :  { %201 = vadd.xlane.f32.xlu0 %v199_v45  ;;  %v7463_v46 = vmul.f32 %v7455_v39, %v196_v44  ;;  %v292_v44 = vld [vmem:[%s9679_s4 + $0x1c8] sm:$0xff]  ;;  %v273_v45 = vld [vmem:[%s9679_s4 + $0x130] sm:$0xff] }
 0x1eb   :  { %v200_v47 = vmul.f32 %v7463_v46, %v7463_v46 }
 0x1ed   :  { %203 = vadd.xlane.f32.xlu1 %v200_v47  ;;  %v272_v47 = vld [vmem:[%s9679_s4 + $0x128] sm:$0xff] }
 0x272   :  { %v202_v11 = vpop.xlane.xlu0 %201 }
 0x273   :  { %v205_v12 = vmul.f32 0.03125, %v202_v11  ;;  %v633_v11 = vld [vmem:[%s9644_s8 + $0xd0] sm:$0xff] }
 0x275   :  { %v207_v13 = vadd.f32 1e-12, %v205_v12  ;;  %v614_v12 = vld [vmem:[%s9644_s8 + $0x38] sm:$0xff] }
 0x276   :  { %v204_v14 = vpop.xlane.xlu1 %203 }
 0x277   :  { %7154 = vrsqrt.f32 %v207_v13  ;;  %v206_v15 = vmul.f32 0.03125, %v204_v14  ;;  %v632_v13 = vld [vmem:[%s9644_s8 + $0xc8] sm:$0xff]  ;;  %v613_v14 = vld [vmem:[%s9644_s8 + $0x30] sm:$0xff] }
 0x279   :  { %v208_v16 = vadd.f32 1e-12, %v206_v15  ;;  %v631_v15 = vld [vmem:[%s9644_s8 + $0xc0] sm:$0xff] }
 0x27b   :  { %7156 = vrsqrt.f32 %v208_v16  ;;  %v612_v16 = vld [vmem:[%s9644_s8 + $0x28] sm:$0xff] }
 0x284   :  { %v7155_v17 = vpop.eup %7154 }
 0x285   :  { %v211_v19 = vmul.f32 %v7155_v17, %v7458_v43  ;;  %v274_v43 = vld [vmem:[%s9679_s4 + $0x138] sm:$0xff] }
 0x286   :  { %v630_v17 = vld [vmem:[%s9644_s8 + $0xb8] sm:$0xff] }
 0x287   :  { %v219_v22 = vmul.f32 %v5117_v18, %v211_v19  ;;  %v629_v19 = vld [vmem:[%s9644_s8 + $0xb0] sm:$0xff] }
 0x288   :  { %v7157_v23 = vpop.eup %7156 }
 0x289   :  { %v7582_v24 = vadd.f32 %v5118_v21, %v219_v22  ;;  %v212_v25 = vmul.f32 %v7157_v23, %v7463_v46  ;;  %v291_v46 = vld [vmem:[%s9679_s4 + $0x1c0] sm:$0xff]  ;;  %v628_v22 = vld [vmem:[%s9644_s8 + $0xa8] sm:$0xff]  ;;  %v609_v23 = vld [vmem:[%s9644_s8 + $0x10] sm:$0xff] }
 0x28b   :  { %v220_v27 = vmul.f32 %v5117_v18, %v212_v25  ;;  %6064 = vmatmul.mubr.f32.vlgmr.msra.gmra.mxu1 %v7582_v24  ;;  %v611_v18 = vld [vmem:[%s9644_s8 + $0x20] sm:$0xff] }
 0x28c   :  { %6102 = vmatpush3.msra.mxu1 %v282_v26  ;;  %6133 = vmatprep.mubr.msk.f32.mxu1 %vm7245_vm3, %v7243_v6  ;;  %v627_v25 = vld [vmem:[%s9644_s8 + $0xa0] sm:$0xff]  ;;  %v608_v26 = vld [vmem:[%s9644_s8 + $0x8] sm:$0xff] }
 0x28d   :  { %v7594_v29 = vadd.f32 %v5118_v21, %v220_v27  ;;  %6103 = vmatprep.subr.mxu1 %v7243_v6  ;;  %v610_v21 = vld [vmem:[%s9644_s8 + $0x18] sm:$0xff] }
 0x28e   :  { %6104 = vmatpush3.msra.mxu1 %v281_v28  ;;  %v626_v27 = vld [vmem:[%s9644_s8 + $0x98] sm:$0xff]  ;;  %v607_v28 = vld [vmem:[%s9644_s8] sm:$0xff] }
 0x28f   :  { %6105 = vmatprep.subr.mxu1 %v7243_v6  ;;  %6099 = vmatmul.mubr.f32.vlgmr.msra.gmra.mxu0 %v7594_v29 }
 0x290   :  { %6106 = vmatpush3.msra.mxu1 %v280_v30  ;;  %6137 = vmatpush3.msra.mxu0 %v298_v31  ;;  %v625_v30 = vld [vmem:[%s9644_s8 + $0x90] sm:$0xff]  ;;  %v624_v31 = vld [vmem:[%s9644_s8 + $0x88] sm:$0xff] }
 0x291   :  { %6107 = vmatprep.subr.mxu1 %v7243_v6  ;;  %6138 = vmatprep.subr.mxu0 %v7243_v6 }
 0x292   :  { %6108 = vmatpush3.msra.mxu1 %v279_v32  ;;  %6139 = vmatpush3.msra.mxu0 %v297_v33  ;;  %v654_v32 = vld [vmem:[%s9644_s8 + $0x178] sm:$0xff]  ;;  %v623_v33 = vld [vmem:[%s9644_s8 + $0x80] sm:$0xff] }
 0x293   :  { %6109 = vmatprep.subr.mxu1 %v7243_v6  ;;  %6140 = vmatprep.subr.mxu0 %v7243_v6 }
 0x294   :  { %6110 = vmatpush3.msra.mxu1 %v278_v34  ;;  %6141 = vmatpush3.msra.mxu0 %v296_v35  ;;  %v653_v34 = vld [vmem:[%s9644_s8 + $0x170] sm:$0xff]  ;;  %v652_v35 = vld [vmem:[%s9644_s8 + $0x168] sm:$0xff] }
 0x295   :  { %6111 = vmatprep.subr.mxu1 %v7243_v6  ;;  %6142 = vmatprep.subr.mxu0 %v7243_v6 }
 0x296   :  { %6112 = vmatpush3.msra.mxu1 %v277_v36  ;;  %6143 = vmatpush3.msra.mxu0 %v295_v37  ;;  %v670_v36 = vld [vmem:[%s9644_s8 + $0x1f8] sm:$0xff]  ;;  %v651_v37 = vld [vmem:[%s9644_s8 + $0x160] sm:$0xff] }
 0x297   :  { %6113 = vmatprep.subr.mxu1 %v7243_v6  ;;  %6144 = vmatprep.subr.mxu0 %v7243_v6 }
 0x298   :  { %6114 = vmatpush3.msra.mxu1 %v276_v38  ;;  %6145 = vmatpush3.msra.mxu0 %v294_v40  ;;  %v669_v38 = vld [vmem:[%s9644_s8 + $0x1f0] sm:$0xff]  ;;  %v650_v40 = vld [vmem:[%s9644_s8 + $0x158] sm:$0xff] }
 0x299   :  { %6115 = vmatprep.subr.mxu1 %v7243_v6  ;;  %6146 = vmatprep.subr.mxu0 %v7243_v6 }
 0x29a   :  { %6116 = vmatpush3.msra.mxu1 %v275_v41  ;;  %6147 = vmatpush3.msra.mxu0 %v293_v42  ;;  %v668_v41 = vld [vmem:[%s9644_s8 + $0x1e8] sm:$0xff]  ;;  %v649_v42 = vld [vmem:[%s9644_s8 + $0x150] sm:$0xff] }
 0x29b   :  { %6117 = vmatprep.subr.mxu1 %v7243_v6  ;;  %6148 = vmatprep.subr.mxu0 %v7243_v6 }
 0x29c   :  { %6118 = vmatpush3.msra.mxu1 %v274_v43  ;;  %6149 = vmatpush3.msra.mxu0 %v292_v44  ;;  %v667_v43 = vld [vmem:[%s9644_s8 + $0x1e0] sm:$0xff]  ;;  %v648_v44 = vld [vmem:[%s9644_s8 + $0x148] sm:$0xff] }
 0x29d   :  { %6119 = vmatprep.subr.mxu1 %v7243_v6  ;;  %6150 = vmatprep.subr.mxu0 %v7243_v6 }
 0x29e   :  { %6120 = vmatpush3.msra.mxu1 %v273_v45  ;;  %6151 = vmatpush3.msra.mxu0 %v291_v46  ;;  %v666_v45 = vld [vmem:[%s9644_s8 + $0x1d8] sm:$0xff]  ;;  %v647_v46 = vld [vmem:[%s9644_s8 + $0x140] sm:$0xff] }
 0x29f   :  { %6121 = vmatprep.subr.mxu1 %v7243_v6  ;;  %6152 = vmatprep.subr.mxu0 %v7243_v6 }
 0x2a0   :  { %6122 = vmatpush3.msra.mxu1 %v272_v47  ;;  %6153 = vmatpush3.msra.mxu0 %v290_v48  ;;  %v665_v47 = vld [vmem:[%s9644_s8 + $0x1d0] sm:$0xff]  ;;  %v646_v48 = vld [vmem:[%s9644_s8 + $0x138] sm:$0xff] }
 0x2a1   :  { %6123 = vmatprep.subr.mxu1 %v7243_v6  ;;  %6154 = vmatprep.subr.mxu0 %v7243_v6 }
 0x2a2   :  { %6124 = vmatpush3.msra.mxu1 %v271_v49  ;;  %6155 = vmatpush3.msra.mxu0 %v289_v50  ;;  %v664_v49 = vld [vmem:[%s9644_s8 + $0x1c8] sm:$0xff]  ;;  %v645_v50 = vld [vmem:[%s9644_s8 + $0x130] sm:$0xff] }
 0x2a3   :  { %6125 = vmatprep.subr.mxu1 %v7243_v6  ;;  %6156 = vmatprep.subr.mxu0 %v7243_v6 }
 0x2a4   :  { %6126 = vmatpush3.msra.mxu1 %v270_v51  ;;  %6157 = vmatpush3.msra.mxu0 %v288_v52  ;;  %v663_v51 = vld [vmem:[%s9644_s8 + $0x1c0] sm:$0xff]  ;;  %v644_v52 = vld [vmem:[%s9644_s8 + $0x128] sm:$0xff] }
 0x2a5   :  { %6127 = vmatprep.subr.mxu1 %v7243_v6  ;;  %6158 = vmatprep.subr.mxu0 %v7243_v6 }
 0x2a6   :  { %6128 = vmatpush3.msra.mxu1 %v269_v53  ;;  %6159 = vmatpush3.msra.mxu0 %v287_v54  ;;  %v662_v53 = vld [vmem:[%s9644_s8 + $0x1b8] sm:$0xff]  ;;  %v643_v54 = vld [vmem:[%s9644_s8 + $0x120] sm:$0xff] }
 0x2a7   :  { %6129 = vmatprep.subr.mxu1 %v7243_v6  ;;  %6160 = vmatprep.subr.mxu0 %v7243_v6 }
 0x2a8   :  { %6130 = vmatpush3.msra.mxu1 %v268_v55  ;;  %6161 = vmatpush3.msra.mxu0 %v286_v56  ;;  %v661_v55 = vld [vmem:[%s9644_s8 + $0x1b0] sm:$0xff]  ;;  %v642_v56 = vld [vmem:[%s9644_s8 + $0x118] sm:$0xff] }
 0x2a9   :  { %6131 = vmatprep.subr.mxu1 %v7243_v6  ;;  %6162 = vmatprep.subr.mxu0 %v7243_v6 }
 0x2aa   :  { %6132 = vmatpush3.msra.mxu1 %v267_v57  ;;  %6163 = vmatpush3.msra.mxu0 %v285_v58  ;;  %v660_v57 = vld [vmem:[%s9644_s8 + $0x1a8] sm:$0xff]  ;;  %v641_v58 = vld [vmem:[%s9644_s8 + $0x110] sm:$0xff] }
 0x2ab   :  { %6134 = vmatmul.mubr.f32.vlgmr.msra.gmra.mxu1 %v7582_v24  ;;  %6164 = vmatprep.subr.mxu0 %v7243_v6 }
 0x2ac   :  { %6171 = vmatprep.subr.mxu1 %v7243_v6  ;;  %6165 = vmatpush3.msra.mxu0 %v284_v59  ;;  %v659_v59 = vld [vmem:[%s9644_s8 + $0x1a0] sm:$0xff] }
 0x2ad   :  { %6172 = vmatpush3.msra.mxu1 %v622_v60  ;;  %6166 = vmatprep.subr.mxu0 %v7243_v6  ;;  %v640_v60 = vld [vmem:[%s9644_s8 + $0x108] sm:$0xff] }
 0x2ae   :  { %6173 = vmatprep.subr.mxu1 %v7243_v6  ;;  %6167 = vmatpush3.msra.mxu0 %v283_v61  ;;  %v658_v61 = vld [vmem:[%s9644_s8 + $0x198] sm:$0xff] }
 0x2af   :  { %6168 = vmatprep.mubr.msk.f32.mxu0 %vm7245_vm3, %v7243_v6  ;;  %6174 = vmatpush3.msra.mxu1 %v621_v62  ;;  %v639_v62 = vld [vmem:[%s9644_s8 + $0x100] sm:$0xff] }
 0x2b0   :  { %6169 = vmatmul.mubr.f32.vlgmr.msra.gmra.mxu0 %v7594_v29  ;;  %6175 = vmatprep.subr.mxu1 %v7243_v6 }
 0x2b1   :  { %6206 = vmatprep.subr.mxu0 %v7243_v6  ;;  %6176 = vmatpush3.msra.mxu1 %v620_v63  ;;  %v657_v63 = vld [vmem:[%s9644_s8 + $0x190] sm:$0xff] }
 0x2b2   :  { %6207 = vmatpush3.msra.mxu0 %v638_v0  ;;  %6177 = vmatprep.subr.mxu1 %v7243_v6  ;;  %v656_v0 = vld [vmem:[%s9644_s8 + $0x188] sm:$0xff] }
 0x2b3   :  { %6208 = vmatprep.subr.mxu0 %v7243_v6  ;;  %6178 = vmatpush3.msra.mxu1 %v619_v1  ;;  %v994_v1 = vld [vmem:[%s9645_s9 + $0x78] sm:$0xff] }
 0x2b4   :  { %6209 = vmatpush3.msra.mxu0 %v637_v2  ;;  %6179 = vmatprep.subr.mxu1 %v7243_v6  ;;  %v655_v2 = vld [vmem:[%s9644_s8 + $0x180] sm:$0xff] }
 0x2b5   :  { %6210 = vmatprep.subr.mxu0 %v7243_v6  ;;  %6180 = vmatpush3.msra.mxu1 %v618_v3  ;;  %v993_v3 = vld [vmem:[%s9645_s9 + $0x70] sm:$0xff] }
 0x2b6   :  { %6211 = vmatpush3.msra.mxu0 %v636_v4  ;;  %6181 = vmatprep.subr.mxu1 %v7243_v6  ;;  %v992_v4 = vld [vmem:[%s9645_s9 + $0x68] sm:$0xff] }
 0x2b7   :  { %6212 = vmatprep.subr.mxu0 %v7243_v6  ;;  %6182 = vmatpush3.msra.mxu1 %v617_v5  ;;  %v1010_v5 = vld [vmem:[%s9645_s9 + $0xf8] sm:$0xff] }
 0x2b8   :  { %6213 = vmatpush3.msra.mxu0 %v635_v7  ;;  %6183 = vmatprep.subr.mxu1 %v7243_v6  ;;  %v991_v7 = vld [vmem:[%s9645_s9 + $0x60] sm:$0xff] }
 0x2b9   :  { %6214 = vmatprep.subr.mxu0 %v7243_v6  ;;  %6184 = vmatpush3.msra.mxu1 %v616_v8  ;;  %v1009_v8 = vld [vmem:[%s9645_s9 + $0xf0] sm:$0xff] }
 0x2ba   :  { %6215 = vmatpush3.msra.mxu0 %v634_v9  ;;  %6185 = vmatprep.subr.mxu1 %v7243_v6  ;;  %v990_v9 = vld [vmem:[%s9645_s9 + $0x58] sm:$0xff] }
 0x2bb   :  { %6216 = vmatprep.subr.mxu0 %v7243_v6  ;;  %6186 = vmatpush3.msra.mxu1 %v615_v10  ;;  %v1008_v10 = vld [vmem:[%s9645_s9 + $0xe8] sm:$0xff] }
 0x2bc   :  { %6217 = vmatpush3.msra.mxu0 %v633_v11  ;;  %6187 = vmatprep.subr.mxu1 %v7243_v6  ;;  %v989_v11 = vld [vmem:[%s9645_s9 + $0x50] sm:$0xff] }
 0x2bd   :  { %6218 = vmatprep.subr.mxu0 %v7243_v6  ;;  %6188 = vmatpush3.msra.mxu1 %v614_v12  ;;  %v1007_v12 = vld [vmem:[%s9645_s9 + $0xe0] sm:$0xff] }
 0x2be   :  { %6219 = vmatpush3.msra.mxu0 %v632_v13  ;;  %6189 = vmatprep.subr.mxu1 %v7243_v6  ;;  %v988_v13 = vld [vmem:[%s9645_s9 + $0x48] sm:$0xff] }
 0x2bf   :  { %6220 = vmatprep.subr.mxu0 %v7243_v6  ;;  %6190 = vmatpush3.msra.mxu1 %v613_v14  ;;  %v1006_v14 = vld [vmem:[%s9645_s9 + $0xd8] sm:$0xff] }
 0x2c0   :  { %6221 = vmatpush3.msra.mxu0 %v631_v15  ;;  %6191 = vmatprep.subr.mxu1 %v7243_v6  ;;  %v987_v15 = vld [vmem:[%s9645_s9 + $0x40] sm:$0xff] }
 0x2c1   :  { %6222 = vmatprep.subr.mxu0 %v7243_v6  ;;  %6192 = vmatpush3.msra.mxu1 %v612_v16  ;;  %v1005_v16 = vld [vmem:[%s9645_s9 + $0xd0] sm:$0xff] }
 0x2c2   :  { %6223 = vmatpush3.msra.mxu0 %v630_v17  ;;  %6193 = vmatprep.subr.mxu1 %v7243_v6  ;;  %v986_v17 = vld [vmem:[%s9645_s9 + $0x38] sm:$0xff] }
 0x2c3   :  { %6224 = vmatprep.subr.mxu0 %v7243_v6  ;;  %6194 = vmatpush3.msra.mxu1 %v611_v18  ;;  %v1004_v18 = vld [vmem:[%s9645_s9 + $0xc8] sm:$0xff] }
 0x2c4   :  { %6225 = vmatpush3.msra.mxu0 %v629_v19  ;;  %6195 = vmatprep.subr.mxu1 %v7243_v6  ;;  %v985_v19 = vld [vmem:[%s9645_s9 + $0x30] sm:$0xff] }
 0x2c5   :  { %6226 = vmatprep.subr.mxu0 %v7243_v6  ;;  %6196 = vmatpush3.msra.mxu1 %v610_v21  ;;  %v1003_v21 = vld [vmem:[%s9645_s9 + $0xc0] sm:$0xff] }
 0x2c6   :  { %6227 = vmatpush3.msra.mxu0 %v628_v22  ;;  %6197 = vmatprep.subr.mxu1 %v7243_v6  ;;  %v984_v22 = vld [vmem:[%s9645_s9 + $0x28] sm:$0xff] }
 0x2c7   :  { %6228 = vmatprep.subr.mxu0 %v7243_v6  ;;  %6198 = vmatpush3.msra.mxu1 %v609_v23  ;;  %v1002_v23 = vld [vmem:[%s9645_s9 + $0xb8] sm:$0xff] }
 0x2c8   :  { %6229 = vmatpush3.msra.mxu0 %v627_v25  ;;  %6199 = vmatprep.subr.mxu1 %v7243_v6  ;;  %v983_v25 = vld [vmem:[%s9645_s9 + $0x20] sm:$0xff] }
 0x2c9   :  { %6230 = vmatprep.subr.mxu0 %v7243_v6  ;;  %6200 = vmatpush3.msra.mxu1 %v608_v26  ;;  %v1001_v26 = vld [vmem:[%s9645_s9 + $0xb0] sm:$0xff] }
 0x2ca   :  { %6231 = vmatpush3.msra.mxu0 %v626_v27  ;;  %6201 = vmatprep.subr.mxu1 %v7243_v6  ;;  %v982_v27 = vld [vmem:[%s9645_s9 + $0x18] sm:$0xff] }
 0x2cb   :  { %6232 = vmatprep.subr.mxu0 %v7243_v6  ;;  %6202 = vmatpush3.msra.mxu1 %v607_v28  ;;  %v1000_v28 = vld [vmem:[%s9645_s9 + $0xa8] sm:$0xff] }
 0x2cc   :  { %6203 = vmatprep.mubr.msk.f32.mxu1 %vm7245_vm3, %v7243_v6  ;;  %6233 = vmatpush3.msra.mxu0 %v625_v30  ;;  %v981_v30 = vld [vmem:[%s9645_s9 + $0x10] sm:$0xff] }
 0x2cd   :  { %6204 = vmatmul.mubr.f32.vlgmr.msra.gmra.mxu1 %v7582_v24  ;;  %6234 = vmatprep.subr.mxu0 %v7243_v6 }
 0x2ce   :  { %6241 = vmatprep.subr.mxu1 %v7243_v6  ;;  %6235 = vmatpush3.msra.mxu0 %v624_v31  ;;  %v999_v31 = vld [vmem:[%s9645_s9 + $0xa0] sm:$0xff] }
 0x2cf   :  { %6242 = vmatpush3.msra.mxu1 %v654_v32  ;;  %6236 = vmatprep.subr.mxu0 %v7243_v6  ;;  %v980_v32 = vld [vmem:[%s9645_s9 + $0x8] sm:$0xff] }
 0x2d0   :  { %6243 = vmatprep.subr.mxu1 %v7243_v6  ;;  %6237 = vmatpush3.msra.mxu0 %v623_v33  ;;  %v998_v33 = vld [vmem:[%s9645_s9 + $0x98] sm:$0xff] }
 0x2d1   :  { %6238 = vmatprep.mubr.msk.f32.mxu0 %vm7245_vm3, %v7243_v6  ;;  %6244 = vmatpush3.msra.mxu1 %v653_v34  ;;  %v979_v34 = vld [vmem:[%s9645_s9] sm:$0xff] }
 0x2d2   :  { %6239 = vmatmul.mubr.f32.vlgmr.msra.gmra.mxu0 %v7594_v29  ;;  %6245 = vmatprep.subr.mxu1 %v7243_v6 }
 0x2d3   :  { %6276 = vmatprep.subr.mxu0 %v7243_v6  ;;  %6246 = vmatpush3.msra.mxu1 %v652_v35  ;;  %v997_v35 = vld [vmem:[%s9645_s9 + $0x90] sm:$0xff] }
 0x2d4   :  { %6277 = vmatpush3.msra.mxu0 %v670_v36  ;;  %6247 = vmatprep.subr.mxu1 %v7243_v6  ;;  %v996_v36 = vld [vmem:[%s9645_s9 + $0x88] sm:$0xff] }
 0x2d5   :  { %6278 = vmatprep.subr.mxu0 %v7243_v6  ;;  %6248 = vmatpush3.msra.mxu1 %v651_v37  ;;  %v1026_v37 = vld [vmem:[%s9645_s9 + $0x178] sm:$0xff] }
 0x2d6   :  { %6279 = vmatpush3.msra.mxu0 %v669_v38  ;;  %6249 = vmatprep.subr.mxu1 %v7243_v6  ;;  %v995_v38 = vld [vmem:[%s9645_s9 + $0x80] sm:$0xff] }
 0x2d7   :  { %6280 = vmatprep.subr.mxu0 %v7243_v6  ;;  %6250 = vmatpush3.msra.mxu1 %v650_v40  ;;  %v1025_v40 = vld [vmem:[%s9645_s9 + $0x170] sm:$0xff] }
 0x2d8   :  { %6281 = vmatpush3.msra.mxu0 %v668_v41  ;;  %6251 = vmatprep.subr.mxu1 %v7243_v6  ;;  %v1024_v41 = vld [vmem:[%s9645_s9 + $0x168] sm:$0xff] }
 0x2d9   :  { %6282 = vmatprep.subr.mxu0 %v7243_v6  ;;  %6252 = vmatpush3.msra.mxu1 %v649_v42  ;;  %v1042_v42 = vld [vmem:[%s9645_s9 + $0x1f8] sm:$0xff] }
 0x2da   :  { %6283 = vmatpush3.msra.mxu0 %v667_v43  ;;  %6253 = vmatprep.subr.mxu1 %v7243_v6  ;;  %v1023_v43 = vld [vmem:[%s9645_s9 + $0x160] sm:$0xff] }
 0x2db   :  { %6284 = vmatprep.subr.mxu0 %v7243_v6  ;;  %6254 = vmatpush3.msra.mxu1 %v648_v44  ;;  %v1041_v44 = vld [vmem:[%s9645_s9 + $0x1f0] sm:$0xff] }
 0x2dc   :  { %6285 = vmatpush3.msra.mxu0 %v666_v45  ;;  %6255 = vmatprep.subr.mxu1 %v7243_v6  ;;  %v1022_v45 = vld [vmem:[%s9645_s9 + $0x158] sm:$0xff] }
 0x2dd   :  { %6286 = vmatprep.subr.mxu0 %v7243_v6  ;;  %6256 = vmatpush3.msra.mxu1 %v647_v46  ;;  %v1040_v46 = vld [vmem:[%s9645_s9 + $0x1e8] sm:$0xff] }
 0x2de   :  { %6287 = vmatpush3.msra.mxu0 %v665_v47  ;;  %6257 = vmatprep.subr.mxu1 %v7243_v6  ;;  %v1021_v47 = vld [vmem:[%s9645_s9 + $0x150] sm:$0xff] }
 0x2df   :  { %6288 = vmatprep.subr.mxu0 %v7243_v6  ;;  %6258 = vmatpush3.msra.mxu1 %v646_v48  ;;  %v1039_v48 = vld [vmem:[%s9645_s9 + $0x1e0] sm:$0xff] }
 0x2e0   :  { %6289 = vmatpush3.msra.mxu0 %v664_v49  ;;  %6259 = vmatprep.subr.mxu1 %v7243_v6  ;;  %v1020_v49 = vld [vmem:[%s9645_s9 + $0x148] sm:$0xff] }
 0x2e1   :  { %6290 = vmatprep.subr.mxu0 %v7243_v6  ;;  %6260 = vmatpush3.msra.mxu1 %v645_v50  ;;  %v1038_v50 = vld [vmem:[%s9645_s9 + $0x1d8] sm:$0xff] }
 0x2e2   :  { %6291 = vmatpush3.msra.mxu0 %v663_v51  ;;  %6261 = vmatprep.subr.mxu1 %v7243_v6  ;;  %v1019_v51 = vld [vmem:[%s9645_s9 + $0x140] sm:$0xff] }
 0x2e3   :  { %6292 = vmatprep.subr.mxu0 %v7243_v6  ;;  %6262 = vmatpush3.msra.mxu1 %v644_v52  ;;  %v1037_v52 = vld [vmem:[%s9645_s9 + $0x1d0] sm:$0xff] }
 0x2e4   :  { %6293 = vmatpush3.msra.mxu0 %v662_v53  ;;  %6263 = vmatprep.subr.mxu1 %v7243_v6  ;;  %v1018_v53 = vld [vmem:[%s9645_s9 + $0x138] sm:$0xff] }
 0x2e5   :  { %6294 = vmatprep.subr.mxu0 %v7243_v6  ;;  %6264 = vmatpush3.msra.mxu1 %v643_v54  ;;  %v1036_v54 = vld [vmem:[%s9645_s9 + $0x1c8] sm:$0xff] }
 0x2e6   :  { %6295 = vmatpush3.msra.mxu0 %v661_v55  ;;  %6265 = vmatprep.subr.mxu1 %v7243_v6  ;;  %v1017_v55 = vld [vmem:[%s9645_s9 + $0x130] sm:$0xff] }
 0x2e7   :  { %6296 = vmatprep.subr.mxu0 %v7243_v6  ;;  %6266 = vmatpush3.msra.mxu1 %v642_v56  ;;  %v1035_v56 = vld [vmem:[%s9645_s9 + $0x1c0] sm:$0xff] }
 0x2e8   :  { %6297 = vmatpush3.msra.mxu0 %v660_v57  ;;  %6267 = vmatprep.subr.mxu1 %v7243_v6  ;;  %v1016_v57 = vld [vmem:[%s9645_s9 + $0x128] sm:$0xff] }
 0x2e9   :  { %6298 = vmatprep.subr.mxu0 %v7243_v6  ;;  %6268 = vmatpush3.msra.mxu1 %v641_v58  ;;  %v1034_v58 = vld [vmem:[%s9645_s9 + $0x1b8] sm:$0xff] }
 0x2ea   :  { %6299 = vmatpush3.msra.mxu0 %v659_v59  ;;  %6269 = vmatprep.subr.mxu1 %v7243_v6  ;;  %v1015_v59 = vld [vmem:[%s9645_s9 + $0x120] sm:$0xff] }
 0x2eb   :  { %6300 = vmatprep.subr.mxu0 %v7243_v6  ;;  %6270 = vmatpush3.msra.mxu1 %v640_v60  ;;  %v1033_v60 = vld [vmem:[%s9645_s9 + $0x1b0] sm:$0xff] }
 0x2ec   :  { %6301 = vmatpush3.msra.mxu0 %v658_v61  ;;  %6271 = vmatprep.subr.mxu1 %v7243_v6  ;;  %v1014_v61 = vld [vmem:[%s9645_s9 + $0x118] sm:$0xff] }
 0x2ed   :  { %6302 = vmatprep.subr.mxu0 %v7243_v6  ;;  %6272 = vmatpush3.msra.mxu1 %v639_v62  ;;  %v1032_v62 = vld [vmem:[%s9645_s9 + $0x1a8] sm:$0xff] }
 0x2ee   :  { %6273 = vmatprep.mubr.msk.f32.mxu1 %vm7245_vm3, %v7243_v6  ;;  %6303 = vmatpush3.msra.mxu0 %v657_v63  ;;  %v1013_v63 = vld [vmem:[%s9645_s9 + $0x110] sm:$0xff] }
 0x2ef   :  { %6274 = vmatmul.mubr.f32.vlgmr.msra.gmra.mxu1 %v7582_v24  ;;  %6304 = vmatprep.subr.mxu0 %v7243_v6 }
 0x2f0   :  { %6311 = vmatprep.subr.mxu1 %v7243_v6  ;;  %6305 = vmatpush3.msra.mxu0 %v656_v0  ;;  %v1031_v0 = vld [vmem:[%s9645_s9 + $0x1a0] sm:$0xff] }
 0x2f1   :  { %6312 = vmatpush3.msra.mxu1 %v994_v1  ;;  %6306 = vmatprep.subr.mxu0 %v7243_v6  ;;  %v1012_v1 = vld [vmem:[%s9645_s9 + $0x108] sm:$0xff] }
 0x2f2   :  { %6313 = vmatprep.subr.mxu1 %v7243_v6  ;;  %6307 = vmatpush3.msra.mxu0 %v655_v2  ;;  %v1030_v2 = vld [vmem:[%s9645_s9 + $0x198] sm:$0xff] }
 0x2f3   :  { %6308 = vmatprep.mubr.msk.f32.mxu0 %vm7245_vm3, %v7243_v6  ;;  %6314 = vmatpush3.msra.mxu1 %v993_v3  ;;  %v1011_v3 = vld [vmem:[%s9645_s9 + $0x100] sm:$0xff] }
 0x2f4   :  { %6309 = vmatmul.mubr.f32.vlgmr.msra.gmra.mxu0 %v7594_v29  ;;  %6315 = vmatprep.subr.mxu1 %v7243_v6 }
 0x2f5   :  { %6346 = vmatprep.subr.mxu0 %v7243_v6  ;;  %6316 = vmatpush3.msra.mxu1 %v992_v4  ;;  %v1029_v4 = vld [vmem:[%s9645_s9 + $0x190] sm:$0xff] }
 0x2f6   :  { %6347 = vmatpush3.msra.mxu0 %v1010_v5  ;;  %6317 = vmatprep.subr.mxu1 %v7243_v6  ;;  %v1028_v5 = vld [vmem:[%s9645_s9 + $0x188] sm:$0xff] }
 0x2f7   :  { %6348 = vmatprep.subr.mxu0 %v7243_v6  ;;  %6318 = vmatpush3.msra.mxu1 %v991_v7  ;;  %v1027_v7 = vld [vmem:[%s9645_s9 + $0x180] sm:$0xff] }
 0x2f8   :  { %6349 = vmatpush3.msra.mxu0 %v1009_v8  ;;  %6319 = vmatprep.subr.mxu1 %v7243_v6 }
 0x2f9   :  { %6350 = vmatprep.subr.mxu0 %v7243_v6  ;;  %6320 = vmatpush3.msra.mxu1 %v990_v9 }
 0x2fa   :  { %6351 = vmatpush3.msra.mxu0 %v1008_v10  ;;  %6321 = vmatprep.subr.mxu1 %v7243_v6 }
 0x2fb   :  { %6352 = vmatprep.subr.mxu0 %v7243_v6  ;;  %6322 = vmatpush3.msra.mxu1 %v989_v11 }
 0x2fc   :  { %6353 = vmatpush3.msra.mxu0 %v1007_v12  ;;  %6323 = vmatprep.subr.mxu1 %v7243_v6 }
 0x2fd   :  { %6354 = vmatprep.subr.mxu0 %v7243_v6  ;;  %6324 = vmatpush3.msra.mxu1 %v988_v13 }
 0x2fe   :  { %6355 = vmatpush3.msra.mxu0 %v1006_v14  ;;  %6325 = vmatprep.subr.mxu1 %v7243_v6 }
 0x2ff   :  { %6356 = vmatprep.subr.mxu0 %v7243_v6  ;;  %6326 = vmatpush3.msra.mxu1 %v987_v15 }
 0x300   :  { %6357 = vmatpush3.msra.mxu0 %v1005_v16  ;;  %6327 = vmatprep.subr.mxu1 %v7243_v6  ;;  %v5123_v16 = vld [vmem:[%s9647_s11] ss:$0 sm:$0xff] }
 0x301   :  { %6358 = vmatprep.subr.mxu0 %v7243_v6  ;;  %6328 = vmatpush3.msra.mxu1 %v986_v17 }
 0x302   :  { %6359 = vmatpush3.msra.mxu0 %v1004_v18  ;;  %6329 = vmatprep.subr.mxu1 %v7243_v6  ;;  %v5119_v18 = vld [vmem:[%s9646_s10] ss:$0 sm:$0xff] }
 0x303   :  { %6360 = vmatprep.subr.mxu0 %v7243_v6  ;;  %6330 = vmatpush3.msra.mxu1 %v985_v19 }
 0x304   :  { %6361 = vmatpush3.msra.mxu0 %v1003_v21  ;;  %6331 = vmatprep.subr.mxu1 %v7243_v6 }
 0x305   :  { %6362 = vmatprep.subr.mxu0 %v7243_v6  ;;  %6332 = vmatpush3.msra.mxu1 %v984_v22  ;;  %v5124_v22 = vld [vmem:[%s9647_s11 + $0x1] ss:$0 sm:$0xff] }
 0x306   :  { %6363 = vmatpush3.msra.mxu0 %v1002_v23  ;;  %6333 = vmatprep.subr.mxu1 %v7243_v6 }
 0x307   :  { %6364 = vmatprep.subr.mxu0 %v7243_v6  ;;  %6334 = vmatpush3.msra.mxu1 %v983_v25 }
 0x308   :  { %6365 = vmatpush3.msra.mxu0 %v1001_v26  ;;  %6335 = vmatprep.subr.mxu1 %v7243_v6  ;;  %v5120_v26 = vld [vmem:[%s9646_s10 + $0x1] ss:$0 sm:$0xff] }
 0x309   :  { %6366 = vmatprep.subr.mxu0 %v7243_v6  ;;  %6336 = vmatpush3.msra.mxu1 %v982_v27 }
 0x30a   :  { %6367 = vmatpush3.msra.mxu0 %v1000_v28  ;;  %6337 = vmatprep.subr.mxu1 %v7243_v6 }
 0x30b   :  { %6368 = vmatprep.subr.mxu0 %v7243_v6  ;;  %6338 = vmatpush3.msra.mxu1 %v981_v30 }
 0x30c   :  { %6369 = vmatpush3.msra.mxu0 %v999_v31  ;;  %6339 = vmatprep.subr.mxu1 %v7243_v6  ;;  %v5125_v31 = vld [vmem:[%s9647_s11 + $0x2] ss:$0 sm:$0xff] }
 0x30d   :  { %6370 = vmatprep.subr.mxu0 %v7243_v6  ;;  %6340 = vmatpush3.msra.mxu1 %v980_v32 }
 0x30e   :  { %6371 = vmatpush3.msra.mxu0 %v998_v33  ;;  %6341 = vmatprep.subr.mxu1 %v7243_v6  ;;  %v5121_v33 = vld [vmem:[%s9646_s10 + $0x2] ss:$0 sm:$0xff] }
 0x30f   :  { %6372 = vmatprep.subr.mxu0 %v7243_v6  ;;  %6342 = vmatpush3.msra.mxu1 %v979_v34 }
 0x310   :  { %6343 = vmatprep.mubr.msk.f32.mxu1 %vm7245_vm3, %v7243_v6  ;;  %6373 = vmatpush3.msra.mxu0 %v997_v35 }
 0x311   :  { %6344 = vmatmul.mubr.f32.vlgmr.msra.gmra.mxu1 %v7582_v24  ;;  %6374 = vmatprep.subr.mxu0 %v7243_v6 }
 0x312   :  { %6381 = vmatprep.subr.mxu1 %v7243_v6  ;;  %6375 = vmatpush3.msra.mxu0 %v996_v36  ;;  %v5126_v36 = vld [vmem:[%s9647_s11 + $0x3] ss:$0 sm:$0xff] }
 0x313   :  { %6382 = vmatpush3.msra.mxu1 %v1026_v37  ;;  %6376 = vmatprep.subr.mxu0 %v7243_v6 }
 0x314   :  { %6383 = vmatprep.subr.mxu1 %v7243_v6  ;;  %6377 = vmatpush3.msra.mxu0 %v995_v38 }
 0x315   :  { %6378 = vmatprep.mubr.msk.f32.mxu0 %vm7245_vm3, %v7243_v6  ;;  %6384 = vmatpush3.msra.mxu1 %v1025_v40  ;;  %v5122_v40 = vld [vmem:[%s9646_s10 + $0x3] ss:$0 sm:$0xff] }
 0x316   :  { %6379 = vmatmul.mubr.f32.vlgmr.msra.gmra.mxu0 %v7594_v29  ;;  %6385 = vmatprep.subr.mxu1 %v7243_v6 }
 0x317   :  { %6416 = vmatprep.subr.mxu0 %v7243_v6  ;;  %6386 = vmatpush3.msra.mxu1 %v1024_v41 }
 0x318   :  { %6417 = vmatpush3.msra.mxu0 %v1042_v42  ;;  %6387 = vmatprep.subr.mxu1 %v7243_v6 }
 0x319   :  { %6418 = vmatprep.subr.mxu0 %v7243_v6  ;;  %6388 = vmatpush3.msra.mxu1 %v1023_v43 }
 0x31a   :  { %6419 = vmatpush3.msra.mxu0 %v1041_v44  ;;  %6389 = vmatprep.subr.mxu1 %v7243_v6  ;;  %v5127_v44 = vld [vmem:[%s9648_s12] ss:$0 sm:$0xff] }
 0x31b   :  { %6420 = vmatprep.subr.mxu0 %v7243_v6  ;;  %6390 = vmatpush3.msra.mxu1 %v1022_v45 }
 0x31c   :  { %6421 = vmatpush3.msra.mxu0 %v1040_v46  ;;  %6391 = vmatprep.subr.mxu1 %v7243_v6 }
 0x31d   :  { %6422 = vmatprep.subr.mxu0 %v7243_v6  ;;  %6392 = vmatpush3.msra.mxu1 %v1021_v47 }
 0x31e   :  { %6423 = vmatpush3.msra.mxu0 %v1039_v48  ;;  %6393 = vmatprep.subr.mxu1 %v7243_v6 }
 0x31f   :  { %6424 = vmatprep.subr.mxu0 %v7243_v6  ;;  %6394 = vmatpush3.msra.mxu1 %v1020_v49 }
 0x320   :  { %6425 = vmatpush3.msra.mxu0 %v1038_v50  ;;  %6395 = vmatprep.subr.mxu1 %v7243_v6 }
 0x321   :  { %6426 = vmatprep.subr.mxu0 %v7243_v6  ;;  %6396 = vmatpush3.msra.mxu1 %v1019_v51 }
 0x322   :  { %6427 = vmatpush3.msra.mxu0 %v1037_v52  ;;  %6397 = vmatprep.subr.mxu1 %v7243_v6 }
 0x323   :  { %6428 = vmatprep.subr.mxu0 %v7243_v6  ;;  %6398 = vmatpush3.msra.mxu1 %v1018_v53 }
 0x324   :  { %6429 = vmatpush3.msra.mxu0 %v1036_v54  ;;  %6399 = vmatprep.subr.mxu1 %v7243_v6  ;;  %v229_v54 = vld [vmem:[%s9682_s5] sm:$0x1] }
 0x325   :  { %6430 = vmatprep.subr.mxu0 %v7243_v6  ;;  %6400 = vmatpush3.msra.mxu1 %v1017_v55  ;;  %v1663_v55 = vshrl.u32 %v75_v20, 7 }
 0x326   :  { %6431 = vmatpush3.msra.mxu0 %v1035_v56  ;;  %6401 = vmatprep.subr.mxu1 %v7243_v6  ;;  %v231_v56 = vsub.f32 1.0, %v229_v54  ;;  %v5129_v54 = vld [vmem:[%s9648_s12 + $0x2] ss:$0 sm:$0xff] }
 0x327   :  { %6432 = vmatprep.subr.mxu0 %v7243_v6  ;;  %6402 = vmatpush3.msra.mxu1 %v1016_v57  ;;  %v230_v57 = vld [vmem:[%s9682_s5 + $0x1] sm:$0x1] }
 0x328   :  { %6433 = vmatpush3.msra.mxu0 %v1034_v58  ;;  %6403 = vmatprep.subr.mxu1 %v7243_v6  ;;  %v1664_v58 = vsub.s32 0, %v1663_v55 }
 0x329   :  { %6434 = vmatprep.subr.mxu0 %v7243_v6  ;;  %6404 = vmatpush3.msra.mxu1 %v1015_v59  ;;  %v233_v59 = vmul.f32 -1e+09, %v231_v56 }
 0x32a   :  { %6435 = vmatpush3.msra.mxu0 %v1033_v60  ;;  %6405 = vmatprep.subr.mxu1 %v7243_v6  ;;  %v232_v60 = vsub.f32 1.0, %v230_v57 }
 0x32b   :  { %6436 = vmatprep.subr.mxu0 %v7243_v6  ;;  %6406 = vmatpush3.msra.mxu1 %v1014_v61  ;;  %v8324_v61 = vrot.slane %v233_v59, %v1664_v58  ;;  %v5130_v59 = vld [vmem:[%s9648_s12 + $0x3] ss:$0 sm:$0xff] }
 0x32c   :  { %6437 = vmatpush3.msra.mxu0 %v1032_v62  ;;  %6407 = vmatprep.subr.mxu1 %v7243_v6 }
 0x32d   :  { %6438 = vmatprep.subr.mxu0 %v7243_v6  ;;  %6408 = vmatpush3.msra.mxu1 %v1013_v63  ;;  %v234_v63 = vmul.f32 -1e+09, %v232_v60 }
 0x32e   :  { %6439 = vmatpush3.msra.mxu0 %v1031_v0  ;;  %6409 = vmatprep.subr.mxu1 %v7243_v6 }
 0x32f   :  { %6440 = vmatprep.subr.mxu0 %v7243_v6  ;;  %6410 = vmatpush3.msra.mxu1 %v1012_v1 }
 0x330   :  { %6441 = vmatpush3.msra.mxu0 %v1030_v2  ;;  %6411 = vmatprep.subr.mxu1 %v7243_v6 }
 0x331   :  { %6442 = vmatprep.subr.mxu0 %v7243_v6  ;;  %6412 = vmatpush3.msra.mxu1 %v1011_v3  ;;  %v8327_v3 = vrot.slane %v234_v63, %v1664_v58 }
 0x332   :  { %6413 = vmatprep.mubr.msk.f32.mxu1 %vm7245_vm3, %v7243_v6  ;;  %6443 = vmatpush3.msra.mxu0 %v1029_v4 }
 0x333   :  { %6414 = vmatmul.mubr.f32.vlgmr.msra.gmra.mxu1 %v7582_v24  ;;  %6444 = vmatprep.subr.mxu0 %v7243_v6 }
 0x334   :  { %6445 = vmatpush3.msra.mxu0 %v1028_v5  ;;  %6448 = vmatprep.mubr.msk.f32.mxu0 %vm7245_vm3, %v7243_v6 }
 0x335   :  { %6446 = vmatprep.subr.mxu0 %v7243_v6  ;;  %6451 = vmatprep.subr.mxu1 %v7243_v6 }
 0x336   :  { %6447 = vmatpush3.msra.mxu0 %v1027_v7  ;;  %6453 = vmatprep.mubr.msk.f32.mxu1 %vm7245_vm3, %v7243_v6 }
 0x337   :  { %6449 = vmatmul.mubr.f32.vlgmr.msra.gmra.mxu0 %v7594_v29  ;;  %6491 = vmatprep.subr.mxu0 %v7243_v6 }
 0x338   :  { %6495 = vmatprep.mubr.msk.f32.mxu0 %vm7245_vm3, %v7243_v6 }
 0x34b   :  { %v393_v8 = vpop.f32.mrf.mxu1 }
 0x34c   :  { %v394_v23 = vadd.f32 %v5119_v18, %v393_v8 }
 0x34d   :  { %v6065_v9 = vpop.f32.mrf.mxu1 }
 0x34f   :  { %v463_v10 = vpop.f32.mrf.mxu0 }
 0x350   :  { %v464_v30 = vadd.f32 %v5120_v26, %v463_v10 }
 0x351   :  { %v6100_v11 = vpop.f32.mrf.mxu0 }
 0x36b   :  { %v533_v12 = vpop.f32.mrf.mxu1 }
 0x36c   :  { %v534_v37 = vadd.f32 %v5121_v33, %v533_v12 }
 0x36d   :  { %v6135_v13 = vpop.f32.mrf.mxu1 }
 0x370   :  { %v603_v14 = vpop.f32.mrf.mxu0 }
 0x371   :  { %v604_v43 = vadd.f32 %v5122_v40, %v603_v14 }
 0x372   :  { %v6170_v15 = vpop.f32.mrf.mxu0 }
 0x38d   :  { %v765_v17 = vpop.f32.mrf.mxu1 }
 0x38e   :  { %v766_v19 = vadd.f32 %v5123_v16, %v765_v17 }
 0x38f   :  { %v6205_v21 = vpop.f32.mrf.mxu1 }
 0x390   :  { %6452 = vmatpush3.xpose.msk.msra.mxu1 %vm1351_vm4, %v766_v19 }
 0x391   :  { %6456 = vmatprep.subr.mxu1 %v7243_v6 }
 0x392   :  { %v835_v25 = vpop.f32.mrf.mxu0 }
 0x393   :  { %v836_v27 = vadd.f32 %v5124_v22, %v835_v25  ;;  %6454 = vmatmul.mubr.msk.f32.vlgmr.msra.gmra.mxu1 %vm1351_vm4, %v394_v23 }
 0x394   :  { %v6240_v28 = vpop.f32.mrf.mxu0  ;;  %6458 = vmatprep.mubr.msk.f32.mxu1 %vm7245_vm3, %v7243_v6 }
 0x395   :  { %6457 = vmatpush3.xpose.msk.msra.mxu1 %vm1351_vm4, %v836_v27 }
 0x396   :  { %6461 = vmatprep.subr.mxu1 %v7243_v6 }
 0x398   :  { %6459 = vmatmul.mubr.msk.f32.vlgmr.msra.gmra.mxu1 %vm1351_vm4, %v464_v30 }
 0x399   :  { %6463 = vmatprep.mubr.msk.f32.mxu1 %vm7245_vm3, %v7243_v6 }
 0x3af   :  { %v905_v32 = vpop.f32.mrf.mxu1 }
 0x3b0   :  { %v906_v34 = vadd.f32 %v5125_v31, %v905_v32 }
 0x3b1   :  { %v6275_v35 = vpop.f32.mrf.mxu1 }
 0x3b2   :  { %6462 = vmatpush3.xpose.msk.msra.mxu1 %vm1351_vm4, %v906_v34 }
 0x3b3   :  { %6466 = vmatprep.subr.mxu1 %v7243_v6 }
 0x3b4   :  { %v975_v38 = vpop.f32.mrf.mxu0 }
 0x3b5   :  { %v976_v41 = vadd.f32 %v5126_v36, %v975_v38  ;;  %6464 = vmatmul.mubr.msk.f32.vlgmr.msra.gmra.mxu1 %vm1351_vm4, %v534_v37 }
 0x3b6   :  { %v6310_v42 = vpop.f32.mrf.mxu0  ;;  %6468 = vmatprep.mubr.msk.f32.mxu1 %vm7245_vm3, %v7243_v6 }
 0x3b7   :  { %6467 = vmatpush3.xpose.msk.msra.mxu1 %vm1351_vm4, %v976_v41 }
 0x3b8   :  { %6471 = vmatprep.subr.mxu1 %v7243_v6 }
 0x3ba   :  { %6469 = vmatmul.mubr.msk.f32.vlgmr.msra.gmra.mxu1 %vm1351_vm4, %v604_v43 }
 0x3bb   :  { %6473 = vmatprep.mubr.msk.f32.mxu1 %vm7245_vm3, %v7243_v6 }
 0x3d1   :  { %v1137_v45 = vpop.f32.mrf.mxu1 }
 0x3d2   :  { %v1138_v46 = vadd.f32 %v5127_v44, %v1137_v45  ;;  %v2014_v44 = vld [vmem:[%s9649_s13 + $0x8] sm:$0xff] }
 0x3d3   :  { %v6345_v47 = vpop.f32.mrf.mxu1  ;;  %6492 = vmatpush3.msra.mxu0 %v2014_v44 }
 0x3d4   :  { %6472 = vmatpush3.msra.mxu1 %v1138_v46  ;;  %6493 = vmatprep.subr.mxu0 %v7243_v6  ;;  %v5128_v47 = vld [vmem:[%s9648_s12 + $0x1] ss:$0 sm:$0xff] }
 0x3d5   :  { %6476 = vmatprep.subr.mxu1 %v7243_v6 }
 0x3d6   :  { %v8311_v48 = vpop.f32.mrf.mxu0 }
 0x3d8   :  { %v6380_v49 = vpop.f32.mrf.mxu0 }
 0x3f3   :  { %v8313_v50 = vpop.f32.mrf.mxu1 }
 0x3f4   :  { %v1278_v57 = vadd.f32 %v5129_v54, %v8313_v50  ;;  %v2375_v54 = vld [vmem:[%s9653_s17 + $0x38] sm:$0xff] }
 0x3f5   :  { %v6415_v51 = vpop.f32.mrf.mxu1 }
 0x3f7   :  { %v8315_v52 = vpop.f32.mrf.mxu0 }
 0x3f8   :  { %v1348_v50 = vadd.f32 %v5130_v59, %v8315_v52  ;;  %v2016_v52 = vld [vmem:[%s9649_s13 + $0x18] sm:$0xff]  ;;  %v2369_v59 = vld [vmem:[%s9653_s17 + $0x8] sm:$0xff] }
 0x3f9   :  { %v6450_v53 = vpop.f32.mrf.mxu0 }
 0x3fa   :  { %v1208_v53 = vadd.f32 %v5128_v47, %v8311_v48  ;;  %v2379_v47 = vld [vmem:[%s9653_s17 + $0x58] sm:$0xff] }
 0x453   :  { %v1424_v62 = vpop.f32.mrf.mxu1 }
 0x454   :  { %v1656_v0 = vmul.f32 0.25, %v1424_v62 }
 0x455   :  { %v6455_v1 = vpop.f32.mrf.mxu1 }
 0x456   :  { %v1672_v2 = vadd.f32 %v8324_v61, %v1656_v0  ;;  %v2013_v1 = vld [vmem:[%s9649_s13] sm:$0xff] }
 0x457   :  { %6494 = vmatpush3.msra.mxu0 %v2013_v1 }
 0x458   :  { %v1500_v20 = vpop.f32.mrf.mxu1  ;;  %v1677_v4 = vsel %vm1676_vm5, %v1672_v2, -inf  ;;  %6505 = vmatprep.subr.mxu0 %v7243_v6 }
 0x459   :  { %v1657_v5 = vmul.f32 0.25, %v1500_v20  ;;  %1678 = vmax.xlane.f32.xlu1 %v1677_v4  ;;  %v2018_v20 = vld [vmem:[%s9649_s13 + $0x28] sm:$0xff] }
 0x45a   :  { %v6460_v7 = vpop.f32.mrf.mxu1 }
 0x45b   :  { %v1673_v8 = vadd.f32 %v8327_v3, %v1657_v5  ;;  %v2017_v5 = vld [vmem:[%s9649_s13 + $0x20] sm:$0xff] }
 0x45d   :  { %v1680_v9 = vsel %vm1676_vm5, %v1673_v8, -inf }
 0x45e   :  { %1681 = vmax.xlane.f32.xlu1 %v1680_v9 }
 0x475   :  { %v1576_v10 = vpop.f32.mrf.mxu1 }
 0x476   :  { %v1658_v11 = vmul.f32 0.25, %v1576_v10  ;;  %v2019_v10 = vld [vmem:[%s9649_s13 + $0x30] sm:$0xff] }
 0x477   :  { %v6465_v12 = vpop.f32.mrf.mxu1 }
 0x478   :  { %v1674_v13 = vadd.f32 %v8324_v61, %v1658_v11 }
 0x47a   :  { %v1652_v14 = vpop.f32.mrf.mxu1  ;;  %v1683_v15 = vsel %vm1676_vm5, %v1674_v13, -inf }
 0x47b   :  { %v1659_v16 = vmul.f32 0.25, %v1652_v14  ;;  %1684 = vmax.xlane.f32.xlu1 %v1683_v15 }
 0x47c   :  { %v6470_v17 = vpop.f32.mrf.mxu1 }
 0x47d   :  { %v1675_v18 = vadd.f32 %v8327_v3, %v1659_v16 }
 0x47f   :  { %v1686_v19 = vsel %vm1676_vm5, %v1675_v18, -inf }
 0x480   :  { %1687 = vmax.xlane.f32.xlu1 %v1686_v19 }
 0x4e2   :  { %v1679_v21 = vpop.xlane.xlu1 %1678 }
 0x4e3   :  { %v1689_v22 = vsub.f32 %v1672_v2, %v1679_v21  ;;  %v2015_v2 = vld [vmem:[%s9649_s13 + $0x10] sm:$0xff] }
 0x4e5   :  { %v1693_v23 = vmul.f32 1.442695, %v1689_v22  ;;  %v5147_v22 = vld [vmem:[%s9650_s14] ss:$0 sm:$0xff] }
 0x4e7   :  { %7158 = vpow2.f32 %v1693_v23  ;;  %v1682_v25 = vpop.xlane.xlu1 %1681 }
 0x4e8   :  { %v1690_v26 = vsub.f32 %v1673_v8, %v1682_v25  ;;  %v2020_v8 = vld [vmem:[%s9649_s13 + $0x38] sm:$0xff] }
 0x4ea   :  { %v1695_v27 = vmul.f32 1.442695, %v1690_v26 }
 0x4ec   :  { %7160 = vpow2.f32 %v1695_v27 }
 0x4f4   :  { %v7159_v28 = vpop.eup %7158 }
 0x4f5   :  { %v1701_v30 = vsel %vm1676_vm5, %v7159_v28, 0.0 }
 0x4f6   :  { %1702 = vadd.xlane.f32.xlu1 %v1701_v30 }
 0x4f9   :  { %v7161_v31 = vpop.eup %7160 }
 0x4fa   :  { %v1704_v32 = vsel %vm1676_vm5, %v7161_v31, 0.0 }
 0x4fb   :  { %1705 = vadd.xlane.f32.xlu1 %v1704_v32 }
 0x504   :  { %v1685_v33 = vpop.xlane.xlu1 %1684 }
 0x505   :  { %v1691_v34 = vsub.f32 %v1674_v13, %v1685_v33 }
 0x507   :  { %v1697_v35 = vmul.f32 1.442695, %v1691_v34  ;;  %v2383_v34 = vld [vmem:[%s9653_s17 + $0x78] sm:$0xff] }
 0x509   :  { %7162 = vpow2.f32 %v1697_v35  ;;  %v1688_v36 = vpop.xlane.xlu1 %1687  ;;  %v2382_v35 = vld [vmem:[%s9653_s17 + $0x70] sm:$0xff] }
 0x50a   :  { %v1692_v37 = vsub.f32 %v1675_v18, %v1688_v36 }
 0x50c   :  { %v1699_v38 = vmul.f32 1.442695, %v1692_v37 }
 0x50e   :  { %7164 = vpow2.f32 %v1699_v38 }
 0x516   :  { %v7163_v40 = vpop.eup %7162 }
 0x517   :  { %v1707_v41 = vsel %vm1676_vm5, %v7163_v40, 0.0 }
 0x518   :  { %1708 = vadd.xlane.f32.xlu1 %v1707_v41 }
 0x51b   :  { %v7165_v42 = vpop.eup %7164 }
 0x51c   :  { %v1710_v43 = vsel %vm1676_vm5, %v7165_v42, 0.0 }
 0x51d   :  { %1711 = vadd.xlane.f32.xlu0 %v1710_v43 }
 0x57f   :  { %v1703_v45 = vpop.xlane.xlu1 %1702 }
 0x580   :  { %7166 = vrcp.f32 %v1703_v45  ;;  %v2381_v45 = vld [vmem:[%s9653_s17 + $0x68] sm:$0xff] }
 0x584   :  { %v1706_v46 = vpop.xlane.xlu1 %1705 }
 0x585   :  { %7168 = vrcp.f32 %v1706_v46  ;;  %v2380_v46 = vld [vmem:[%s9653_s17 + $0x60] sm:$0xff] }
 0x58d   :  { %v7167_v49 = vpop.eup %7166 }
 0x58e   :  { %v1717_v51 = vmul.f32 %v7167_v49, %v7159_v28  ;;  %v2378_v49 = vld [vmem:[%s9653_s17 + $0x50] sm:$0xff] }
 0x590   :  { %6474 = vmatmul.mubr.msk.f32.vlgmr.msra.gmra.mxu1 %vm1676_vm5, %v1717_v51  ;;  %v2377_v51 = vld [vmem:[%s9653_s17 + $0x48] sm:$0xff] }
 0x591   :  { %6477 = vmatpush3.msra.mxu1 %v1208_v53  ;;  %6478 = vmatprep.mubr.msk.f32.mxu1 %vm7245_vm3, %v7243_v6  ;;  %v2376_v53 = vld [vmem:[%s9653_s17 + $0x40] sm:$0xff] }
 0x592   :  { %v7169_v55 = vpop.eup %7168  ;;  %6481 = vmatprep.subr.mxu1 %v7243_v6 }
 0x593   :  { %v1718_v56 = vmul.f32 %v7169_v55, %v7161_v31  ;;  %v2374_v55 = vld [vmem:[%s9653_s17 + $0x30] sm:$0xff] }
 0x595   :  { %6479 = vmatmul.mubr.msk.f32.vlgmr.msra.gmra.mxu1 %vm1676_vm5, %v1718_v56  ;;  %v2373_v56 = vld [vmem:[%s9653_s17 + $0x28] sm:$0xff] }
 0x596   :  { %6482 = vmatpush3.msra.mxu1 %v1278_v57  ;;  %6483 = vmatprep.mubr.msk.f32.mxu1 %vm7245_vm3, %v7243_v6  ;;  %v2372_v57 = vld [vmem:[%s9653_s17 + $0x20] sm:$0xff] }
 0x597   :  { %6486 = vmatprep.subr.mxu1 %v7243_v6 }
 0x5a1   :  { %v1709_v48 = vpop.xlane.xlu1 %1708 }
 0x5a2   :  { %7170 = vrcp.f32 %v1709_v48  ;;  %v2371_v48 = vld [vmem:[%s9653_s17 + $0x18] sm:$0xff] }
 0x5a6   :  { %v1712_v58 = vpop.xlane.xlu0 %1711 }
 0x5a7   :  { %7172 = vrcp.f32 %v1712_v58  ;;  %v2370_v58 = vld [vmem:[%s9653_s17 + $0x10] sm:$0xff] }
 0x5af   :  { %v7171_v60 = vpop.eup %7170 }
 0x5b0   :  { %v1719_v62 = vmul.f32 %v7171_v60, %v7163_v40  ;;  %v2368_v60 = vld [vmem:[%s9653_s17] sm:$0xff] }
 0x5b2   :  { %6484 = vmatmul.mubr.msk.f32.vlgmr.msra.gmra.mxu1 %vm1676_vm5, %v1719_v62 }
 0x5b3   :  { %6487 = vmatpush3.msra.mxu1 %v1348_v50  ;;  %6488 = vmatprep.mubr.msk.f32.mxu1 %vm7245_vm3, %v7243_v6 }
 0x5b4   :  { %v7173_v63 = vpop.eup %7172  ;;  %6498 = vmatprep.subr.mxu1 %v7243_v6 }
 0x5b5   :  { %v1720_v0 = vmul.f32 %v7173_v63, %v7165_v42 }
 0x5b7   :  { %6489 = vmatmul.mubr.msk.f32.vlgmr.msra.gmra.mxu1 %vm1676_vm5, %v1720_v0 }
 0x5b8   :  { %6502 = vmatprep.mubr.msk.f32.mxu1 %vm7245_vm3, %v7243_v6  ;;  %6499 = vmatpush3.msra.mxu1 %v2016_v52 }
 0x5b9   :  { %6500 = vmatprep.subr.mxu1 %v7243_v6 }
 0x5ba   :  { %6501 = vmatpush3.msra.mxu1 %v2015_v2 }
 0x5bb   :  { %6512 = vmatprep.subr.mxu1 %v7243_v6 }
 0x650   :  { %v1790_v4 = vpop.f32.mrf.mxu1 }
 0x651   :  { %6496 = vmatmul.mubr.msk.f32.vlgmr.msra.gmra.mxu0 %vm1351_vm4, %v1790_v4 }
 0x652   :  { %v6475_v7 = vpop.f32.mrf.mxu1  ;;  %6506 = vmatpush3.msra.mxu0 %v2018_v20  ;;  %6509 = vmatprep.mubr.msk.f32.mxu0 %vm7245_vm3, %v7243_v6  ;;  %v5148_v20 = vld [vmem:[%s9651_s15] ss:$0 sm:$0xff] }
 0x653   :  { %6507 = vmatprep.subr.mxu0 %v7243_v6 }
 0x654   :  { %6508 = vmatpush3.msra.mxu0 %v2017_v5  ;;  %v5149_v5 = vld [vmem:[%s9652_s16] ss:$0 sm:$0xff] }
 0x655   :  { %v1863_v9 = vpop.f32.mrf.mxu1  ;;  %6519 = vmatprep.subr.mxu0 %v2383_v34 }
 0x656   :  { %6503 = vmatmul.mubr.msk.f32.vlgmr.msra.gmra.mxu1 %vm1351_vm4, %v1863_v9 }
 0x657   :  { %v6480_v11 = vpop.f32.mrf.mxu1  ;;  %6513 = vmatpush3.msra.mxu1 %v2020_v8  ;;  %6516 = vmatprep.mubr.msk.f32.mxu1 %vm7245_vm3, %v7243_v6 }
 0x658   :  { %6514 = vmatprep.subr.mxu1 %v7243_v6 }
 0x659   :  { %6515 = vmatpush3.msra.mxu1 %v2019_v10 }
 0x672   :  { %v1936_v12 = vpop.f32.mrf.mxu1 }
 0x673   :  { %6510 = vmatmul.mubr.msk.f32.vlgmr.msra.gmra.mxu0 %vm1351_vm4, %v1936_v12 }
 0x674   :  { %v6485_v13 = vpop.f32.mrf.mxu1  ;;  %6520 = vmatpush3.msra.mxu0 %v2383_v34 }
 0x675   :  { %6521 = vmatprep.subr.mxu0 %v2382_v35  ;;  %v2499_v13 = vld [vmem:[%s9655_s19 + $0x78] sm:$0xff] }
 0x676   :  { %6522 = vmatpush3.msra.mxu0 %v2382_v35  ;;  %6554 = vmatprep.subr.mxu1 %v2499_v13 }
 0x677   :  { %v2009_v14 = vpop.f32.mrf.mxu1  ;;  %6523 = vmatprep.subr.mxu0 %v2381_v45 }
 0x678   :  { %6517 = vmatmul.mubr.msk.f32.vlgmr.msra.gmra.mxu1 %vm1351_vm4, %v2009_v14  ;;  %6524 = vmatpush3.msra.mxu0 %v2381_v45  ;;  %v2498_v14 = vld [vmem:[%s9655_s19 + $0x70] sm:$0xff] }
 0x679   :  { %v6490_v15 = vpop.f32.mrf.mxu1  ;;  %6525 = vmatprep.subr.mxu0 %v2380_v46  ;;  %6555 = vmatpush3.msra.mxu1 %v2499_v13 }
 0x67a   :  { %6526 = vmatpush3.msra.mxu0 %v2380_v46  ;;  %6556 = vmatprep.subr.mxu1 %v2498_v14  ;;  %v2497_v15 = vld [vmem:[%s9655_s19 + $0x68] sm:$0xff] }
 0x67b   :  { %6527 = vmatprep.subr.mxu0 %v2379_v47  ;;  %6557 = vmatpush3.msra.mxu1 %v2498_v14 }
 0x67c   :  { %6528 = vmatpush3.msra.mxu0 %v2379_v47  ;;  %6558 = vmatprep.subr.mxu1 %v2497_v15 }
 0x67d   :  { %6529 = vmatprep.subr.mxu0 %v2378_v49  ;;  %6559 = vmatpush3.msra.mxu1 %v2497_v15 }
 0x67e   :  { %6530 = vmatpush3.msra.mxu0 %v2378_v49 }
 0x67f   :  { %6531 = vmatprep.subr.mxu0 %v2377_v51 }
 0x680   :  { %6532 = vmatpush3.msra.mxu0 %v2377_v51 }
 0x681   :  { %6533 = vmatprep.subr.mxu0 %v2376_v53 }
 0x682   :  { %6534 = vmatpush3.msra.mxu0 %v2376_v53 }
 0x683   :  { %6535 = vmatprep.subr.mxu0 %v2375_v54 }
 0x684   :  { %6536 = vmatpush3.msra.mxu0 %v2375_v54 }
 0x685   :  { %6537 = vmatprep.subr.mxu0 %v2374_v55 }
 0x686   :  { %6538 = vmatpush3.msra.mxu0 %v2374_v55 }
 0x687   :  { %6539 = vmatprep.subr.mxu0 %v2373_v56 }
 0x688   :  { %6540 = vmatpush3.msra.mxu0 %v2373_v56 }
 0x689   :  { %6541 = vmatprep.subr.mxu0 %v2372_v57 }
 0x68a   :  { %6542 = vmatpush3.msra.mxu0 %v2372_v57  ;;  %v5151_v57 = vld [vmem:[%s9656_s20] ss:$0 sm:$0xff] }
 0x68b   :  { %6543 = vmatprep.subr.mxu0 %v2371_v48 }
 0x68c   :  { %6544 = vmatpush3.msra.mxu0 %v2371_v48 }
 0x68d   :  { %6545 = vmatprep.subr.mxu0 %v2370_v58 }
 0x68e   :  { %6546 = vmatpush3.msra.mxu0 %v2370_v58 }
 0x68f   :  { %6547 = vmatprep.subr.mxu0 %v2369_v59 }
 0x690   :  { %6548 = vmatpush3.msra.mxu0 %v2369_v59 }
 0x691   :  { %6549 = vmatprep.subr.mxu0 %v2368_v60 }
 0x692   :  { %6550 = vmatpush3.msra.mxu0 %v2368_v60 }
 0x693   :  { %6589 = vmatprep.subr.mxu0 %v7243_v6 }
 0x711   :  { %v2090_v16 = vpop.f32.mrf.mxu0 }
 0x713   :  { %v6497_v17 = vpop.f32.mrf.mxu0 }
 0x714   :  { %v2495_v17 = vld [vmem:[%s9655_s19 + $0x58] sm:$0xff] }
 0x716   :  { %v2163_v18 = vpop.f32.mrf.mxu1 }
 0x718   :  { %v6504_v19 = vpop.f32.mrf.mxu1 }
 0x719   :  { %v2493_v19 = vld [vmem:[%s9655_s19 + $0x48] sm:$0xff] }
 0x733   :  { %v2236_v21 = vpop.f32.mrf.mxu0 }
 0x734   :  { %v2313_v23 = vadd.f32 %v2236_v21, %v2090_v16  ;;  %v2496_v16 = vld [vmem:[%s9655_s19 + $0x60] sm:$0xff] }
 0x735   :  { %v6511_v25 = vpop.f32.mrf.mxu0  ;;  %6560 = vmatprep.subr.mxu1 %v2496_v16  ;;  %v2492_v21 = vld [vmem:[%s9655_s19 + $0x40] sm:$0xff] }
 0x736   :  { %v2322_v26 = vadd.f32 %v5147_v22, %v2313_v23  ;;  %6561 = vmatpush3.msra.mxu1 %v2496_v16  ;;  %v2490_v23 = vld [vmem:[%s9655_s19 + $0x30] sm:$0xff]  ;;  %v2489_v25 = vld [vmem:[%s9655_s19 + $0x28] sm:$0xff]  ;;  %v5166_v16 = vld [vmem:[%s9679_s4 + $0x260] sm:$0xff] }
 0x737   :  { %6562 = vmatprep.subr.mxu1 %v2495_v17 }
 0x738   :  { %v2309_v27 = vpop.f32.mrf.mxu1  ;;  %v2324_v28 = vadd.f32 %v2322_v26, %v7582_v24  ;;  %6563 = vmatpush3.msra.mxu1 %v2495_v17  ;;  %v2488_v26 = vld [vmem:[%s9655_s19 + $0x20] sm:$0xff]  ;;  %v5181_v17 = vld [vmem:[%s9679_s4 + $0x2d8] sm:$0xff] }
 0x739   :  { %v2314_v30 = vadd.f32 %v2309_v27, %v2163_v18  ;;  %v2494_v18 = vld [vmem:[%s9655_s19 + $0x50] sm:$0xff]  ;;  %v2487_v27 = vld [vmem:[%s9655_s19 + $0x18] sm:$0xff] }
 0x73a   :  { %v6518_v31 = vpop.f32.mrf.mxu1  ;;  %2328 = vadd.xlane.f32.xlu1 %v2324_v28  ;;  %6564 = vmatprep.subr.mxu1 %v2494_v18 }
 0x73b   :  { %v2323_v32 = vadd.f32 %v5147_v22, %v2314_v30  ;;  %6565 = vmatpush3.msra.mxu1 %v2494_v18  ;;  %v2491_v22 = vld [vmem:[%s9655_s19 + $0x38] sm:$0xff]  ;;  %v2485_v30 = vld [vmem:[%s9655_s19 + $0x8] sm:$0xff]  ;;  %v2484_v31 = vld [vmem:[%s9655_s19] sm:$0xff] }
 0x73c   :  { %6566 = vmatprep.subr.mxu1 %v2493_v19  ;;  %v5165_v18 = vld [vmem:[%s9679_s4 + $0x258] sm:$0xff] }
 0x73d   :  { %v2325_v33 = vadd.f32 %v2323_v32, %v7594_v29  ;;  %6567 = vmatpush3.msra.mxu1 %v2493_v19  ;;  %v5150_v32 = vld [vmem:[%s9683_s25] ss:$0 sm:$0xff]  ;;  %v5180_v19 = vld [vmem:[%s9679_s4 + $0x2d0] sm:$0xff] }
 0x73e   :  { %6568 = vmatprep.subr.mxu1 %v2492_v21 }
 0x73f   :  { %2330 = vadd.xlane.f32.xlu0 %v2325_v33  ;;  %6569 = vmatpush3.msra.mxu1 %v2492_v21  ;;  %v5164_v21 = vld [vmem:[%s9679_s4 + $0x250] sm:$0xff] }
 0x740   :  { %6570 = vmatprep.subr.mxu1 %v2491_v22 }
 0x741   :  { %6571 = vmatpush3.msra.mxu1 %v2491_v22  ;;  %v5179_v22 = vld [vmem:[%s9679_s4 + $0x2c8] sm:$0xff] }
 0x742   :  { %6572 = vmatprep.subr.mxu1 %v2490_v23 }
 0x743   :  { %6573 = vmatpush3.msra.mxu1 %v2490_v23  ;;  %v5163_v23 = vld [vmem:[%s9679_s4 + $0x248] sm:$0xff] }
 0x744   :  { %6574 = vmatprep.subr.mxu1 %v2489_v25 }
 0x745   :  { %6575 = vmatpush3.msra.mxu1 %v2489_v25  ;;  %v5178_v25 = vld [vmem:[%s9679_s4 + $0x2c0] sm:$0xff] }
 0x746   :  { %6576 = vmatprep.subr.mxu1 %v2488_v26 }
 0x747   :  { %6577 = vmatpush3.msra.mxu1 %v2488_v26  ;;  %v5162_v26 = vld [vmem:[%s9679_s4 + $0x240] sm:$0xff] }
 0x748   :  { %6578 = vmatprep.subr.mxu1 %v2487_v27 }
 0x749   :  { %6579 = vmatpush3.msra.mxu1 %v2487_v27  ;;  %v5177_v27 = vld [vmem:[%s9679_s4 + $0x2b8] sm:$0xff] }
 0x7c3   :  { %v2329_v24 = vpop.xlane.xlu1 %2328 }
 0x7c4   :  { %v2332_v36 = vmul.f32 0.03125, %v2329_v24 }
 0x7c6   :  { %v2334_v37 = vsub.f32 %v2324_v28, %v2332_v36  ;;  %v2486_v28 = vld [vmem:[%s9655_s19 + $0x10] sm:$0xff] }
 0x7c7   :  { %6580 = vmatprep.subr.mxu1 %v2486_v28 }
 0x7c8   :  { %v2331_v38 = vpop.xlane.xlu0 %2330  ;;  %v2336_v40 = vmul.f32 %v7455_v39, %v2334_v37  ;;  %6581 = vmatpush3.msra.mxu1 %v2486_v28  ;;  %v5161_v28 = vld [vmem:[%s9679_s4 + $0x238] sm:$0xff] }
 0x7c9   :  { %v2333_v29 = vmul.f32 0.03125, %v2331_v38  ;;  %6582 = vmatprep.subr.mxu1 %v2485_v30 }
 0x7ca   :  { %v2338_v41 = vmul.f32 %v2336_v40, %v2336_v40  ;;  %6583 = vmatpush3.msra.mxu1 %v2485_v30  ;;  %v5176_v30 = vld [vmem:[%s9679_s4 + $0x2b0] sm:$0xff] }
 0x7cb   :  { %v2335_v42 = vsub.f32 %v2325_v33, %v2333_v29  ;;  %6584 = vmatprep.subr.mxu1 %v2484_v31 }
 0x7cc   :  { %2340 = vadd.xlane.f32.xlu1 %v2338_v41  ;;  %6585 = vmatpush3.msra.mxu1 %v2484_v31  ;;  %v5160_v31 = vld [vmem:[%s9679_s4 + $0x230] sm:$0xff] }
 0x7cd   :  { %v2337_v43 = vmul.f32 %v7455_v39, %v2335_v42  ;;  %6624 = vmatprep.subr.mxu1 %v7243_v6 }
 0x7cf   :  { %v2339_v44 = vmul.f32 %v2337_v43, %v2337_v43 }
 0x7d1   :  { %2342 = vadd.xlane.f32.xlu0 %v2339_v44 }
 0x855   :  { %v2341_v62 = vpop.xlane.xlu1 %2340 }
 0x856   :  { %v2344_v50 = vmul.f32 0.03125, %v2341_v62 }
 0x858   :  { %v2346_v63 = vadd.f32 1e-12, %v2344_v50 }
 0x85a   :  { %7174 = vrsqrt.f32 %v2346_v63  ;;  %v2343_v0 = vpop.xlane.xlu0 %2342  ;;  %v5185_v63 = vld [vmem:[%s9679_s4 + $0x2f8] sm:$0xff] }
 0x85b   :  { %v2345_v1 = vmul.f32 0.03125, %v2343_v0  ;;  %v5169_v0 = vld [vmem:[%s9679_s4 + $0x278] sm:$0xff] }
 0x85d   :  { %v2347_v52 = vadd.f32 1e-12, %v2345_v1  ;;  %v5184_v1 = vld [vmem:[%s9679_s4 + $0x2f0] sm:$0xff] }
 0x85f   :  { %7176 = vrsqrt.f32 %v2347_v52  ;;  %v5168_v52 = vld [vmem:[%s9679_s4 + $0x270] sm:$0xff] }
 0x867   :  { %v7175_v2 = vpop.eup %7174 }
 0x868   :  { %v2350_v4 = vmul.f32 %v7175_v2, %v2336_v40  ;;  %v5183_v2 = vld [vmem:[%s9679_s4 + $0x2e8] sm:$0xff] }
 0x86a   :  { %v2358_v7 = vmul.f32 %v5148_v20, %v2350_v4  ;;  %v5182_v4 = vld [vmem:[%s9679_s4 + $0x2e0] sm:$0xff] }
 0x86c   :  { %v7177_v8 = vpop.eup %7176  ;;  %v8467_v9 = vadd.f32 %v5149_v5, %v2358_v7 }
 0x86d   :  { %v2351_v10 = vmul.f32 %v7177_v8, %v2337_v43 }
 0x86e   :  { %6551 = vmatprep.mubr.f32.mxu0 %v8467_v9 }
 0x86f   :  { %v2359_v11 = vmul.f32 %v5148_v20, %v2351_v10  ;;  %v5167_v20 = vld [vmem:[%s9679_s4 + $0x268] sm:$0xff] }
 0x871   :  { %v8470_v12 = vadd.f32 %v5149_v5, %v2359_v11 }
 0x873   :  { %6552 = vmatmul.mubr.f32.vlgmr.msra.gmra.mxu0 %v8470_v12 }
 0x874   :  { %6621 = vmatprep.mubr.msk.f32.mxu0 %vm7245_vm3, %v7243_v6  ;;  %6590 = vmatpush3.msra.mxu0 %v5169_v0  ;;  %v5200_v0 = vld [vmem:[%s9679_s4 + $0x370] sm:$0xff] }
 0x875   :  { %6591 = vmatprep.subr.mxu0 %v7243_v6 }
 0x876   :  { %6592 = vmatpush3.msra.mxu0 %v5168_v52  ;;  %v5199_v52 = vld [vmem:[%s9679_s4 + $0x368] sm:$0xff] }
 0x877   :  { %6593 = vmatprep.subr.mxu0 %v7243_v6 }
 0x878   :  { %6594 = vmatpush3.msra.mxu0 %v5167_v20  ;;  %v5198_v20 = vld [vmem:[%s9679_s4 + $0x360] sm:$0xff] }
 0x879   :  { %6595 = vmatprep.subr.mxu0 %v7243_v6 }
 0x87a   :  { %6596 = vmatpush3.msra.mxu0 %v5166_v16  ;;  %v5192_v16 = vld [vmem:[%s9679_s4 + $0x330] sm:$0xff] }
 0x87b   :  { %6597 = vmatprep.subr.mxu0 %v7243_v6 }
 0x87c   :  { %6598 = vmatpush3.msra.mxu0 %v5165_v18  ;;  %v5191_v18 = vld [vmem:[%s9679_s4 + $0x328] sm:$0xff] }
 0x87d   :  { %6599 = vmatprep.subr.mxu0 %v7243_v6 }
 0x87e   :  { %6600 = vmatpush3.msra.mxu0 %v5164_v21  ;;  %v5190_v21 = vld [vmem:[%s9679_s4 + $0x320] sm:$0xff] }
 0x87f   :  { %6601 = vmatprep.subr.mxu0 %v7243_v6 }
 0x880   :  { %6602 = vmatpush3.msra.mxu0 %v5163_v23  ;;  %v5189_v23 = vld [vmem:[%s9679_s4 + $0x318] sm:$0xff] }
 0x881   :  { %6603 = vmatprep.subr.mxu0 %v7243_v6 }
 0x882   :  { %6604 = vmatpush3.msra.mxu0 %v5162_v26  ;;  %v5188_v26 = vld [vmem:[%s9679_s4 + $0x310] sm:$0xff] }
 0x883   :  { %6605 = vmatprep.subr.mxu0 %v7243_v6 }
 0x884   :  { %6606 = vmatpush3.msra.mxu0 %v5161_v28  ;;  %v5187_v28 = vld [vmem:[%s9679_s4 + $0x308] sm:$0xff] }
 0x885   :  { %6607 = vmatprep.subr.mxu0 %v7243_v6 }
 0x886   :  { %6608 = vmatpush3.msra.mxu0 %v5160_v31  ;;  %v5186_v31 = vld [vmem:[%s9679_s4 + $0x300] sm:$0xff] }
 0x887   :  { %6609 = vmatprep.subr.mxu0 %v7243_v6 }
 0x933   :  { %v6553_v33 = vpop.f32.mrf.mxu0 }
 0x934   :  { %v2463_v34 = vadd.f32 %v6553_v33, %v5150_v32  ;;  %v5159_v33 = vld [vmem:[%s9679_s4 + $0x228] sm:$0xff] }
 0x935   :  { %v2457_v35 = vpop.f32.mrf.mxu0  ;;  %6610 = vmatpush3.msra.mxu0 %v5159_v33  ;;  %v5241_v33 = vld [vmem:[%s9644_s8 + $0x278] sm:$0xff] }
 0x936   :  { %v2467_v24 = vmul.f32 %v2463_v34, %v2463_v34  ;;  %v2458_v36 = vadd.f32 %v5150_v32, %v2457_v35  ;;  %v5175_v32 = vld [vmem:[%s9679_s4 + $0x2a8] sm:$0xff]  ;;  %6611 = vmatprep.subr.mxu0 %v7243_v6  ;;  %v5158_v35 = vld [vmem:[%s9679_s4 + $0x220] sm:$0xff] }
 0x937   :  { %6612 = vmatpush3.msra.mxu0 %v5158_v35  ;;  %v5240_v35 = vld [vmem:[%s9644_s8 + $0x270] sm:$0xff] }
 0x938   :  { %v2469_v37 = vmul.f32 %v2467_v24, %v2463_v34  ;;  %v2466_v38 = vmul.f32 %v2458_v36, %v2458_v36  ;;  %v5173_v24 = vld [vmem:[%s9679_s4 + $0x298] sm:$0xff]  ;;  %6613 = vmatprep.subr.mxu0 %v7243_v6 }
 0x93a   :  { %v2471_v40 = vmul.f32 0.044715, %v2469_v37  ;;  %v2468_v29 = vmul.f32 %v2466_v38, %v2458_v36  ;;  %v5172_v37 = vld [vmem:[%s9679_s4 + $0x290] sm:$0xff] }
 0x93b   :  { %v5156_v38 = vld [vmem:[%s9679_s4 + $0x210] sm:$0xff] }
 0x93c   :  { %v2473_v41 = vadd.f32 %v2471_v40, %v2463_v34  ;;  %v2470_v42 = vmul.f32 0.044715, %v2468_v29  ;;  %v5171_v40 = vld [vmem:[%s9679_s4 + $0x288] sm:$0xff] }
 0x93d   :  { %v5155_v29 = vld [vmem:[%s9679_s4 + $0x208] sm:$0xff] }
 0x93e   :  { %v2475_v43 = vmul.f32 0.7978846, %v2473_v41  ;;  %v2472_v44 = vadd.f32 %v2470_v42, %v2458_v36  ;;  %v5170_v41 = vld [vmem:[%s9679_s4 + $0x280] sm:$0xff] }
 0x93f   :  { %v5154_v42 = vld [vmem:[%s9679_s4 + $0x200] sm:$0xff] }
 0x940   :  { %7178 = vtanh.f32 %v2475_v43  ;;  %v2474_v45 = vmul.f32 0.7978846, %v2472_v44 }
 0x942   :  { %7180 = vtanh.f32 %v2474_v45 }
 0x94d   :  { %v7179_v46 = vpop.eup %7178 }
 0x94e   :  { %v2479_v47 = vadd.f32 1.0, %v7179_v46 }
 0x94f   :  { %v7181_v49 = vpop.eup %7180 }
 0x950   :  { %v2478_v51 = vadd.f32 1.0, %v7181_v49  ;;  %v2481_v53 = vmul.f32 0.5, %v2479_v47 }
 0x952   :  { %v2480_v54 = vmul.f32 0.5, %v2478_v51  ;;  %v2483_v56 = vmul.f32 %v2481_v53, %v2463_v34  ;;  %v5174_v34 = vld [vmem:[%s9679_s4 + $0x2a0] sm:$0xff] }
 0x953   :  { %v5152_v53 = vld [vmem:[%s9657_s21] ss:$0 sm:$0xff] }
 0x954   :  { %v2482_v55 = vmul.f32 %v2480_v54, %v2458_v36  ;;  %v5157_v36 = vld [vmem:[%s9679_s4 + $0x218] sm:$0xff] }
 0x955   :  { %6614 = vmatpush3.msra.mxu0 %v5157_v36  ;;  %v5239_v36 = vld [vmem:[%s9644_s8 + $0x268] sm:$0xff] }
 0x956   :  { %6586 = vmatprep.mubr.f32.mxu1 %v2482_v55  ;;  %6615 = vmatprep.subr.mxu0 %v7243_v6 }
 0x957   :  { %6587 = vmatmul.mubr.f32.vlgmr.msra.gmra.mxu1 %v2483_v56  ;;  %6616 = vmatpush3.msra.mxu0 %v5156_v38  ;;  %v5153_v56 = vld [vmem:[%s9658_s22] ss:$0 sm:$0xff] }
 0x958   :  { %6656 = vmatprep.mubr.msk.f32.mxu1 %vm7245_vm3, %v7243_v6  ;;  %6625 = vmatpush3.msra.mxu1 %v5185_v63  ;;  %v5216_v63 = vld [vmem:[%s9679_s4 + $0x3f0] sm:$0xff]  ;;  %v5238_v38 = vld [vmem:[%s9644_s8 + $0x260] sm:$0xff] }
 0x959   :  { %6626 = vmatprep.subr.mxu1 %v7243_v6  ;;  %6617 = vmatprep.subr.mxu0 %v7243_v6 }
 0x95a   :  { %6627 = vmatpush3.msra.mxu1 %v5184_v1  ;;  %6618 = vmatpush3.msra.mxu0 %v5155_v29  ;;  %v5215_v1 = vld [vmem:[%s9679_s4 + $0x3e8] sm:$0xff]  ;;  %v5237_v29 = vld [vmem:[%s9644_s8 + $0x258] sm:$0xff] }
 0x95b   :  { %6628 = vmatprep.subr.mxu1 %v7243_v6  ;;  %6619 = vmatprep.subr.mxu0 %v7243_v6 }
 0x95c   :  { %6629 = vmatpush3.msra.mxu1 %v5183_v2  ;;  %6620 = vmatpush3.msra.mxu0 %v5154_v42  ;;  %v5214_v2 = vld [vmem:[%s9679_s4 + $0x3e0] sm:$0xff]  ;;  %v5236_v42 = vld [vmem:[%s9644_s8 + $0x250] sm:$0xff] }
 0x95d   :  { %6630 = vmatprep.subr.mxu1 %v7243_v6  ;;  %6659 = vmatprep.subr.mxu0 %v7243_v6 }
 0x95e   :  { %6631 = vmatpush3.msra.mxu1 %v5182_v4  ;;  %v5213_v4 = vld [vmem:[%s9679_s4 + $0x3d8] sm:$0xff] }
 0x95f   :  { %6632 = vmatprep.subr.mxu1 %v7243_v6 }
 0x960   :  { %6633 = vmatpush3.msra.mxu1 %v5181_v17  ;;  %v5207_v17 = vld [vmem:[%s9679_s4 + $0x3a8] sm:$0xff] }
 0x961   :  { %6634 = vmatprep.subr.mxu1 %v7243_v6 }
 0x962   :  { %6635 = vmatpush3.msra.mxu1 %v5180_v19  ;;  %v5206_v19 = vld [vmem:[%s9679_s4 + $0x3a0] sm:$0xff] }
 0x963   :  { %6636 = vmatprep.subr.mxu1 %v7243_v6 }
 0x964   :  { %6637 = vmatpush3.msra.mxu1 %v5179_v22  ;;  %v5205_v22 = vld [vmem:[%s9679_s4 + $0x398] sm:$0xff] }
 0x965   :  { %6638 = vmatprep.subr.mxu1 %v7243_v6 }
 0x966   :  { %6639 = vmatpush3.msra.mxu1 %v5178_v25  ;;  %v5204_v25 = vld [vmem:[%s9679_s4 + $0x390] sm:$0xff] }
 0x967   :  { %6640 = vmatprep.subr.mxu1 %v7243_v6 }
 0x968   :  { %6641 = vmatpush3.msra.mxu1 %v5177_v27  ;;  %v5203_v27 = vld [vmem:[%s9679_s4 + $0x388] sm:$0xff] }
 0x969   :  { %6642 = vmatprep.subr.mxu1 %v7243_v6 }
 0x96a   :  { %6643 = vmatpush3.msra.mxu1 %v5176_v30  ;;  %v5202_v30 = vld [vmem:[%s9679_s4 + $0x380] sm:$0xff] }
 0x96b   :  { %6644 = vmatprep.subr.mxu1 %v7243_v6 }
 0x96c   :  { %6645 = vmatpush3.msra.mxu1 %v5175_v32  ;;  %v5257_v32 = vld [vmem:[%s9644_s8 + $0x2f8] sm:$0xff] }
 0x96d   :  { %6646 = vmatprep.subr.mxu1 %v7243_v6 }
 0x96e   :  { %6647 = vmatpush3.msra.mxu1 %v5174_v34  ;;  %v5256_v34 = vld [vmem:[%s9644_s8 + $0x2f0] sm:$0xff] }
 0x96f   :  { %6648 = vmatprep.subr.mxu1 %v7243_v6 }
 0x970   :  { %6649 = vmatpush3.msra.mxu1 %v5173_v24  ;;  %v5255_v24 = vld [vmem:[%s9644_s8 + $0x2e8] sm:$0xff] }
 0x971   :  { %6650 = vmatprep.subr.mxu1 %v7243_v6 }
 0x972   :  { %6651 = vmatpush3.msra.mxu1 %v5172_v37  ;;  %v5254_v37 = vld [vmem:[%s9644_s8 + $0x2e0] sm:$0xff] }
 0x973   :  { %6652 = vmatprep.subr.mxu1 %v7243_v6 }
 0x974   :  { %6653 = vmatpush3.msra.mxu1 %v5171_v40  ;;  %v5253_v40 = vld [vmem:[%s9644_s8 + $0x2d8] sm:$0xff] }
 0x975   :  { %6654 = vmatprep.subr.mxu1 %v7243_v6 }
 0x976   :  { %6655 = vmatpush3.msra.mxu1 %v5170_v41  ;;  %v5252_v41 = vld [vmem:[%s9644_s8 + $0x2d0] sm:$0xff] }
 0x977   :  { %6694 = vmatprep.subr.mxu1 %v7243_v6 }
 0xa17   :  { %v6588_v48 = vpop.f32.mrf.mxu1 }
 0xa18   :  { %v2579_v58 = vadd.f32 %v6588_v48, %v5151_v57 }
 0xa19   :  { %v2573_v59 = vpop.f32.mrf.mxu1 }
 0xa1a   :  { %v2574_v60 = vadd.f32 %v5151_v57, %v2573_v59  ;;  %v2583_v62 = vadd.f32 %v2579_v58, %v8470_v12 }
 0xa1c   :  { %2588 = vadd.xlane.f32.xlu0 %v2583_v62  ;;  %v2582_v50 = vadd.f32 %v2574_v60, %v8467_v9  ;;  %v5217_v60 = vld [vmem:[%s9679_s4 + $0x3f8] sm:$0xff] }
 0xa1e   :  { %2586 = vadd.xlane.f32.xlu1 %v2582_v50 }
 0xaa5   :  { %v2589_v5 = vpop.xlane.xlu0 %2588 }
 0xaa6   :  { %v2591_v7 = vmul.f32 0.03125, %v2589_v5  ;;  %v5197_v5 = vld [vmem:[%s9679_s4 + $0x358] sm:$0xff] }
 0xaa7   :  { %v2587_v8 = vpop.xlane.xlu1 %2586 }
 0xaa8   :  { %v2593_v9 = vsub.f32 %v2583_v62, %v2591_v7  ;;  %v2590_v10 = vmul.f32 0.03125, %v2587_v8  ;;  %v5212_v7 = vld [vmem:[%s9679_s4 + $0x3d0] sm:$0xff] }
 0xaa9   :  { %v5196_v8 = vld [vmem:[%s9679_s4 + $0x350] sm:$0xff] }
 0xaaa   :  { %v2592_v11 = vsub.f32 %v2582_v50, %v2590_v10  ;;  %v8563_v12 = vmul.f32 %v7455_v39, %v2593_v9  ;;  %v5201_v50 = vld [vmem:[%s9679_s4 + $0x378] sm:$0xff]  ;;  %v5211_v9 = vld [vmem:[%s9679_s4 + $0x3c8] sm:$0xff] }
 0xaab   :  { %v5195_v10 = vld [vmem:[%s9679_s4 + $0x348] sm:$0xff] }
 0xaac   :  { %v2597_v13 = vmul.f32 %v8563_v12, %v8563_v12  ;;  %v8568_v14 = vmul.f32 %v7455_v39, %v2592_v11  ;;  %v5210_v11 = vld [vmem:[%s9679_s4 + $0x3c0] sm:$0xff] }
 0xaae   :  { %2600 = vadd.xlane.f32.xlu0 %v2597_v13  ;;  %v2596_v15 = vmul.f32 %v8568_v14, %v8568_v14  ;;  %v5209_v13 = vld [vmem:[%s9679_s4 + $0x3b8] sm:$0xff] }
 0xab0   :  { %2598 = vadd.xlane.f32.xlu1 %v2596_v15  ;;  %v5208_v15 = vld [vmem:[%s9679_s4 + $0x3b0] sm:$0xff] }
 0xb37   :  { %v2601_v43 = vpop.xlane.xlu0 %2600 }
 0xb38   :  { %v2603_v44 = vmul.f32 0.03125, %v2601_v43  ;;  %v5251_v43 = vld [vmem:[%s9644_s8 + $0x2c8] sm:$0xff] }
 0xb39   :  { %v2599_v45 = vpop.xlane.xlu1 %2598 }
 0xb3a   :  { %v2605_v46 = vadd.f32 1e-12, %v2603_v44  ;;  %v2602_v47 = vmul.f32 0.03125, %v2599_v45  ;;  %v5235_v44 = vld [vmem:[%s9644_s8 + $0x248] sm:$0xff]  ;;  %v5250_v45 = vld [vmem:[%s9644_s8 + $0x2c0] sm:$0xff] }
 0xb3c   :  { %7182 = vrsqrt.f32 %v2605_v46  ;;  %v2604_v49 = vadd.f32 1e-12, %v2602_v47  ;;  %v5234_v46 = vld [vmem:[%s9644_s8 + $0x240] sm:$0xff]  ;;  %v5249_v47 = vld [vmem:[%s9644_s8 + $0x2b8] sm:$0xff] }
 0xb3e   :  { %7184 = vrsqrt.f32 %v2604_v49  ;;  %v5233_v49 = vld [vmem:[%s9644_s8 + $0x238] sm:$0xff] }
 0xb49   :  { %v7183_v51 = vpop.eup %7182 }
 0xb4a   :  { %v2609_v54 = vmul.f32 %v7183_v51, %v8563_v12  ;;  %v5194_v12 = vld [vmem:[%s9679_s4 + $0x340] sm:$0xff]  ;;  %v5248_v51 = vld [vmem:[%s9644_s8 + $0x2b0] sm:$0xff] }
 0xb4b   :  { %v7185_v55 = vpop.eup %7184 }
 0xb4c   :  { %v2617_v57 = vmul.f32 %v5152_v53, %v2609_v54  ;;  %v2608_v48 = vmul.f32 %v7185_v55, %v8568_v14  ;;  %v5193_v14 = vld [vmem:[%s9679_s4 + $0x338] sm:$0xff]  ;;  %v5247_v54 = vld [vmem:[%s9644_s8 + $0x2a8] sm:$0xff] }
 0xb4d   :  { %v5231_v55 = vld [vmem:[%s9644_s8 + $0x228] sm:$0xff] }
 0xb4e   :  { %v8680_v58 = vadd.f32 %v5153_v56, %v2617_v57  ;;  %v2616_v59 = vmul.f32 %v5152_v53, %v2608_v48  ;;  %v5232_v53 = vld [vmem:[%s9644_s8 + $0x230] sm:$0xff]  ;;  %v5230_v57 = vld [vmem:[%s9644_s8 + $0x220] sm:$0xff]  ;;  %v5245_v48 = vld [vmem:[%s9644_s8 + $0x298] sm:$0xff] }
 0xb50   :  { %v8685_v62 = vadd.f32 %v5153_v56, %v2616_v59  ;;  %6657 = vmatmul.mubr.f32.vlgmr.msra.gmra.mxu1 %v8680_v58  ;;  %v5246_v56 = vld [vmem:[%s9644_s8 + $0x2a0] sm:$0xff]  ;;  %v5229_v59 = vld [vmem:[%s9644_s8 + $0x218] sm:$0xff] }
 0xb51   :  { %6695 = vmatpush3.msra.mxu1 %v5217_v60  ;;  %6726 = vmatprep.mubr.msk.f32.mxu1 %vm7245_vm3, %v7243_v6  ;;  %v5244_v60 = vld [vmem:[%s9644_s8 + $0x290] sm:$0xff] }
 0xb52   :  { %6696 = vmatprep.subr.mxu1 %v7243_v6  ;;  %6622 = vmatmul.mubr.f32.vlgmr.msra.gmra.mxu0 %v8685_v62 }
 0xb53   :  { %6660 = vmatpush3.msra.mxu0 %v5201_v50  ;;  %6697 = vmatpush3.msra.mxu1 %v5216_v63  ;;  %v5228_v50 = vld [vmem:[%s9644_s8 + $0x210] sm:$0xff]  ;;  %v5243_v63 = vld [vmem:[%s9644_s8 + $0x288] sm:$0xff] }
 0xb54   :  { %6661 = vmatprep.subr.mxu0 %v7243_v6  ;;  %6698 = vmatprep.subr.mxu1 %v7243_v6 }
 0xb55   :  { %6662 = vmatpush3.msra.mxu0 %v5200_v0  ;;  %6699 = vmatpush3.msra.mxu1 %v5215_v1  ;;  %v5227_v0 = vld [vmem:[%s9644_s8 + $0x208] sm:$0xff]  ;;  %v5242_v1 = vld [vmem:[%s9644_s8 + $0x280] sm:$0xff] }
 0xb56   :  { %6663 = vmatprep.subr.mxu0 %v7243_v6  ;;  %6700 = vmatprep.subr.mxu1 %v7243_v6 }
 0xb57   :  { %6664 = vmatpush3.msra.mxu0 %v5199_v52  ;;  %6701 = vmatpush3.msra.mxu1 %v5214_v2  ;;  %v5226_v52 = vld [vmem:[%s9644_s8 + $0x200] sm:$0xff]  ;;  %v5289_v2 = vld [vmem:[%s9644_s8 + $0x3f8] sm:$0xff] }
 0xb58   :  { %6665 = vmatprep.subr.mxu0 %v7243_v6  ;;  %6702 = vmatprep.subr.mxu1 %v7243_v6 }
 0xb59   :  { %6666 = vmatpush3.msra.mxu0 %v5198_v20  ;;  %6703 = vmatpush3.msra.mxu1 %v5213_v4  ;;  %v5273_v20 = vld [vmem:[%s9644_s8 + $0x378] sm:$0xff]  ;;  %v5288_v4 = vld [vmem:[%s9644_s8 + $0x3f0] sm:$0xff] }
 0xb5a   :  { %6667 = vmatprep.subr.mxu0 %v7243_v6  ;;  %6704 = vmatprep.subr.mxu1 %v7243_v6 }
 0xb5b   :  { %6668 = vmatpush3.msra.mxu0 %v5197_v5  ;;  %6705 = vmatpush3.msra.mxu1 %v5212_v7  ;;  %v5272_v5 = vld [vmem:[%s9644_s8 + $0x370] sm:$0xff]  ;;  %v5287_v7 = vld [vmem:[%s9644_s8 + $0x3e8] sm:$0xff] }
 0xb5c   :  { %6669 = vmatprep.subr.mxu0 %v7243_v6  ;;  %6706 = vmatprep.subr.mxu1 %v7243_v6 }
 0xb5d   :  { %6670 = vmatpush3.msra.mxu0 %v5196_v8  ;;  %6707 = vmatpush3.msra.mxu1 %v5211_v9  ;;  %v5271_v8 = vld [vmem:[%s9644_s8 + $0x368] sm:$0xff]  ;;  %v5286_v9 = vld [vmem:[%s9644_s8 + $0x3e0] sm:$0xff] }
 0xb5e   :  { %6671 = vmatprep.subr.mxu0 %v7243_v6  ;;  %6708 = vmatprep.subr.mxu1 %v7243_v6 }
 0xb5f   :  { %6672 = vmatpush3.msra.mxu0 %v5195_v10  ;;  %6709 = vmatpush3.msra.mxu1 %v5210_v11  ;;  %v5270_v10 = vld [vmem:[%s9644_s8 + $0x360] sm:$0xff]  ;;  %v5285_v11 = vld [vmem:[%s9644_s8 + $0x3d8] sm:$0xff] }
 0xb60   :  { %6673 = vmatprep.subr.mxu0 %v7243_v6  ;;  %6710 = vmatprep.subr.mxu1 %v7243_v6 }
 0xb61   :  { %6674 = vmatpush3.msra.mxu0 %v5194_v12  ;;  %6711 = vmatpush3.msra.mxu1 %v5209_v13  ;;  %v5269_v12 = vld [vmem:[%s9644_s8 + $0x358] sm:$0xff]  ;;  %v5284_v13 = vld [vmem:[%s9644_s8 + $0x3d0] sm:$0xff] }
 0xb62   :  { %6675 = vmatprep.subr.mxu0 %v7243_v6  ;;  %6712 = vmatprep.subr.mxu1 %v7243_v6 }
 0xb63   :  { %6676 = vmatpush3.msra.mxu0 %v5193_v14  ;;  %6713 = vmatpush3.msra.mxu1 %v5208_v15  ;;  %v5268_v14 = vld [vmem:[%s9644_s8 + $0x350] sm:$0xff]  ;;  %v5283_v15 = vld [vmem:[%s9644_s8 + $0x3c8] sm:$0xff] }
 0xb64   :  { %6677 = vmatprep.subr.mxu0 %v7243_v6  ;;  %6714 = vmatprep.subr.mxu1 %v7243_v6 }
 0xb65   :  { %6678 = vmatpush3.msra.mxu0 %v5192_v16  ;;  %6715 = vmatpush3.msra.mxu1 %v5207_v17  ;;  %v5267_v16 = vld [vmem:[%s9644_s8 + $0x348] sm:$0xff]  ;;  %v5282_v17 = vld [vmem:[%s9644_s8 + $0x3c0] sm:$0xff] }
 0xb66   :  { %6679 = vmatprep.subr.mxu0 %v7243_v6  ;;  %6716 = vmatprep.subr.mxu1 %v7243_v6 }
 0xb67   :  { %6680 = vmatpush3.msra.mxu0 %v5191_v18  ;;  %6717 = vmatpush3.msra.mxu1 %v5206_v19  ;;  %v5266_v18 = vld [vmem:[%s9644_s8 + $0x340] sm:$0xff]  ;;  %v5281_v19 = vld [vmem:[%s9644_s8 + $0x3b8] sm:$0xff] }
 0xb68   :  { %6681 = vmatprep.subr.mxu0 %v7243_v6  ;;  %6718 = vmatprep.subr.mxu1 %v7243_v6 }
 0xb69   :  { %6682 = vmatpush3.msra.mxu0 %v5190_v21  ;;  %6719 = vmatpush3.msra.mxu1 %v5205_v22  ;;  %v5265_v21 = vld [vmem:[%s9644_s8 + $0x338] sm:$0xff]  ;;  %v5280_v22 = vld [vmem:[%s9644_s8 + $0x3b0] sm:$0xff] }
 0xb6a   :  { %6683 = vmatprep.subr.mxu0 %v7243_v6  ;;  %6720 = vmatprep.subr.mxu1 %v7243_v6 }
 0xb6b   :  { %6684 = vmatpush3.msra.mxu0 %v5189_v23  ;;  %6721 = vmatpush3.msra.mxu1 %v5204_v25  ;;  %v5264_v23 = vld [vmem:[%s9644_s8 + $0x330] sm:$0xff]  ;;  %v5279_v25 = vld [vmem:[%s9644_s8 + $0x3a8] sm:$0xff] }
 0xb6c   :  { %6685 = vmatprep.subr.mxu0 %v7243_v6  ;;  %6722 = vmatprep.subr.mxu1 %v7243_v6 }
 0xb6d   :  { %6686 = vmatpush3.msra.mxu0 %v5188_v26  ;;  %6723 = vmatpush3.msra.mxu1 %v5203_v27  ;;  %v5263_v26 = vld [vmem:[%s9644_s8 + $0x328] sm:$0xff]  ;;  %v5278_v27 = vld [vmem:[%s9644_s8 + $0x3a0] sm:$0xff] }
 0xb6e   :  { %6687 = vmatprep.subr.mxu0 %v7243_v6  ;;  %6724 = vmatprep.subr.mxu1 %v7243_v6 }
 0xb6f   :  { %6688 = vmatpush3.msra.mxu0 %v5187_v28  ;;  %6725 = vmatpush3.msra.mxu1 %v5202_v30  ;;  %v5262_v28 = vld [vmem:[%s9644_s8 + $0x320] sm:$0xff]  ;;  %v5277_v30 = vld [vmem:[%s9644_s8 + $0x398] sm:$0xff] }
 0xb70   :  { %6689 = vmatprep.subr.mxu0 %v7243_v6  ;;  %6727 = vmatmul.mubr.f32.vlgmr.msra.gmra.mxu1 %v8680_v58 }
 0xb71   :  { %6764 = vmatprep.subr.mxu1 %v7243_v6  ;;  %6690 = vmatpush3.msra.mxu0 %v5186_v31  ;;  %v5261_v31 = vld [vmem:[%s9644_s8 + $0x318] sm:$0xff] }
 0xb72   :  { %6691 = vmatprep.mubr.msk.f32.mxu0 %vm7245_vm3, %v7243_v6  ;;  %6765 = vmatpush3.msra.mxu1 %v5257_v32  ;;  %v5276_v32 = vld [vmem:[%s9644_s8 + $0x390] sm:$0xff] }
 0xb73   :  { %6692 = vmatmul.mubr.f32.vlgmr.msra.gmra.mxu0 %v8685_v62  ;;  %6729 = vmatprep.subr.mxu0 %v7243_v6 }
 0xb74   :  { %6766 = vmatprep.subr.mxu1 %v7243_v6  ;;  %6730 = vmatpush3.msra.mxu0 %v5241_v33  ;;  %v5260_v33 = vld [vmem:[%s9644_s8 + $0x310] sm:$0xff] }
 0xb75   :  { %6767 = vmatpush3.msra.mxu1 %v5256_v34  ;;  %6731 = vmatprep.subr.mxu0 %v7243_v6  ;;  %v5275_v34 = vld [vmem:[%s9644_s8 + $0x388] sm:$0xff] }
 0xb76   :  { %6768 = vmatprep.subr.mxu1 %v7243_v6  ;;  %6732 = vmatpush3.msra.mxu0 %v5240_v35  ;;  %v5259_v35 = vld [vmem:[%s9644_s8 + $0x308] sm:$0xff] }
 0xb77   :  { %6769 = vmatpush3.msra.mxu1 %v5255_v24  ;;  %6733 = vmatprep.subr.mxu0 %v7243_v6  ;;  %v5274_v24 = vld [vmem:[%s9644_s8 + $0x380] sm:$0xff] }
 0xb78   :  { %6770 = vmatprep.subr.mxu1 %v7243_v6  ;;  %6734 = vmatpush3.msra.mxu0 %v5239_v36  ;;  %v5258_v36 = vld [vmem:[%s9644_s8 + $0x300] sm:$0xff] }
 0xb79   :  { %6771 = vmatpush3.msra.mxu1 %v5254_v37  ;;  %6735 = vmatprep.subr.mxu0 %v7243_v6  ;;  %v5329_v37 = vld [vmem:[%s9645_s9 + $0x2f8] sm:$0xff] }
 0xb7a   :  { %6772 = vmatprep.subr.mxu1 %v7243_v6  ;;  %6736 = vmatpush3.msra.mxu0 %v5238_v38  ;;  %v5313_v38 = vld [vmem:[%s9645_s9 + $0x278] sm:$0xff] }
 0xb7b   :  { %6773 = vmatpush3.msra.mxu1 %v5253_v40  ;;  %6737 = vmatprep.subr.mxu0 %v7243_v6  ;;  %v5328_v40 = vld [vmem:[%s9645_s9 + $0x2f0] sm:$0xff] }
 0xb7c   :  { %6774 = vmatprep.subr.mxu1 %v7243_v6  ;;  %6738 = vmatpush3.msra.mxu0 %v5237_v29  ;;  %v5312_v29 = vld [vmem:[%s9645_s9 + $0x270] sm:$0xff] }
 0xb7d   :  { %6775 = vmatpush3.msra.mxu1 %v5252_v41  ;;  %6739 = vmatprep.subr.mxu0 %v7243_v6  ;;  %v5327_v41 = vld [vmem:[%s9645_s9 + $0x2e8] sm:$0xff] }
 0xb7e   :  { %6776 = vmatprep.subr.mxu1 %v7243_v6  ;;  %6740 = vmatpush3.msra.mxu0 %v5236_v42  ;;  %v5311_v42 = vld [vmem:[%s9645_s9 + $0x268] sm:$0xff] }
 0xb7f   :  { %6777 = vmatpush3.msra.mxu1 %v5251_v43  ;;  %6741 = vmatprep.subr.mxu0 %v7243_v6  ;;  %v5326_v43 = vld [vmem:[%s9645_s9 + $0x2e0] sm:$0xff] }
 0xb80   :  { %6778 = vmatprep.subr.mxu1 %v7243_v6  ;;  %6742 = vmatpush3.msra.mxu0 %v5235_v44  ;;  %v5310_v44 = vld [vmem:[%s9645_s9 + $0x260] sm:$0xff] }
 0xb81   :  { %6779 = vmatpush3.msra.mxu1 %v5250_v45  ;;  %6743 = vmatprep.subr.mxu0 %v7243_v6  ;;  %v5325_v45 = vld [vmem:[%s9645_s9 + $0x2d8] sm:$0xff] }
 0xb82   :  { %6780 = vmatprep.subr.mxu1 %v7243_v6  ;;  %6744 = vmatpush3.msra.mxu0 %v5234_v46  ;;  %v5309_v46 = vld [vmem:[%s9645_s9 + $0x258] sm:$0xff] }
 0xb83   :  { %6781 = vmatpush3.msra.mxu1 %v5249_v47  ;;  %6745 = vmatprep.subr.mxu0 %v7243_v6  ;;  %v5324_v47 = vld [vmem:[%s9645_s9 + $0x2d0] sm:$0xff] }
 0xb84   :  { %6782 = vmatprep.subr.mxu1 %v7243_v6  ;;  %6746 = vmatpush3.msra.mxu0 %v5233_v49  ;;  %v5308_v49 = vld [vmem:[%s9645_s9 + $0x250] sm:$0xff] }
 0xb85   :  { %6783 = vmatpush3.msra.mxu1 %v5248_v51  ;;  %6747 = vmatprep.subr.mxu0 %v7243_v6  ;;  %v5323_v51 = vld [vmem:[%s9645_s9 + $0x2c8] sm:$0xff] }
 0xb86   :  { %6784 = vmatprep.subr.mxu1 %v7243_v6  ;;  %6748 = vmatpush3.msra.mxu0 %v5232_v53  ;;  %v5307_v53 = vld [vmem:[%s9645_s9 + $0x248] sm:$0xff] }
 0xb87   :  { %6785 = vmatpush3.msra.mxu1 %v5247_v54  ;;  %6749 = vmatprep.subr.mxu0 %v7243_v6  ;;  %v5322_v54 = vld [vmem:[%s9645_s9 + $0x2c0] sm:$0xff] }
 0xb88   :  { %6786 = vmatprep.subr.mxu1 %v7243_v6  ;;  %6750 = vmatpush3.msra.mxu0 %v5231_v55  ;;  %v5306_v55 = vld [vmem:[%s9645_s9 + $0x240] sm:$0xff] }
 0xb89   :  { %6787 = vmatpush3.msra.mxu1 %v5246_v56  ;;  %6751 = vmatprep.subr.mxu0 %v7243_v6  ;;  %v5321_v56 = vld [vmem:[%s9645_s9 + $0x2b8] sm:$0xff] }
 0xb8a   :  { %6788 = vmatprep.subr.mxu1 %v7243_v6  ;;  %6752 = vmatpush3.msra.mxu0 %v5230_v57  ;;  %v5305_v57 = vld [vmem:[%s9645_s9 + $0x238] sm:$0xff] }
 0xb8b   :  { %6789 = vmatpush3.msra.mxu1 %v5245_v48  ;;  %6753 = vmatprep.subr.mxu0 %v7243_v6  ;;  %v5320_v48 = vld [vmem:[%s9645_s9 + $0x2b0] sm:$0xff] }
 0xb8c   :  { %6790 = vmatprep.subr.mxu1 %v7243_v6  ;;  %6754 = vmatpush3.msra.mxu0 %v5229_v59  ;;  %v5304_v59 = vld [vmem:[%s9645_s9 + $0x230] sm:$0xff] }
 0xb8d   :  { %6791 = vmatpush3.msra.mxu1 %v5244_v60  ;;  %6755 = vmatprep.subr.mxu0 %v7243_v6  ;;  %v5319_v60 = vld [vmem:[%s9645_s9 + $0x2a8] sm:$0xff] }
 0xb8e   :  { %6792 = vmatprep.subr.mxu1 %v7243_v6  ;;  %6756 = vmatpush3.msra.mxu0 %v5228_v50  ;;  %v5303_v50 = vld [vmem:[%s9645_s9 + $0x228] sm:$0xff] }
 0xb8f   :  { %6793 = vmatpush3.msra.mxu1 %v5243_v63  ;;  %6757 = vmatprep.subr.mxu0 %v7243_v6  ;;  %v5318_v63 = vld [vmem:[%s9645_s9 + $0x2a0] sm:$0xff] }
 0xb90   :  { %6794 = vmatprep.subr.mxu1 %v7243_v6  ;;  %6758 = vmatpush3.msra.mxu0 %v5227_v0  ;;  %v5302_v0 = vld [vmem:[%s9645_s9 + $0x220] sm:$0xff] }
 0xb91   :  { %6795 = vmatpush3.msra.mxu1 %v5242_v1  ;;  %6796 = vmatprep.mubr.msk.f32.mxu1 %vm7245_vm3, %v7243_v6  ;;  %v5317_v1 = vld [vmem:[%s9645_s9 + $0x298] sm:$0xff] }
 0xb92   :  { %6759 = vmatprep.subr.mxu0 %v7243_v6  ;;  %6797 = vmatmul.mubr.f32.vlgmr.msra.gmra.mxu1 %v8680_v58 }
 0xb93   :  { %6834 = vmatprep.subr.mxu1 %v7243_v6  ;;  %6760 = vmatpush3.msra.mxu0 %v5226_v52  ;;  %v5301_v52 = vld [vmem:[%s9645_s9 + $0x218] sm:$0xff] }
 0xb94   :  { %6761 = vmatprep.mubr.msk.f32.mxu0 %vm7245_vm3, %v7243_v6  ;;  %6835 = vmatpush3.msra.mxu1 %v5289_v2  ;;  %v5316_v2 = vld [vmem:[%s9645_s9 + $0x290] sm:$0xff] }
 0xb95   :  { %6762 = vmatmul.mubr.f32.vlgmr.msra.gmra.mxu0 %v8685_v62  ;;  %6799 = vmatprep.subr.mxu0 %v7243_v6 }
 0xb96   :  { %6836 = vmatprep.subr.mxu1 %v7243_v6  ;;  %6800 = vmatpush3.msra.mxu0 %v5273_v20  ;;  %v5300_v20 = vld [vmem:[%s9645_s9 + $0x210] sm:$0xff] }
 0xb97   :  { %6837 = vmatpush3.msra.mxu1 %v5288_v4  ;;  %6801 = vmatprep.subr.mxu0 %v7243_v6  ;;  %v5315_v4 = vld [vmem:[%s9645_s9 + $0x288] sm:$0xff] }
 0xb98   :  { %6838 = vmatprep.subr.mxu1 %v7243_v6  ;;  %6802 = vmatpush3.msra.mxu0 %v5272_v5  ;;  %v5299_v5 = vld [vmem:[%s9645_s9 + $0x208] sm:$0xff] }
 0xb99   :  { %6839 = vmatpush3.msra.mxu1 %v5287_v7  ;;  %6803 = vmatprep.subr.mxu0 %v7243_v6  ;;  %v5314_v7 = vld [vmem:[%s9645_s9 + $0x280] sm:$0xff] }
 0xb9a   :  { %6840 = vmatprep.subr.mxu1 %v7243_v6  ;;  %6804 = vmatpush3.msra.mxu0 %v5271_v8  ;;  %v5298_v8 = vld [vmem:[%s9645_s9 + $0x200] sm:$0xff] }
 0xb9b   :  { %6841 = vmatpush3.msra.mxu1 %v5286_v9  ;;  %6805 = vmatprep.subr.mxu0 %v7243_v6  ;;  %v5361_v9 = vld [vmem:[%s9645_s9 + $0x3f8] sm:$0xff] }
 0xb9c   :  { %6842 = vmatprep.subr.mxu1 %v7243_v6  ;;  %6806 = vmatpush3.msra.mxu0 %v5270_v10  ;;  %v5345_v10 = vld [vmem:[%s9645_s9 + $0x378] sm:$0xff] }
 0xb9d   :  { %6843 = vmatpush3.msra.mxu1 %v5285_v11  ;;  %6807 = vmatprep.subr.mxu0 %v7243_v6  ;;  %v5360_v11 = vld [vmem:[%s9645_s9 + $0x3f0] sm:$0xff] }
 0xb9e   :  { %6844 = vmatprep.subr.mxu1 %v7243_v6  ;;  %6808 = vmatpush3.msra.mxu0 %v5269_v12  ;;  %v5344_v12 = vld [vmem:[%s9645_s9 + $0x370] sm:$0xff] }
 0xb9f   :  { %6845 = vmatpush3.msra.mxu1 %v5284_v13  ;;  %6809 = vmatprep.subr.mxu0 %v7243_v6  ;;  %v5359_v13 = vld [vmem:[%s9645_s9 + $0x3e8] sm:$0xff] }
 0xba0   :  { %6846 = vmatprep.subr.mxu1 %v7243_v6  ;;  %6810 = vmatpush3.msra.mxu0 %v5268_v14  ;;  %v5343_v14 = vld [vmem:[%s9645_s9 + $0x368] sm:$0xff] }
 0xba1   :  { %6847 = vmatpush3.msra.mxu1 %v5283_v15  ;;  %6811 = vmatprep.subr.mxu0 %v7243_v6  ;;  %v5358_v15 = vld [vmem:[%s9645_s9 + $0x3e0] sm:$0xff] }
 0xba2   :  { %6848 = vmatprep.subr.mxu1 %v7243_v6  ;;  %6812 = vmatpush3.msra.mxu0 %v5267_v16  ;;  %v5342_v16 = vld [vmem:[%s9645_s9 + $0x360] sm:$0xff] }
 0xba3   :  { %6849 = vmatpush3.msra.mxu1 %v5282_v17  ;;  %6813 = vmatprep.subr.mxu0 %v7243_v6  ;;  %v5357_v17 = vld [vmem:[%s9645_s9 + $0x3d8] sm:$0xff] }
 0xba4   :  { %6850 = vmatprep.subr.mxu1 %v7243_v6  ;;  %6814 = vmatpush3.msra.mxu0 %v5266_v18  ;;  %v5341_v18 = vld [vmem:[%s9645_s9 + $0x358] sm:$0xff] }
 0xba5   :  { %6851 = vmatpush3.msra.mxu1 %v5281_v19  ;;  %6815 = vmatprep.subr.mxu0 %v7243_v6  ;;  %v5356_v19 = vld [vmem:[%s9645_s9 + $0x3d0] sm:$0xff] }
 0xba6   :  { %6852 = vmatprep.subr.mxu1 %v7243_v6  ;;  %6816 = vmatpush3.msra.mxu0 %v5265_v21  ;;  %v5340_v21 = vld [vmem:[%s9645_s9 + $0x350] sm:$0xff] }
 0xba7   :  { %6853 = vmatpush3.msra.mxu1 %v5280_v22  ;;  %6817 = vmatprep.subr.mxu0 %v7243_v6  ;;  %v5355_v22 = vld [vmem:[%s9645_s9 + $0x3c8] sm:$0xff] }
 0xba8   :  { %6854 = vmatprep.subr.mxu1 %v7243_v6  ;;  %6818 = vmatpush3.msra.mxu0 %v5264_v23  ;;  %v5339_v23 = vld [vmem:[%s9645_s9 + $0x348] sm:$0xff] }
 0xba9   :  { %6855 = vmatpush3.msra.mxu1 %v5279_v25  ;;  %6819 = vmatprep.subr.mxu0 %v7243_v6  ;;  %v5354_v25 = vld [vmem:[%s9645_s9 + $0x3c0] sm:$0xff] }
 0xbaa   :  { %6856 = vmatprep.subr.mxu1 %v7243_v6  ;;  %6820 = vmatpush3.msra.mxu0 %v5263_v26  ;;  %v5338_v26 = vld [vmem:[%s9645_s9 + $0x340] sm:$0xff] }
 0xbab   :  { %6857 = vmatpush3.msra.mxu1 %v5278_v27  ;;  %6821 = vmatprep.subr.mxu0 %v7243_v6  ;;  %v5353_v27 = vld [vmem:[%s9645_s9 + $0x3b8] sm:$0xff] }
 0xbac   :  { %6858 = vmatprep.subr.mxu1 %v7243_v6  ;;  %6822 = vmatpush3.msra.mxu0 %v5262_v28  ;;  %v5337_v28 = vld [vmem:[%s9645_s9 + $0x338] sm:$0xff] }
 0xbad   :  { %6859 = vmatpush3.msra.mxu1 %v5277_v30  ;;  %6823 = vmatprep.subr.mxu0 %v7243_v6  ;;  %v5352_v30 = vld [vmem:[%s9645_s9 + $0x3b0] sm:$0xff] }
 0xbae   :  { %6860 = vmatprep.subr.mxu1 %v7243_v6  ;;  %6824 = vmatpush3.msra.mxu0 %v5261_v31  ;;  %v5336_v31 = vld [vmem:[%s9645_s9 + $0x330] sm:$0xff] }
 0xbaf   :  { %6861 = vmatpush3.msra.mxu1 %v5276_v32  ;;  %6825 = vmatprep.subr.mxu0 %v7243_v6  ;;  %v5351_v32 = vld [vmem:[%s9645_s9 + $0x3a8] sm:$0xff] }
 0xbb0   :  { %6862 = vmatprep.subr.mxu1 %v7243_v6  ;;  %6826 = vmatpush3.msra.mxu0 %v5260_v33  ;;  %v5335_v33 = vld [vmem:[%s9645_s9 + $0x328] sm:$0xff] }
 0xbb1   :  { %6863 = vmatpush3.msra.mxu1 %v5275_v34  ;;  %6827 = vmatprep.subr.mxu0 %v7243_v6  ;;  %v5350_v34 = vld [vmem:[%s9645_s9 + $0x3a0] sm:$0xff] }
 0xbb2   :  { %6864 = vmatprep.subr.mxu1 %v7243_v6  ;;  %6828 = vmatpush3.msra.mxu0 %v5259_v35  ;;  %v5334_v35 = vld [vmem:[%s9645_s9 + $0x320] sm:$0xff] }
 0xbb3   :  { %6865 = vmatpush3.msra.mxu1 %v5274_v24  ;;  %6866 = vmatprep.mubr.msk.f32.mxu1 %vm7245_vm3, %v7243_v6  ;;  %v5349_v24 = vld [vmem:[%s9645_s9 + $0x398] sm:$0xff] }
 0xbb4   :  { %6829 = vmatprep.subr.mxu0 %v7243_v6  ;;  %6867 = vmatmul.mubr.f32.vlgmr.msra.gmra.mxu1 %v8680_v58 }
 0xbb5   :  { %6904 = vmatprep.subr.mxu1 %v7243_v6  ;;  %6830 = vmatpush3.msra.mxu0 %v5258_v36  ;;  %v5333_v36 = vld [vmem:[%s9645_s9 + $0x318] sm:$0xff] }
 0xbb6   :  { %6831 = vmatprep.mubr.msk.f32.mxu0 %vm7245_vm3, %v7243_v6  ;;  %6905 = vmatpush3.msra.mxu1 %v5329_v37  ;;  %v5348_v37 = vld [vmem:[%s9645_s9 + $0x390] sm:$0xff] }
 0xbb7   :  { %6832 = vmatmul.mubr.f32.vlgmr.msra.gmra.mxu0 %v8685_v62  ;;  %6869 = vmatprep.subr.mxu0 %v7243_v6 }
 0xbb8   :  { %6906 = vmatprep.subr.mxu1 %v7243_v6  ;;  %6870 = vmatpush3.msra.mxu0 %v5313_v38  ;;  %v5332_v38 = vld [vmem:[%s9645_s9 + $0x310] sm:$0xff] }
 0xbb9   :  { %6907 = vmatpush3.msra.mxu1 %v5328_v40  ;;  %6871 = vmatprep.subr.mxu0 %v7243_v6  ;;  %v5347_v40 = vld [vmem:[%s9645_s9 + $0x388] sm:$0xff] }
 0xbba   :  { %6908 = vmatprep.subr.mxu1 %v7243_v6  ;;  %6872 = vmatpush3.msra.mxu0 %v5312_v29  ;;  %v5331_v29 = vld [vmem:[%s9645_s9 + $0x308] sm:$0xff] }
 0xbbb   :  { %6909 = vmatpush3.msra.mxu1 %v5327_v41  ;;  %6873 = vmatprep.subr.mxu0 %v7243_v6  ;;  %v5346_v41 = vld [vmem:[%s9645_s9 + $0x380] sm:$0xff] }
 0xbbc   :  { %6910 = vmatprep.subr.mxu1 %v7243_v6  ;;  %6874 = vmatpush3.msra.mxu0 %v5311_v42  ;;  %v5330_v42 = vld [vmem:[%s9645_s9 + $0x300] sm:$0xff] }
 0xbbd   :  { %6911 = vmatpush3.msra.mxu1 %v5326_v43  ;;  %6875 = vmatprep.subr.mxu0 %v7243_v6 }
 0xbbe   :  { %6912 = vmatprep.subr.mxu1 %v7243_v6  ;;  %6876 = vmatpush3.msra.mxu0 %v5310_v44 }
 0xbbf   :  { %6913 = vmatpush3.msra.mxu1 %v5325_v45  ;;  %6877 = vmatprep.subr.mxu0 %v7243_v6 }
 0xbc0   :  { %6914 = vmatprep.subr.mxu1 %v7243_v6  ;;  %6878 = vmatpush3.msra.mxu0 %v5309_v46 }
 0xbc1   :  { %6915 = vmatpush3.msra.mxu1 %v5324_v47  ;;  %6879 = vmatprep.subr.mxu0 %v7243_v6 }
 0xbc2   :  { %6916 = vmatprep.subr.mxu1 %v7243_v6  ;;  %6880 = vmatpush3.msra.mxu0 %v5308_v49 }
 0xbc3   :  { %6917 = vmatpush3.msra.mxu1 %v5323_v51  ;;  %6881 = vmatprep.subr.mxu0 %v7243_v6 }
 0xbc4   :  { %6918 = vmatprep.subr.mxu1 %v7243_v6  ;;  %6882 = vmatpush3.msra.mxu0 %v5307_v53 }
 0xbc5   :  { %6919 = vmatpush3.msra.mxu1 %v5322_v54  ;;  %6883 = vmatprep.subr.mxu0 %v7243_v6  ;;  %v5295_v54 = vld [vmem:[%s9647_s11 + $0x5] ss:$0 sm:$0xff] }
 0xbc6   :  { %6920 = vmatprep.subr.mxu1 %v7243_v6  ;;  %6884 = vmatpush3.msra.mxu0 %v5306_v55 }
 0xbc7   :  { %6921 = vmatpush3.msra.mxu1 %v5321_v56  ;;  %6885 = vmatprep.subr.mxu0 %v7243_v6  ;;  %v5223_v56 = vld [vmem:[%s9646_s10 + $0x5] ss:$0 sm:$0xff] }
 0xbc8   :  { %6922 = vmatprep.subr.mxu1 %v7243_v6  ;;  %6886 = vmatpush3.msra.mxu0 %v5305_v57 }
 0xbc9   :  { %6923 = vmatpush3.msra.mxu1 %v5320_v48  ;;  %6887 = vmatprep.subr.mxu0 %v7243_v6  ;;  %v5294_v48 = vld [vmem:[%s9647_s11 + $0x4] ss:$0 sm:$0xff] }
 0xbca   :  { %6924 = vmatprep.subr.mxu1 %v7243_v6  ;;  %6888 = vmatpush3.msra.mxu0 %v5304_v59 }
 0xbcb   :  { %6925 = vmatpush3.msra.mxu1 %v5319_v60  ;;  %6889 = vmatprep.subr.mxu0 %v7243_v6 }
 0xbcc   :  { %6926 = vmatprep.subr.mxu1 %v7243_v6  ;;  %6890 = vmatpush3.msra.mxu0 %v5303_v50 }
 0xbcd   :  { %6927 = vmatpush3.msra.mxu1 %v5318_v63  ;;  %6891 = vmatprep.subr.mxu0 %v7243_v6  ;;  %v5222_v63 = vld [vmem:[%s9646_s10 + $0x4] ss:$0 sm:$0xff] }
 0xbce   :  { %6928 = vmatprep.subr.mxu1 %v7243_v6  ;;  %6892 = vmatpush3.msra.mxu0 %v5302_v0 }
 0xbcf   :  { %6929 = vmatpush3.msra.mxu1 %v5317_v1  ;;  %6893 = vmatprep.subr.mxu0 %v7243_v6 }
 0xbd0   :  { %6930 = vmatprep.subr.mxu1 %v7243_v6  ;;  %6894 = vmatpush3.msra.mxu0 %v5301_v52 }
 0xbd1   :  { %6931 = vmatpush3.msra.mxu1 %v5316_v2  ;;  %6895 = vmatprep.subr.mxu0 %v7243_v6  ;;  %v5297_v2 = vld [vmem:[%s9647_s11 + $0x7] ss:$0 sm:$0xff] }
 0xbd2   :  { %6932 = vmatprep.subr.mxu1 %v7243_v6  ;;  %6896 = vmatpush3.msra.mxu0 %v5300_v20 }
 0xbd3   :  { %6933 = vmatpush3.msra.mxu1 %v5315_v4  ;;  %6897 = vmatprep.subr.mxu0 %v7243_v6  ;;  %v5225_v4 = vld [vmem:[%s9646_s10 + $0x7] ss:$0 sm:$0xff] }
 0xbd4   :  { %6934 = vmatprep.subr.mxu1 %v7243_v6  ;;  %6898 = vmatpush3.msra.mxu0 %v5299_v5 }
 0xbd5   :  { %6935 = vmatpush3.msra.mxu1 %v5314_v7  ;;  %6936 = vmatprep.mubr.msk.f32.mxu1 %vm7245_vm3, %v7243_v6  ;;  %v5296_v7 = vld [vmem:[%s9647_s11 + $0x6] ss:$0 sm:$0xff] }
 0xbd6   :  { %6899 = vmatprep.subr.mxu0 %v7243_v6  ;;  %6937 = vmatmul.mubr.f32.vlgmr.msra.gmra.mxu1 %v8680_v58 }
 0xbd7   :  { %6974 = vmatprep.subr.mxu1 %v7243_v6  ;;  %6900 = vmatpush3.msra.mxu0 %v5298_v8 }
 0xbd8   :  { %6901 = vmatprep.mubr.msk.f32.mxu0 %vm7245_vm3, %v7243_v6  ;;  %6975 = vmatpush3.msra.mxu1 %v5361_v9 }
 0xbd9   :  { %6902 = vmatmul.mubr.f32.vlgmr.msra.gmra.mxu0 %v8685_v62  ;;  %6939 = vmatprep.subr.mxu0 %v7243_v6 }
 0xbda   :  { %6976 = vmatprep.subr.mxu1 %v7243_v6  ;;  %6940 = vmatpush3.msra.mxu0 %v5345_v10 }
 0xbdb   :  { %6977 = vmatpush3.msra.mxu1 %v5360_v11  ;;  %6941 = vmatprep.subr.mxu0 %v7243_v6  ;;  %v5224_v11 = vld [vmem:[%s9646_s10 + $0x6] ss:$0 sm:$0xff] }
 0xbdc   :  { %6978 = vmatprep.subr.mxu1 %v7243_v6  ;;  %6942 = vmatpush3.msra.mxu0 %v5344_v12 }
 0xbdd   :  { %6979 = vmatpush3.msra.mxu1 %v5359_v13  ;;  %6943 = vmatprep.subr.mxu0 %v7243_v6 }
 0xbde   :  { %6980 = vmatprep.subr.mxu1 %v7243_v6  ;;  %6944 = vmatpush3.msra.mxu0 %v5343_v14 }
 0xbdf   :  { %6981 = vmatpush3.msra.mxu1 %v5358_v15  ;;  %6945 = vmatprep.subr.mxu0 %v7243_v6  ;;  %v5367_v15 = vld [vmem:[%s9648_s12 + $0x5] ss:$0 sm:$0xff] }
 0xbe0   :  { %6982 = vmatprep.subr.mxu1 %v7243_v6  ;;  %6946 = vmatpush3.msra.mxu0 %v5342_v16 }
 0xbe1   :  { %6983 = vmatpush3.msra.mxu1 %v5357_v17  ;;  %6947 = vmatprep.subr.mxu0 %v7243_v6 }
 0xbe2   :  { %6984 = vmatprep.subr.mxu1 %v7243_v6  ;;  %6948 = vmatpush3.msra.mxu0 %v5341_v18  ;;  %v5366_v18 = vld [vmem:[%s9648_s12 + $0x4] ss:$0 sm:$0xff] }
 0xbe3   :  { %6985 = vmatpush3.msra.mxu1 %v5356_v19  ;;  %6949 = vmatprep.subr.mxu0 %v7243_v6 }
 0xbe4   :  { %6986 = vmatprep.subr.mxu1 %v7243_v6  ;;  %6950 = vmatpush3.msra.mxu0 %v5340_v21 }
 0xbe5   :  { %6987 = vmatpush3.msra.mxu1 %v5355_v22  ;;  %6951 = vmatprep.subr.mxu0 %v7243_v6 }
 0xbe6   :  { %6988 = vmatprep.subr.mxu1 %v7243_v6  ;;  %6952 = vmatpush3.msra.mxu0 %v5339_v23 }
 0xbe7   :  { %6989 = vmatpush3.msra.mxu1 %v5354_v25  ;;  %6953 = vmatprep.subr.mxu0 %v7243_v6 }
 0xbe8   :  { %6990 = vmatprep.subr.mxu1 %v7243_v6  ;;  %6954 = vmatpush3.msra.mxu0 %v5338_v26 }
 0xbe9   :  { %6991 = vmatpush3.msra.mxu1 %v5353_v27  ;;  %6955 = vmatprep.subr.mxu0 %v7243_v6 }
 0xbea   :  { %6992 = vmatprep.subr.mxu1 %v7243_v6  ;;  %6956 = vmatpush3.msra.mxu0 %v5337_v28 }
 0xbeb   :  { %6993 = vmatpush3.msra.mxu1 %v5352_v30  ;;  %6957 = vmatprep.subr.mxu0 %v7243_v6 }
 0xbec   :  { %6994 = vmatprep.subr.mxu1 %v7243_v6  ;;  %6958 = vmatpush3.msra.mxu0 %v5336_v31 }
 0xbed   :  { %6995 = vmatpush3.msra.mxu1 %v5351_v32  ;;  %6959 = vmatprep.subr.mxu0 %v7243_v6 }
 0xbee   :  { %6996 = vmatprep.subr.mxu1 %v7243_v6  ;;  %6960 = vmatpush3.msra.mxu0 %v5335_v33 }
 0xbef   :  { %6997 = vmatpush3.msra.mxu1 %v5350_v34  ;;  %6961 = vmatprep.subr.mxu0 %v7243_v6 }
 0xbf0   :  { %6998 = vmatprep.subr.mxu1 %v7243_v6  ;;  %6962 = vmatpush3.msra.mxu0 %v5334_v35 }
 0xbf1   :  { %6999 = vmatpush3.msra.mxu1 %v5349_v24  ;;  %6963 = vmatprep.subr.mxu0 %v7243_v6 }
 0xbf2   :  { %7000 = vmatprep.subr.mxu1 %v7243_v6  ;;  %6964 = vmatpush3.msra.mxu0 %v5333_v36 }
 0xbf3   :  { %7001 = vmatpush3.msra.mxu1 %v5348_v37  ;;  %6965 = vmatprep.subr.mxu0 %v7243_v6 }
 0xbf4   :  { %7002 = vmatprep.subr.mxu1 %v7243_v6  ;;  %6966 = vmatpush3.msra.mxu0 %v5332_v38 }
 0xbf5   :  { %7003 = vmatpush3.msra.mxu1 %v5347_v40  ;;  %6967 = vmatprep.subr.mxu0 %v7243_v6 }
 0xbf6   :  { %7004 = vmatprep.subr.mxu1 %v7243_v6  ;;  %6968 = vmatpush3.msra.mxu0 %v5331_v29 }
 0xbf7   :  { %7005 = vmatpush3.msra.mxu1 %v5346_v41  ;;  %7006 = vmatprep.mubr.msk.f32.mxu1 %vm7245_vm3, %v7243_v6 }
 0xbf8   :  { %6969 = vmatprep.subr.mxu0 %v7243_v6  ;;  %7007 = vmatmul.mubr.f32.vlgmr.msra.gmra.mxu1 %v8680_v58 }
 0xbf9   :  { %6970 = vmatpush3.msra.mxu0 %v5330_v42  ;;  %6971 = vmatprep.mubr.msk.f32.mxu0 %vm7245_vm3, %v7243_v6 }
 0xbfa   :  { %6972 = vmatmul.mubr.f32.vlgmr.msra.gmra.mxu0 %v8685_v62  ;;  %7014 = vmatprep.subr.mxu1 %v7243_v6 }
 0xbfb   :  { %7009 = vmatprep.subr.mxu0 %v7243_v6  ;;  %7016 = vmatprep.mubr.msk.f32.mxu1 %vm7245_vm3, %v7243_v6 }
 0xbfc   :  { %7011 = vmatprep.mubr.msk.f32.mxu0 %vm7245_vm3, %v7243_v6 }
 0xc10   :  { %v2856_v43 = vpop.f32.mrf.mxu1 }
 0xc11   :  { %v2857_v50 = vadd.f32 %v5223_v56, %v2856_v43 }
 0xc12   :  { %v2786_v44 = vpop.f32.mrf.mxu0  ;;  %v6658_v45 = vpop.f32.mrf.mxu1 }
 0xc13   :  { %v2787_v52 = vadd.f32 %v5222_v63, %v2786_v44 }
 0xc14   :  { %v6623_v46 = vpop.f32.mrf.mxu0 }
 0xc30   :  { %v2996_v47 = vpop.f32.mrf.mxu1 }
 0xc31   :  { %v2997_v10 = vadd.f32 %v5225_v4, %v2996_v47 }
 0xc32   :  { %v6728_v49 = vpop.f32.mrf.mxu1 }
 0xc33   :  { %v2926_v51 = vpop.f32.mrf.mxu0 }
 0xc34   :  { %v2927_v14 = vadd.f32 %v5224_v11, %v2926_v51 }
 0xc35   :  { %v6693_v53 = vpop.f32.mrf.mxu0 }
 0xc52   :  { %v3230_v55 = vpop.f32.mrf.mxu1 }
 0xc53   :  { %v3231_v57 = vadd.f32 %v5295_v54, %v3230_v55 }
 0xc54   :  { %v6798_v59 = vpop.f32.mrf.mxu1 }
 0xc55   :  { %v3160_v60 = vpop.f32.mrf.mxu0  ;;  %7015 = vmatpush3.xpose.msk.msra.mxu1 %vm1351_vm4, %v3231_v57 }
 0xc56   :  { %v3161_v0 = vadd.f32 %v5294_v48, %v3160_v60  ;;  %7024 = vmatprep.subr.mxu1 %v7243_v6 }
 0xc57   :  { %v6763_v1 = vpop.f32.mrf.mxu0 }
 0xc58   :  { %7010 = vmatpush3.xpose.msk.msra.mxu0 %vm1351_vm4, %v3161_v0  ;;  %7017 = vmatmul.mubr.msk.f32.vlgmr.msra.gmra.mxu1 %vm1351_vm4, %v2857_v50 }
 0xc59   :  { %7019 = vmatprep.subr.mxu0 %v7243_v6  ;;  %7026 = vmatprep.mubr.msk.f32.mxu1 %vm7245_vm3, %v7243_v6 }
 0xc5b   :  { %7012 = vmatmul.mubr.msk.f32.vlgmr.msra.gmra.mxu0 %vm1351_vm4, %v2787_v52 }
 0xc5c   :  { %7021 = vmatprep.mubr.msk.f32.mxu0 %vm7245_vm3, %v7243_v6 }
 0xc74   :  { %v3370_v20 = vpop.f32.mrf.mxu1 }
 0xc75   :  { %v3371_v5 = vadd.f32 %v5297_v2, %v3370_v20 }
 0xc76   :  { %v6868_v8 = vpop.f32.mrf.mxu1 }
 0xc77   :  { %v3300_v9 = vpop.f32.mrf.mxu0  ;;  %7025 = vmatpush3.xpose.msk.msra.mxu1 %vm1351_vm4, %v3371_v5 }
 0xc78   :  { %v3301_v12 = vadd.f32 %v5296_v7, %v3300_v9  ;;  %7034 = vmatprep.subr.mxu1 %v7243_v6  ;;  %v5369_v9 = vld [vmem:[%s9648_s12 + $0x7] ss:$0 sm:$0xff] }
 0xc79   :  { %v6833_v13 = vpop.f32.mrf.mxu0 }
 0xc7a   :  { %7020 = vmatpush3.xpose.msk.msra.mxu0 %vm1351_vm4, %v3301_v12  ;;  %7027 = vmatmul.mubr.msk.f32.vlgmr.msra.gmra.mxu1 %vm1351_vm4, %v2997_v10  ;;  %v5368_v13 = vld [vmem:[%s9648_s12 + $0x6] ss:$0 sm:$0xff] }
 0xc7b   :  { %7029 = vmatprep.subr.mxu0 %v7243_v6  ;;  %7036 = vmatprep.mubr.msk.f32.mxu1 %vm7245_vm3, %v7243_v6 }
 0xc7d   :  { %7022 = vmatmul.mubr.msk.f32.vlgmr.msra.gmra.mxu0 %vm1351_vm4, %v2927_v14 }
 0xc7e   :  { %7031 = vmatprep.mubr.msk.f32.mxu0 %vm7245_vm3, %v7243_v6 }
 0xc96   :  { %v3604_v16 = vpop.f32.mrf.mxu1 }
 0xc97   :  { %v3605_v17 = vadd.f32 %v5367_v15, %v3604_v16 }
 0xc98   :  { %v6938_v19 = vpop.f32.mrf.mxu1 }
 0xc99   :  { %v3534_v21 = vpop.f32.mrf.mxu0  ;;  %7035 = vmatpush3.msra.mxu1 %v3605_v17 }
 0xc9a   :  { %v3535_v22 = vadd.f32 %v5366_v18, %v3534_v21  ;;  %7044 = vmatprep.subr.mxu1 %v7243_v6 }
 0xc9b   :  { %v6903_v23 = vpop.f32.mrf.mxu0 }
 0xc9c   :  { %7030 = vmatpush3.msra.mxu0 %v3535_v22  ;;  %v5385_v22 = vld [vmem:[%s9649_s13 + $0x58] sm:$0xff] }
 0xc9d   :  { %7039 = vmatprep.subr.mxu0 %v7243_v6 }
 0xcb8   :  { %v9412_v25 = vpop.f32.mrf.mxu1 }
 0xcb9   :  { %v3745_v12 = vadd.f32 %v5369_v9, %v9412_v25  ;;  %v5408_v9 = vld [vmem:[%s9653_s17 + $0xc0] sm:$0xff] }
 0xcba   :  { %v9414_v26 = vpop.f32.mrf.mxu0  ;;  %v7008_v27 = vpop.f32.mrf.mxu1 }
 0xcbb   :  { %v3675_v16 = vadd.f32 %v5368_v13, %v9414_v26  ;;  %v5383_v26 = vld [vmem:[%s9649_s13 + $0x48] sm:$0xff]  ;;  %v5384_v27 = vld [vmem:[%s9649_s13 + $0x50] sm:$0xff]  ;;  %v5404_v13 = vld [vmem:[%s9653_s17 + $0xa0] sm:$0xff] }
 0xcbc   :  { %v6973_v28 = vpop.f32.mrf.mxu0 }
 0xcbd   :  { %v5382_v28 = vld [vmem:[%s9649_s13 + $0x40] sm:$0xff] }
 0xd18   :  { %v3896_v30 = vpop.f32.mrf.mxu1 }
 0xd19   :  { %v4053_v31 = vmul.f32 0.25, %v3896_v30  ;;  %v5389_v30 = vld [vmem:[%s9649_s13 + $0x78] sm:$0xff] }
 0xd1a   :  { %v7018_v32 = vpop.f32.mrf.mxu1 }
 0xd1b   :  { %v3820_v33 = vpop.f32.mrf.mxu0  ;;  %v4057_v34 = vadd.f32 %v4053_v31, %v8327_v3  ;;  %v5388_v32 = vld [vmem:[%s9649_s13 + $0x70] sm:$0xff] }
 0xd1c   :  { %v4052_v35 = vmul.f32 0.25, %v3820_v33 }
 0xd1d   :  { %v7013_v24 = vpop.f32.mrf.mxu0  ;;  %v4063_v36 = vsel %vm1676_vm5, %v4057_v34, -inf }
 0xd1e   :  { %4064 = vmax.xlane.f32.xlu0 %v4063_v36  ;;  %v4056_v37 = vadd.f32 %v4052_v35, %v8324_v61  ;;  %v5386_v24 = vld [vmem:[%s9649_s13 + $0x60] sm:$0xff] }
 0xd20   :  { %v4060_v38 = vsel %vm1676_vm5, %v4056_v37, -inf }
 0xd21   :  { %4061 = vmax.xlane.f32.xlu1 %v4060_v38 }
 0xd3a   :  { %v4048_v40 = vpop.f32.mrf.mxu1 }
 0xd3b   :  { %v4055_v29 = vmul.f32 0.25, %v4048_v40 }
 0xd3c   :  { %v7028_v41 = vpop.f32.mrf.mxu1 }
 0xd3d   :  { %v3972_v42 = vpop.f32.mrf.mxu0  ;;  %v4059_v43 = vadd.f32 %v4055_v29, %v8327_v3 }
 0xd3e   :  { %v4054_v44 = vmul.f32 0.25, %v3972_v42 }
 0xd3f   :  { %v7023_v45 = vpop.f32.mrf.mxu0  ;;  %v4069_v46 = vsel %vm1676_vm5, %v4059_v43, -inf }
 0xd40   :  { %4070 = vmax.xlane.f32.xlu0 %v4069_v46  ;;  %v4058_v47 = vadd.f32 %v4054_v44, %v8324_v61  ;;  %v5395_v46 = vld [vmem:[%s9650_s14 + $0x1] ss:$0 sm:$0xff] }
 0xd42   :  { %v4066_v49 = vsel %vm1676_vm5, %v4058_v47, -inf }
 0xd43   :  { %4067 = vmax.xlane.f32.xlu1 %v4066_v49 }
 0xda7   :  { %v4065_v51 = vpop.xlane.xlu0 %4064 }
 0xda8   :  { %v4073_v53 = vsub.f32 %v4057_v34, %v4065_v51  ;;  %v5387_v34 = vld [vmem:[%s9649_s13 + $0x68] sm:$0xff] }
 0xdaa   :  { %v4078_v54 = vmul.f32 1.442695, %v4073_v53  ;;  %v4062_v55 = vpop.xlane.xlu1 %4061 }
 0xdab   :  { %v4072_v56 = vsub.f32 %v4056_v37, %v4062_v55 }
 0xdac   :  { %7186 = vpow2.f32 %v4078_v54 }
 0xdad   :  { %v4076_v57 = vmul.f32 1.442695, %v4072_v56 }
 0xdaf   :  { %7188 = vpow2.f32 %v4076_v57 }
 0xdb9   :  { %v7187_v48 = vpop.eup %7186 }
 0xdba   :  { %v4087_v3 = vsel %vm1676_vm5, %v7187_v48, 0.0 }
 0xdbb   :  { %4088 = vadd.xlane.f32.xlu0 %v4087_v3  ;;  %v5415_v3 = vld [vmem:[%s9653_s17 + $0xf8] sm:$0xff] }
 0xdbc   :  { %v7189_v59 = vpop.eup %7188 }
 0xdbd   :  { %v4084_v60 = vsel %vm1676_vm5, %v7189_v59, 0.0 }
 0xdbe   :  { %4085 = vadd.xlane.f32.xlu1 %v4084_v60 }
 0xdc9   :  { %v4071_v61 = vpop.xlane.xlu0 %4070 }
 0xdca   :  { %v4075_v50 = vsub.f32 %v4059_v43, %v4071_v61 }
 0xdcc   :  { %v4082_v63 = vmul.f32 1.442695, %v4075_v50  ;;  %v4068_v0 = vpop.xlane.xlu1 %4067 }
 0xdcd   :  { %v4074_v1 = vsub.f32 %v4058_v47, %v4068_v0 }
 0xdce   :  { %7190 = vpow2.f32 %v4082_v63 }
 0xdcf   :  { %v4080_v52 = vmul.f32 1.442695, %v4074_v1 }
 0xdd1   :  { %7192 = vpow2.f32 %v4080_v52 }
 0xddb   :  { %v7191_v2 = vpop.eup %7190 }
 0xddc   :  { %v4093_v20 = vsel %vm1676_vm5, %v7191_v2, 0.0 }
 0xddd   :  { %4094 = vadd.xlane.f32.xlu0 %v4093_v20  ;;  %v5413_v20 = vld [vmem:[%s9653_s17 + $0xe8] sm:$0xff] }
 0xdde   :  { %v7193_v4 = vpop.eup %7192 }
 0xddf   :  { %v4090_v5 = vsel %vm1676_vm5, %v7193_v4, 0.0 }
 0xde0   :  { %4091 = vadd.xlane.f32.xlu1 %v4090_v5  ;;  %v5411_v5 = vld [vmem:[%s9653_s17 + $0xd8] sm:$0xff] }
 0xe44   :  { %v4089_v7 = vpop.xlane.xlu0 %4088 }
 0xe45   :  { %7194 = vrcp.f32 %v4089_v7  ;;  %v5410_v7 = vld [vmem:[%s9653_s17 + $0xd0] sm:$0xff] }
 0xe47   :  { %v4086_v8 = vpop.xlane.xlu1 %4085 }
 0xe48   :  { %7196 = vrcp.f32 %v4086_v8  ;;  %v5409_v8 = vld [vmem:[%s9653_s17 + $0xc8] sm:$0xff] }
 0xe52   :  { %v7195_v10 = vpop.eup %7194 }
 0xe53   :  { %v4101_v11 = vmul.f32 %v7195_v10, %v7187_v48  ;;  %v5407_v10 = vld [vmem:[%s9653_s17 + $0xb8] sm:$0xff] }
 0xe55   :  { %v7197_v14 = vpop.eup %7196  ;;  %7037 = vmatmul.mubr.msk.f32.vlgmr.msra.gmra.mxu1 %vm1676_vm5, %v4101_v11  ;;  %v5406_v11 = vld [vmem:[%s9653_s17 + $0xb0] sm:$0xff] }
 0xe56   :  { %7045 = vmatpush3.msra.mxu1 %v3745_v12  ;;  %v4100_v15 = vmul.f32 %v7197_v14, %v7189_v59  ;;  %7046 = vmatprep.mubr.msk.f32.mxu1 %vm7245_vm3, %v7243_v6  ;;  %v5414_v59 = vld [vmem:[%s9653_s17 + $0xf0] sm:$0xff]  ;;  %v5405_v12 = vld [vmem:[%s9653_s17 + $0xa8] sm:$0xff]  ;;  %v5403_v14 = vld [vmem:[%s9653_s17 + $0x98] sm:$0xff] }
 0xe57   :  { %7056 = vmatprep.subr.mxu1 %v7243_v6 }
 0xe58   :  { %7032 = vmatmul.mubr.msk.f32.vlgmr.msra.gmra.mxu0 %vm1676_vm5, %v4100_v15  ;;  %v5402_v15 = vld [vmem:[%s9653_s17 + $0x90] sm:$0xff] }
 0xe59   :  { %7040 = vmatpush3.msra.mxu0 %v3675_v16  ;;  %7041 = vmatprep.mubr.msk.f32.mxu0 %vm7245_vm3, %v7243_v6  ;;  %v5401_v16 = vld [vmem:[%s9653_s17 + $0x88] sm:$0xff] }
 0xe5a   :  { %7049 = vmatprep.subr.mxu0 %v7243_v6 }
 0xe66   :  { %v4095_v17 = vpop.xlane.xlu0 %4094 }
 0xe67   :  { %7198 = vrcp.f32 %v4095_v17  ;;  %v5400_v17 = vld [vmem:[%s9653_s17 + $0x80] sm:$0xff] }
 0xe69   :  { %v4092_v18 = vpop.xlane.xlu1 %4091 }
 0xe6a   :  { %7200 = vrcp.f32 %v4092_v18 }
 0xe74   :  { %v7199_v19 = vpop.eup %7198 }
 0xe75   :  { %v4103_v21 = vmul.f32 %v7199_v19, %v7191_v2 }
 0xe77   :  { %v7201_v23 = vpop.eup %7200  ;;  %7047 = vmatmul.mubr.msk.f32.vlgmr.msra.gmra.mxu1 %vm1676_vm5, %v4103_v21 }
 0xe78   :  { %v4102_v25 = vmul.f32 %v7201_v23, %v7193_v4  ;;  %7057 = vmatpush3.msra.mxu1 %v5385_v22  ;;  %7060 = vmatprep.mubr.msk.f32.mxu1 %vm7245_vm3, %v7243_v6  ;;  %v5412_v4 = vld [vmem:[%s9653_s17 + $0xe0] sm:$0xff] }
 0xe79   :  { %7058 = vmatprep.subr.mxu1 %v7243_v6 }
 0xe7a   :  { %7042 = vmatmul.mubr.msk.f32.vlgmr.msra.gmra.mxu0 %vm1676_vm5, %v4102_v25  ;;  %7059 = vmatpush3.msra.mxu1 %v5384_v27 }
 0xe7b   :  { %7053 = vmatprep.mubr.msk.f32.mxu0 %vm7245_vm3, %v7243_v6  ;;  %7050 = vmatpush3.msra.mxu0 %v5383_v26 }
 0xe7c   :  { %7051 = vmatprep.subr.mxu0 %v7243_v6  ;;  %7070 = vmatprep.subr.mxu1 %v7243_v6 }
 0xe7d   :  { %7052 = vmatpush3.msra.mxu0 %v5382_v28  ;;  %v5398_v28 = vld [vmem:[%s9651_s15 + $0x1] ss:$0 sm:$0xff] }
 0xe7e   :  { %7063 = vmatprep.subr.mxu0 %v7243_v6 }
 0xf15   :  { %v4246_v31 = vpop.f32.mrf.mxu1 }
 0xf16   :  { %7061 = vmatmul.mubr.msk.f32.vlgmr.msra.gmra.mxu1 %vm1351_vm4, %v4246_v31 }
 0xf17   :  { %v7038_v33 = vpop.f32.mrf.mxu1  ;;  %7071 = vmatpush3.msra.mxu1 %v5389_v30  ;;  %7074 = vmatprep.mubr.msk.f32.mxu1 %vm7245_vm3, %v7243_v6 }
 0xf18   :  { %v4173_v35 = vpop.f32.mrf.mxu0  ;;  %7072 = vmatprep.subr.mxu1 %v7243_v6  ;;  %v5399_v33 = vld [vmem:[%s9652_s16 + $0x1] ss:$0 sm:$0xff] }
 0xf19   :  { %7054 = vmatmul.mubr.msk.f32.vlgmr.msra.gmra.mxu0 %vm1351_vm4, %v4173_v35  ;;  %7073 = vmatpush3.msra.mxu1 %v5388_v32 }
 0xf1a   :  { %v7033_v36 = vpop.f32.mrf.mxu0  ;;  %7064 = vmatpush3.msra.mxu0 %v5387_v34  ;;  %7067 = vmatprep.mubr.msk.f32.mxu0 %vm7245_vm3, %v7243_v6 }
 0xf1b   :  { %7065 = vmatprep.subr.mxu0 %v7243_v6  ;;  %v5433_v36 = vld [vmem:[%s9655_s19 + $0xf8] sm:$0xff] }
 0xf1c   :  { %7066 = vmatpush3.msra.mxu0 %v5386_v24  ;;  %7112 = vmatprep.subr.mxu1 %v5433_v36 }
 0xf1d   :  { %7077 = vmatprep.subr.mxu0 %v5415_v3 }
 0xf37   :  { %v4392_v37 = vpop.f32.mrf.mxu1 }
 0xf38   :  { %7075 = vmatmul.mubr.msk.f32.vlgmr.msra.gmra.mxu1 %vm1351_vm4, %v4392_v37  ;;  %v5432_v37 = vld [vmem:[%s9655_s19 + $0xf0] sm:$0xff] }
 0xf39   :  { %v7048_v38 = vpop.f32.mrf.mxu1  ;;  %7113 = vmatpush3.msra.mxu1 %v5433_v36 }
 0xf3a   :  { %v4319_v40 = vpop.f32.mrf.mxu0  ;;  %7114 = vmatprep.subr.mxu1 %v5432_v37  ;;  %v5431_v38 = vld [vmem:[%s9655_s19 + $0xe8] sm:$0xff] }
 0xf3b   :  { %7068 = vmatmul.mubr.msk.f32.vlgmr.msra.gmra.mxu0 %vm1351_vm4, %v4319_v40  ;;  %7115 = vmatpush3.msra.mxu1 %v5432_v37  ;;  %v5430_v40 = vld [vmem:[%s9655_s19 + $0xe0] sm:$0xff] }
 0xf3c   :  { %v7043_v29 = vpop.f32.mrf.mxu0  ;;  %7078 = vmatpush3.msra.mxu0 %v5415_v3  ;;  %7116 = vmatprep.subr.mxu1 %v5431_v38 }
 0xf3d   :  { %7079 = vmatprep.subr.mxu0 %v5414_v59  ;;  %7117 = vmatpush3.msra.mxu1 %v5431_v38  ;;  %v5429_v29 = vld [vmem:[%s9655_s19 + $0xd8] sm:$0xff] }
 0xf3e   :  { %7080 = vmatpush3.msra.mxu0 %v5414_v59  ;;  %7118 = vmatprep.subr.mxu1 %v5430_v40 }
 0xf3f   :  { %7081 = vmatprep.subr.mxu0 %v5413_v20  ;;  %7119 = vmatpush3.msra.mxu1 %v5430_v40 }
 0xf40   :  { %7082 = vmatpush3.msra.mxu0 %v5413_v20  ;;  %7120 = vmatprep.subr.mxu1 %v5429_v29 }
 0xf41   :  { %7083 = vmatprep.subr.mxu0 %v5412_v4  ;;  %7121 = vmatpush3.msra.mxu1 %v5429_v29 }
 0xf42   :  { %7084 = vmatpush3.msra.mxu0 %v5412_v4 }
 0xf43   :  { %7085 = vmatprep.subr.mxu0 %v5411_v5 }
 0xf44   :  { %7086 = vmatpush3.msra.mxu0 %v5411_v5 }
 0xf45   :  { %7087 = vmatprep.subr.mxu0 %v5410_v7 }
 0xf46   :  { %7088 = vmatpush3.msra.mxu0 %v5410_v7 }
 0xf47   :  { %7089 = vmatprep.subr.mxu0 %v5409_v8 }
 0xf48   :  { %7090 = vmatpush3.msra.mxu0 %v5409_v8 }
 0xf49   :  { %7091 = vmatprep.subr.mxu0 %v5408_v9 }
 0xf4a   :  { %7092 = vmatpush3.msra.mxu0 %v5408_v9 }
 0xf4b   :  { %7093 = vmatprep.subr.mxu0 %v5407_v10 }
 0xf4c   :  { %7094 = vmatpush3.msra.mxu0 %v5407_v10 }
 0xf4d   :  { %7095 = vmatprep.subr.mxu0 %v5406_v11 }
 0xf4e   :  { %7096 = vmatpush3.msra.mxu0 %v5406_v11  ;;  %v5435_v11 = vld [vmem:[%s9656_s20 + $0x1] ss:$0 sm:$0xff] }
 0xf4f   :  { %7097 = vmatprep.subr.mxu0 %v5405_v12 }
 0xf50   :  { %7098 = vmatpush3.msra.mxu0 %v5405_v12 }
 0xf51   :  { %7099 = vmatprep.subr.mxu0 %v5404_v13 }
 0xf52   :  { %7100 = vmatpush3.msra.mxu0 %v5404_v13 }
 0xf53   :  { %7101 = vmatprep.subr.mxu0 %v5403_v14 }
 0xf54   :  { %7102 = vmatpush3.msra.mxu0 %v5403_v14 }
 0xf55   :  { %7103 = vmatprep.subr.mxu0 %v5402_v15 }
 0xf56   :  { %7104 = vmatpush3.msra.mxu0 %v5402_v15 }
 0xf57   :  { %7105 = vmatprep.subr.mxu0 %v5401_v16 }
 0xf58   :  { %7106 = vmatpush3.msra.mxu0 %v5401_v16 }
 0xf59   :  { %7107 = vmatprep.subr.mxu0 %v5400_v17 }
 0xf5a   :  { %7108 = vmatpush3.msra.mxu0 %v5400_v17 }
 0xfd6   :  { %v4547_v41 = vpop.f32.mrf.mxu1 }
 0xfd8   :  { %v7062_v42 = vpop.f32.mrf.mxu1 }
 0xfd9   :  { %v4474_v43 = vpop.f32.mrf.mxu0  ;;  %v5427_v42 = vld [vmem:[%s9655_s19 + $0xc8] sm:$0xff] }
 0xfdb   :  { %v7055_v44 = vpop.f32.mrf.mxu0 }
 0xfdc   :  { %v5425_v44 = vld [vmem:[%s9655_s19 + $0xb8] sm:$0xff] }
 0xff8   :  { %v4693_v45 = vpop.f32.mrf.mxu1 }
 0xff9   :  { %v4698_v47 = vadd.f32 %v4693_v45, %v4547_v41  ;;  %v5428_v41 = vld [vmem:[%s9655_s19 + $0xd0] sm:$0xff] }
 0xffa   :  { %v7076_v49 = vpop.f32.mrf.mxu1  ;;  %7122 = vmatprep.subr.mxu1 %v5428_v41  ;;  %v5424_v45 = vld [vmem:[%s9655_s19 + $0xb0] sm:$0xff] }
 0xffb   :  { %v4708_v51 = vadd.f32 %v5395_v46, %v4698_v47  ;;  %v4620_v53 = vpop.f32.mrf.mxu0  ;;  %7123 = vmatpush3.msra.mxu1 %v5428_v41  ;;  %v5422_v47 = vld [vmem:[%s9655_s19 + $0xa0] sm:$0xff]  ;;  %v5421_v49 = vld [vmem:[%s9655_s19 + $0x98] sm:$0xff] }
 0xffc   :  { %v4697_v54 = vadd.f32 %v4620_v53, %v4474_v43  ;;  %v5426_v43 = vld [vmem:[%s9655_s19 + $0xc0] sm:$0xff]  ;;  %7124 = vmatprep.subr.mxu1 %v5427_v42  ;;  %v5419_v53 = vld [vmem:[%s9655_s19 + $0x88] sm:$0xff] }
 0xffd   :  { %v7069_v55 = vpop.f32.mrf.mxu0  ;;  %v4710_v56 = vadd.f32 %v4708_v51, %v8680_v58  ;;  %7125 = vmatpush3.msra.mxu1 %v5427_v42  ;;  %v5420_v51 = vld [vmem:[%s9655_s19 + $0x90] sm:$0xff] }
 0xffe   :  { %v4707_v57 = vadd.f32 %v5395_v46, %v4697_v54  ;;  %7126 = vmatprep.subr.mxu1 %v5426_v43  ;;  %v5423_v46 = vld [vmem:[%s9655_s19 + $0xa8] sm:$0xff]  ;;  %v5418_v54 = vld [vmem:[%s9655_s19 + $0x80] sm:$0xff] }
 0xfff   :  { %4717 = vadd.xlane.f32.xlu0 %v4710_v56  ;;  %7127 = vmatpush3.msra.mxu1 %v5426_v43  ;;  %v5417_v55 = vld [vmem:[%s9683_s25 + $0x1] ss:$0 sm:$0xff] }
0x1000   :  { %v4709_v48 = vadd.f32 %v4707_v57, %v8685_v62  ;;  %7128 = vmatprep.subr.mxu1 %v5425_v44 }
0x1001   :  { %7129 = vmatpush3.msra.mxu1 %v5425_v44 }
0x1002   :  { %4715 = vadd.xlane.f32.xlu1 %v4709_v48  ;;  %7130 = vmatprep.subr.mxu1 %v5424_v45 }
0x1003   :  { %7131 = vmatpush3.msra.mxu1 %v5424_v45 }
0x1004   :  { %7132 = vmatprep.subr.mxu1 %v5423_v46 }
0x1005   :  { %7133 = vmatpush3.msra.mxu1 %v5423_v46 }
0x1006   :  { %7134 = vmatprep.subr.mxu1 %v5422_v47 }
0x1007   :  { %7135 = vmatpush3.msra.mxu1 %v5422_v47 }
0x1008   :  { %7136 = vmatprep.subr.mxu1 %v5421_v49 }
0x1009   :  { %7137 = vmatpush3.msra.mxu1 %v5421_v49 }
0x100a   :  { %7138 = vmatprep.subr.mxu1 %v5420_v51 }
0x100b   :  { %7139 = vmatpush3.msra.mxu1 %v5420_v51 }
0x100c   :  { %7140 = vmatprep.subr.mxu1 %v5419_v53 }
0x100d   :  { %7141 = vmatpush3.msra.mxu1 %v5419_v53 }
0x100e   :  { %7142 = vmatprep.subr.mxu1 %v5418_v54 }
0x100f   :  { %7143 = vmatpush3.msra.mxu1 %v5418_v54 }
0x1088   :  { %v4718_v60 = vpop.xlane.xlu0 %4717 }
0x1089   :  { %v4720_v61 = vmul.f32 0.03125, %v4718_v60 }
0x108b   :  { %v4722_v58 = vsub.f32 %v4710_v56, %v4720_v61  ;;  %v4716_v50 = vpop.xlane.xlu1 %4715 }
0x108c   :  { %v4719_v63 = vmul.f32 0.03125, %v4716_v50 }
0x108d   :  { %v4724_v62 = vmul.f32 %v7455_v39, %v4722_v58 }
0x108e   :  { %v4721_v0 = vsub.f32 %v4709_v48, %v4719_v63 }
0x108f   :  { %v4726_v1 = vmul.f32 %v4724_v62, %v4724_v62 }
0x1090   :  { %v4723_v52 = vmul.f32 %v7455_v39, %v4721_v0 }
0x1091   :  { %4729 = vadd.xlane.f32.xlu0 %v4726_v1 }
0x1092   :  { %v4725_v2 = vmul.f32 %v4723_v52, %v4723_v52 }
0x1094   :  { %4727 = vadd.xlane.f32.xlu1 %v4725_v2 }
0x111a   :  { %v4730_v18 = vpop.xlane.xlu0 %4729 }
0x111b   :  { %v4732_v19 = vmul.f32 0.03125, %v4730_v18  ;;  %v7218_v18 = vld [vmem:[%s9676_s24] sm:$0xff] }
0x111c   :  { %vm5019_vm6 = vcmp.ne.s32.totalorder %v7218_v18, 101  ;;  %vm5021_vm7 = vcmp.ne.s32.totalorder %v7218_v18, 102  ;;  %vm5025_vm9 = vcmp.ne.s32.totalorder %v7218_v18, 103 }
0x111d   :  { %v4734_v21 = vadd.f32 1e-12, %v4732_v19  ;;  %v4728_v22 = vpop.xlane.xlu1 %4727  ;;  %vm5023_vm8 = vmand %vm5019_vm6, %vm5021_vm7  ;;  %v7219_v19 = vld [vmem:[%s9676_s24 + $0x8] sm:$0xff] }
0x111e   :  { %v4731_v23 = vmul.f32 0.03125, %v4728_v22  ;;  %vm5020_vm10 = vcmp.ne.s32.totalorder %v7219_v19, 101  ;;  %vm5022_vm11 = vcmp.ne.s32.totalorder %v7219_v19, 102  ;;  %vm5027_vm12 = vmand %vm5023_vm8, %vm5025_vm9  ;;  %vm5026_vm14 = vcmp.ne.s32.totalorder %v7219_v19, 103  ;;  %v5033_v22 = vld [vmem:[%s9684_s7] sm:$0xff] }
0x111f   :  { %7202 = vrsqrt.f32 %v4734_v21  ;;  %vm5024_vm13 = vmand %vm5020_vm10, %vm5022_vm11  ;;  %v5440_v21 = vsel %vm5027_vm12, 1.0, %v7243_v6 }
0x1120   :  { %v4733_v25 = vadd.f32 1e-12, %v4731_v23  ;;  %vm5028_vm15 = vmand %vm5024_vm13, %vm5026_vm14  ;;  %v5035_v23 = vmul.f32 %v5440_v21, %v5033_v22 }
0x1122   :  { %7204 = vrsqrt.f32 %v4733_v25  ;;  %v5441_v25 = vsel %vm5028_vm15, 1.0, %v7243_v6 }
0x112c   :  { %v7203_v26 = vpop.eup %7202 }
0x112d   :  { %v4738_v27 = vmul.f32 %v7203_v26, %v4724_v62  ;;  %v5034_v26 = vld [vmem:[%s9684_s7 + $0x8] sm:$0xff] }
0x112f   :  { %v7205_v30 = vpop.eup %7204  ;;  %v4746_v32 = vmul.f32 %v5398_v28, %v4738_v27  ;;  %v5036_v27 = vmul.f32 %v5441_v25, %v5034_v26 }
0x1130   :  { %v4737_v31 = vmul.f32 %v7205_v30, %v4723_v52 }
0x1131   :  { %v9551_v24 = vadd.f32 %v5399_v33, %v4746_v32 }
0x1132   :  { %v4745_v34 = vmul.f32 %v5398_v28, %v4737_v31  ;;  %v5062_v28 = vsel %vm5061_vm0, %v5035_v23, 0.0  ;;  %v5069_v31 = vsel %vm5061_vm0, %v5036_v27, 0.0 }
0x1133   :  { %v5063_v30 = vrot.slane %v5062_v28, 4  ;;  %v5070_v32 = vrot.slane %v5069_v31, 4 }
0x1134   :  { %v9549_v35 = vadd.f32 %v5399_v33, %v4745_v34 }
0x1135   :  { %v5064_v33 = vadd.f32 %v5063_v30, %v5062_v28  ;;  %v5071_v34 = vadd.f32 %v5070_v32, %v5069_v31 }
0x1136   :  { %7109 = vmatprep.mubr.f32.mxu0 %v9549_v35 }
0x1137   :  { %7110 = vmatmul.mubr.f32.vlgmr.msra.gmra.mxu0 %v9551_v24  ;;  %v5072_v36 = vrot.slane %v5071_v34, 2 }
0x1139   :  { %v5073_v41 = vadd.f32 %v5072_v36, %v5071_v34 }
0x113b   :  { %v5074_v47 = vrot.slane %v5073_v41, 1 }
0x113d   :  { %v5075_v53 = vadd.f32 %v5074_v47, %v5073_v41 }
0x11f7   :  { %v7111_v56 = vpop.f32.mrf.mxu0 }
0x11f8   :  { %v4852_v57 = vadd.f32 %v7111_v56, %v5417_v55 }
0x11f9   :  { %v4846_v48 = vpop.f32.mrf.mxu0 }
0x11fa   :  { %v4856_v3 = vmul.f32 %v4852_v57, %v4852_v57  ;;  %v4847_v59 = vadd.f32 %v5417_v55, %v4846_v48  ;;  %v5077_v55 = vmax.f32 %v5075_v53, 1e-09 }
0x11fc   :  { %v4858_v60 = vmul.f32 %v4856_v3, %v4852_v57  ;;  %v4855_v61 = vmul.f32 %v4847_v59, %v4847_v59 }
0x11fe   :  { %v4860_v58 = vmul.f32 0.044715, %v4858_v60  ;;  %v4857_v50 = vmul.f32 %v4855_v61, %v4847_v59 }
0x1200   :  { %v4862_v63 = vadd.f32 %v4860_v58, %v4852_v57  ;;  %v4859_v62 = vmul.f32 0.044715, %v4857_v50  ;;  %v5438_v50 = vld [vmem:[%s9657_s21 + $0x1] ss:$0 sm:$0xff]  ;;  %s7246_s21 = smov [#allocation2]  }
0x1202   :  { %v4864_v0 = vmul.f32 0.7978846, %v4862_v63  ;;  %v4861_v1 = vadd.f32 %v4859_v62, %v4847_v59 }
0x1204   :  { %7206 = vtanh.f32 %v4864_v0  ;;  %v4863_v52 = vmul.f32 0.7978846, %v4861_v1  ;;  %v5439_v0 = vld [vmem:[%s9658_s22 + $0x1] ss:$0 sm:$0xff]  ;;  %s5104_s22 = sshll.u32 %s7246_s21, 4  ;;  %s5105_s22 = int_to_ptr.vmem [resolvable:$true] %s5104_s22 }
0x1205   :  { %s7220_s3 = scalar_lea.vmem %s5105_s22, 32  ;;  %p7225_p1 = scmp.lt.s32.totalorder %s5105_s22, %s5105_s22 }
0x1206   :  { %7208 = vtanh.f32 %v4863_v52  ;;  %p7221_p0 = scmp.ne.s32.totalorder %s5105_s22, %s7220_s3  ;;  %p7226_p2 = scmp.lt.s32.totalorder %s7220_s3, %s7220_s3 }
0x1208   :  { %p7227_p3 = por %p7226_p2, %p7225_p1 }
0x120a   :  { %p7228_p4 = pnand %p7227_p3, %p7221_p0 }
0x1211   :  { %v7207_v2 = vpop.eup %7206 }
0x1212   :  { %v4868_v20 = vadd.f32 1.0, %v7207_v2 }
0x1213   :  { %v7209_v4 = vpop.eup %7208 }
0x1214   :  { %v4867_v5 = vadd.f32 1.0, %v7209_v4  ;;  %v4870_v7 = vmul.f32 0.5, %v4868_v20 }
0x1216   :  { %v4869_v8 = vmul.f32 0.5, %v4867_v5  ;;  %v4872_v10 = vmul.f32 %v4870_v7, %v4852_v57 }
0x1218   :  { %v4871_v9 = vmul.f32 %v4869_v8, %v4847_v59 }
0x121a   :  { %7144 = vmatprep.mubr.f32.mxu1 %v4871_v9 }
0x121b   :  { %7145 = vmatmul.mubr.f32.vlgmr.msra.gmra.mxu1 %v4872_v10 }
0x12db   :  { %v7146_v12 = vpop.f32.mrf.mxu1 }
0x12dc   :  { %v4970_v13 = vadd.f32 %v7146_v12, %v5435_v11 }
0x12dd   :  { %v4964_v14 = vpop.f32.mrf.mxu1 }
0x12de   :  { %v4965_v15 = vadd.f32 %v5435_v11, %v4964_v14  ;;  %v4974_v16 = vadd.f32 %v4970_v13, %v9551_v24 }
0x12e0   :  { %4981 = vadd.xlane.f32.xlu0 %v4974_v16  ;;  %v4973_v17 = vadd.f32 %v4965_v15, %v9549_v35  ;;  %v5065_v35 = vrot.slane %v5064_v33, 2 }
0x12e2   :  { %4979 = vadd.xlane.f32.xlu1 %v4973_v17  ;;  %v5066_v37 = vadd.f32 %v5065_v35, %v5064_v33 }
0x12e4   :  { %v5067_v42 = vrot.slane %v5066_v37, 1 }
0x12e6   :  { %v5068_v49 = vadd.f32 %v5067_v42, %v5066_v37 }
0x12e8   :  { %v5076_v54 = vmax.f32 %v5068_v49, 1e-09 }
0x12ea   :  { %7210 = vrcp.f32 %v5076_v54 }
0x12eb   :  { %7212 = vrcp.f32 %v5077_v55 }
0x12f7   :  { %v7211_v56 = vpop.eup %7210 }
0x12f8   :  { %v7213_v57 = vpop.eup %7212 }
0x1369   :  { %v4982_v24 = vpop.xlane.xlu0 %4981 }
0x136a   :  { %v4984_v38 = vmul.f32 0.03125, %v4982_v24 }
0x136b   :  { %v4980_v40 = vpop.xlane.xlu1 %4979 }
0x136c   :  { %v4986_v29 = vsub.f32 %v4974_v16, %v4984_v38  ;;  %v4983_v6 = vmul.f32 0.03125, %v4980_v40 }
0x136e   :  { %v4985_v43 = vsub.f32 %v4973_v17, %v4983_v6  ;;  %v4988_v44 = vmul.f32 %v7455_v39, %v4986_v29 }
0x1370   :  { %v4990_v45 = vmul.f32 %v4988_v44, %v4988_v44  ;;  %v4987_v46 = vmul.f32 %v7455_v39, %v4985_v43 }
0x1372   :  { %4993 = vadd.xlane.f32.xlu0 %v4990_v45  ;;  %v4989_v51 = vmul.f32 %v4987_v46, %v4987_v46 }
0x1374   :  { %4991 = vadd.xlane.f32.xlu1 %v4989_v51 }
0x1385   :  { %5039 = vperm.xlu1 %7153, %v5035_v23  }
0x1388   :  { %5044 = vperm.xlu0 %7152, %v5036_v27  }
0x1389   :  { %5082 = vperm.xlu1 %7153, %v7211_v56  }
0x138d   :  { %5087 = vperm.xlu1 %7153, %v7213_v57  }
0x13fb   :  { %v4994_v48 = vpop.xlane.xlu0 %4993 }
0x13fc   :  { %v4996_v3 = vmul.f32 0.03125, %v4994_v48 }
0x13fd   :  { %v4992_v59 = vpop.xlane.xlu1 %4991 }
0x13fe   :  { %v4998_v39 = vadd.f32 1e-12, %v4996_v3  ;;  %v4995_v60 = vmul.f32 0.03125, %v4992_v59 }
0x1400   :  { %7214 = vrsqrt.f32 %v4998_v39  ;;  %v4997_v61 = vadd.f32 1e-12, %v4995_v60 }
0x1401   :  { %v5040_v8 = vpop.permute.xlu1 %5039 }
0x1402   :  { %7216 = vrsqrt.f32 %v4997_v61 }
0x1403   :  { %v5045_v4 = vpop.permute.xlu0 %5044 }
0x1405   :  { %v5083_v17 = vpop.permute.xlu1 %5082 }
0x1409   :  { %v5088_v25 = vpop.permute.xlu1 %5087 }
0x140d   :  { %v7215_v58 = vpop.eup %7214 }
0x140e   :  { %v5002_v63 = vmul.f32 %v7215_v58, %v4988_v44 }
0x140f   :  { %v7217_v62 = vpop.eup %7216 }
0x1410   :  { %v5010_v1 = vmul.f32 %v5438_v50, %v5002_v63  ;;  %v5001_v52 = vmul.f32 %v7217_v62, %v4987_v46 }
0x1412   :  { %v5018_v2 = vadd.f32 %v5439_v0, %v5010_v1  ;;  %v5009_v20 = vmul.f32 %v5438_v50, %v5001_v52 }
0x1414   :  { %v5048_v5 = vmul.f32 %v5045_v4, %v5018_v2  ;;  %v5017_v7 = vadd.f32 %v5439_v0, %v5009_v20 }
0x1416   :  { %v5055_v9 = vrot.slane %v5048_v5, 4  ;;  %v5047_v10 = vmul.f32 %v5040_v8, %v5017_v7 }
0x1418   :  { %v5056_v11 = vadd.f32 %v5055_v9, %v5048_v5  ;;  %v5049_v12 = vrot.slane %v5047_v10, 4 }
0x141a   :  { %v5057_v13 = vrot.slane %v5056_v11, 2  ;;  %v5050_v14 = vadd.f32 %v5049_v12, %v5047_v10 }
0x141c   :  { %v5051_v15 = vrot.slane %v5050_v14, 2  ;;  %v5058_v16 = vadd.f32 %v5057_v13, %v5056_v11 }
0x141e   :  { %v5052_v18 = vadd.f32 %v5051_v15, %v5050_v14  ;;  %v5059_v19 = vrot.slane %v5058_v16, 1 }
0x1420   :  { %v5053_v21 = vrot.slane %v5052_v18, 1  ;;  %v5060_v22 = vadd.f32 %v5059_v19, %v5058_v16 }
0x1422   :  { %v5054_v23 = vadd.f32 %v5053_v21, %v5052_v18  ;;  %v5091_v27 = vmul.f32 %v5088_v25, %v5060_v22 }
0x1424   :  { %v5090_v26 = vmul.f32 %v5083_v17, %v5054_v23 }
0x1426   :  { %v5095_v28 = vsel %vm5094_vm1, %v5091_v27, %v5090_v26 }
0x1427   :  { %5097 = vst [vmem:[#allocation2] sm:$0x3] %v5095_v28 }
0x1428   :  { %7231 = shalt.err (!%p7228_p4)
}
0x1429   :  { %5107 = dma.vmem_to_hbm [thread:$0]  %s5105_s22, 32, %s9659_s23, [#allocation3]  }
0x142a   :  { %7240 = dma.done.wait [#allocation3], 32  }
0x142b   :  { %7241 = vsyncadd [#allocation3], 4294967264 }
0x142c   :  { %5111 = vsyncpa [#allocation3], 1 }

</bundles_post_ra>
